<compile_context>
chip_gen: v5e
topology: v5e:2x2
jax: 0.10.0
libtpu: 0.0.40
codegen_flags: <defaults>
</compile_context>

<pallas_src>
import functools
import math

import jax
import jax.numpy as jnp
from jax.experimental import pallas as pl
from jax.experimental.pallas import tpu as pltpu


def _spectral_kernel(codes_ref, xr_ref, xi_ref, a1_ref, b1_ref, wr_ref, wi_ref,
                     or_ref, oi_ref):
    # One (mode-tile, batch-tile) block:
    #   codes : (Bt, C, R)       real
    #   xr/xi : (Mt, Bt, Cin)    Re/Im of x_ft, mode-major
    #   a1    : (Mt, Cin, C)     A_1, mode-major                 (resident over batch axis)
    #   b1    : (Mt, R, Cout)    factor * B_1, mode-major        (resident over batch axis)
    #   wr/wi : (Mt, Cin, Cout)  Re/Im of weights1, mode-major   (resident over batch axis)
    #   or/oi : (Mt, Bt, Cout)   Re/Im of out_ft modes
    def mm(lhs, rhs):
        # (Mt, Bt, K) x (Mt, K, N) -> (Mt, Bt, N): per-mode matmuls on the MXU, batched
        # over the mode axis, f32 accumulation, full f32 precision.
        return jax.lax.dot_general(
            lhs, rhs,
            dimension_numbers=(((2,), (1,)), ((0,), (0,))),
            precision=jax.lax.Precision.HIGHEST,
            preferred_element_type=jnp.float32)

    xr = xr_ref[...]
    xi = xi_ref[...]
    wr = wr_ref[...]
    wi = wi_ref[...]
    a1 = a1_ref[...]
    b1 = b1_ref[...]
    cds = codes_ref[...]

    # base[m,b,o] = sum_i x_ft[m,b,i] * weights1[m,i,o]   (complex x complex)
    base_r = mm(xr, wr) - mm(xi, wi)
    base_i = mm(xr, wi) + mm(xi, wr)

    # s[m,b,c] = sum_i x_ft[m,b,i] * A_1[m,i,c]           (complex x real)
    s_r = mm(xr, a1)
    s_i = mm(xi, a1)

    # t[m,b,r] = sum_c s[m,b,c] * codes[b,c,r]            (tiny; unrolled over the code dim)
    n_code = cds.shape[1]
    n_rank = cds.shape[2]
    t_shape = (s_r.shape[0], s_r.shape[1], n_rank)
    t_r = jnp.zeros(t_shape, jnp.float32)
    t_i = jnp.zeros(t_shape, jnp.float32)
    for c in range(n_code):                       # n_code (the GEPS "code" dim) is small
        coef = cds[:, c, :][None, :, :]           # (1, Bt, R)
        t_r = t_r + s_r[:, :, c:c + 1] * coef
        t_i = t_i + s_i[:, :, c:c + 1] * coef

    # out = base + sum_r t[m,b,r] * (factor*B_1)[m,r,o]
    or_ref[...] = base_r + mm(t_r, b1)
    oi_ref[...] = base_i + mm(t_i, b1)


def geps_spectral_conv1d(x, codes, params, *, modes1, factor=1.0):
    """Pallas implementation of GEPSSpectralConv1d_fast.forward."""
    weights1 = params["weights1"]                 # (Cin, Cout, modes1) complex64
    A1 = params["A_1"].astype(jnp.float32)        # (Cin, C, modes1)
    B1 = params["B_1"].astype(jnp.float32)        # (R, Cout, modes1)
    Bsz, Cin, N = x.shape
    Cout = weights1.shape[1]
    C = A1.shape[1]
    R = B1.shape[0]
    n_freq = N // 2 + 1
    M = min(modes1, n_freq)                       # guard against modes1 > n_freq

    # ---- FFT (XLA; no Pallas FFT primitive) ----
    x_ft = jnp.fft.rfft(x.astype(jnp.float32), axis=-1)          # (B, Cin, n_freq) c64
    xm = x_ft[:, :, :M]
    # Mode-major layout: the Cin contraction becomes per-mode matmuls (MXU) with the batch
    # tile as rows.
    xr = jnp.transpose(jnp.real(xm), (2, 0, 1))                  # (M, B, Cin)
    xi = jnp.transpose(jnp.imag(xm), (2, 0, 1))

    wr = jnp.transpose(jnp.real(weights1)[:, :, :M], (2, 0, 1)).astype(jnp.float32)
    wi = jnp.transpose(jnp.imag(weights1)[:, :, :M], (2, 0, 1)).astype(jnp.float32)
    a1 = jnp.transpose(A1[:, :, :M], (2, 0, 1))                  # (M, Cin, C)
    b1 = jnp.transpose(B1[:, :, :M], (2, 0, 1)) * jnp.float32(factor)   # factor folded once
    cds = codes.astype(jnp.float32)                              # (B, C, R)

    # ---- tiling (mode tiles on the outer/grid axis, batch tiles inner) ----
    Mt = M if M <= 128 else 128
    Mp = math.ceil(M / Mt) * Mt
    if Bsz <= 8:
        Bt = Bsz                                  # full batch (block == full dim is legal)
    else:
        Bt = min(128, math.ceil(Bsz / 8) * 8)     # multiple of 8 (sublane) rows for the MXU
    Bp = math.ceil(Bsz / Bt) * Bt
    n_mi, n_bi = Mp // Mt, Bp // Bt

    def pad_to(a, size, axis):
        if a.shape[axis] == size:
            return a
        widths = [(0, 0)] * a.ndim
        widths[axis] = (0, size - a.shape[axis])
        return jnp.pad(a, widths)

    xr = pad_to(pad_to(xr, Mp, 0), Bp, 1)
    xi = pad_to(pad_to(xi, Mp, 0), Bp, 1)
    wr = pad_to(wr, Mp, 0)
    wi = pad_to(wi, Mp, 0)
    a1 = pad_to(a1, Mp, 0)
    b1 = pad_to(b1, Mp, 0)
    cds = pad_to(cds, Bp, 0)

    # VMEM budget: double-buffered blocks + headroom; capped so it stays legal on v7x
    # (64 MiB physical) while raising v5e's small default scoped limit.
    block_bytes = 4 * (2 * Mt * Bt * Cin + 2 * Mt * Cin * Cout
                       + Mt * Cin * C + Mt * R * Cout
                       + Bt * C * R + 2 * Mt * Bt * Cout)
    vmem_limit = int(min(max(32 * 1024 * 1024, 2 * block_bytes + (4 << 20)),
                         64 * 1024 * 1024))

    flops = 2 * Bsz * M * (4 * Cin * Cout + 2 * Cin * C + C * R + 2 * R * Cout)
    bytes_accessed = 4 * (2 * Mp * Bp * (Cin + Cout)                      # x_ft in, out
                          + Mp * (2 * Cin * Cout + Cin * C + R * Cout)    # weights (one pass)
                          + n_mi * Bp * C * R)                            # codes per mode tile

    out_r, out_i = pl.pallas_call(
        _spectral_kernel,
        out_shape=(jax.ShapeDtypeStruct((Mp, Bp, Cout), jnp.float32),
                   jax.ShapeDtypeStruct((Mp, Bp, Cout), jnp.float32)),
        grid_spec=pltpu.PrefetchScalarGridSpec(
            num_scalar_prefetch=0,
            grid=(n_mi, n_bi),   # modes outer -> mode-indexed weights resident across batch
            in_specs=[
                pl.BlockSpec((Bt, C, R), lambda mi, bi: (bi, 0, 0)),        # codes
                pl.BlockSpec((Mt, Bt, Cin), lambda mi, bi: (mi, bi, 0)),    # Re x_ft
                pl.BlockSpec((Mt, Bt, Cin), lambda mi, bi: (mi, bi, 0)),    # Im x_ft
                pl.BlockSpec((Mt, Cin, C), lambda mi, bi: (mi, 0, 0)),      # A_1
                pl.BlockSpec((Mt, R, Cout), lambda mi, bi: (mi, 0, 0)),     # factor * B_1
                pl.BlockSpec((Mt, Cin, Cout), lambda mi, bi: (mi, 0, 0)),   # Re weights1
                pl.BlockSpec((Mt, Cin, Cout), lambda mi, bi: (mi, 0, 0)),   # Im weights1
            ],
            out_specs=[
                pl.BlockSpec((Mt, Bt, Cout), lambda mi, bi: (mi, bi, 0)),
                pl.BlockSpec((Mt, Bt, Cout), lambda mi, bi: (mi, bi, 0)),
            ],
        ),
        compiler_params=pltpu.CompilerParams(
            dimension_semantics=("parallel", "parallel"),
            vmem_limit_bytes=vmem_limit,
        ),
        cost_estimate=pl.CostEstimate(flops=flops, transcendentals=0,
                                      bytes_accessed=bytes_accessed),
    )(cds, xr, xi, a1, b1, wr, wi)

    out_modes = jax.lax.complex(out_r[:M, :Bsz], out_i[:M, :Bsz])   # (M, B, Cout)
    out_modes = jnp.transpose(out_modes, (1, 2, 0))                 # (B, Cout, M)
    # NOTE: the original PyTorch code allocates out_ft with in_channels, which only runs
    # when in_channels == out_channels; we allocate with out_channels (identical then).
    if M == n_freq:
        out_ft = out_modes
    else:
        out_ft = jax.lax.dynamic_update_slice(
            jnp.zeros((Bsz, Cout, n_freq), out_modes.dtype), out_modes, (0, 0, 0))
    return jnp.fft.irfft(out_ft, n=N, axis=-1)                      # (B, Cout, N) float32


def geps_spectral_conv1d_reference(x, codes, params, *, modes1, factor=1.0):
    """Pure-JAX replication of the PyTorch forward (for verification)."""
    weights1 = params["weights1"]
    A1, B1 = params["A_1"], params["B_1"]
    Bsz, Cin, N = x.shape
    Cout = weights1.shape[1]
    n_freq = N // 2 + 1
    M = min(modes1, n_freq)
    x_ft = jnp.fft.rfft(x, axis=-1)
    w1 = jnp.einsum("icm,bcr->birm", A1, codes, precision="highest")
    ctx = jnp.einsum("birm,rom->biom", w1, B1, precision="highest")
    w = weights1[None] + factor * ctx                               # real added to real part
    out_modes = jnp.einsum("bix,biox->box", x_ft[:, :, :M], w[..., :M], precision="highest")
    out_ft = jnp.zeros((Bsz, Cout, n_freq), dtype=jnp.complex64)
    out_ft = out_ft.at[:, :, :M].set(out_modes)
    return jnp.fft.irfft(out_ft, n=N, axis=-1)


def init_params(key, in_channels, out_channels, modes1, code, dtype=jnp.float32):
    """Parameter shapes/scales mirroring the PyTorch module constructor."""
    kwr, kwi, ka, kb = jax.random.split(key, 4)
    scale = 1.0 / (in_channels * out_channels)
    w_r = scale * jax.random.uniform(kwr, (in_channels, out_channels, modes1), dtype)
    w_i = scale * jax.random.uniform(kwi, (in_channels, out_channels, modes1), dtype)
    return {
        "weights1": jax.lax.complex(w_r, w_i),                                   # cfloat
        "A_1": 0.1 * jax.random.normal(ka, (in_channels, code, modes1), dtype),
        "B_1": 0.1 * jax.random.normal(kb, (code, out_channels, modes1), dtype),
    }


if __name__ == "__main__":
    B, Cin, Cout, N = 2, 4, 4, 16          # Cin == Cout (required by the original out_ft alloc)
    MODES, CODE, FACTOR = 8, 4, 1.0

    key = jax.random.PRNGKey(0)
    kx, kc, kp = jax.random.split(key, 3)
    x = jax.random.normal(kx, (B, Cin, N), jnp.float32)
    codes = 0.5 * jax.random.normal(kc, (B, CODE, CODE), jnp.float32)
    params = init_params(kp, Cin, Cout, MODES, CODE)

    fwd = jax.jit(functools.partial(geps_spectral_conv1d, modes1=MODES, factor=FACTOR))
    out = jax.block_until_ready(fwd(x, codes, params))

    ref = jax.block_until_ready(
        geps_spectral_conv1d_reference(x, codes, params, modes1=MODES, factor=FACTOR))

    assert out.shape == (B, Cout, N), out.shape
    max_err = float(jnp.max(jnp.abs(out - ref)))
    assert max_err < 1e-3, max_err
    print("KERNEL_OK")
</pallas_src>

<mosaic_0001>
module attributes {stable_mosaic.version = 11 : i64} {
  func.func @_spectral_kernel(%arg0: i32, %arg1: i32, %arg2: memref<2x4x4xf32, #tpu.memory_space<vmem>>, %arg3: memref<8x2x4xf32, #tpu.memory_space<vmem>>, %arg4: memref<8x2x4xf32, #tpu.memory_space<vmem>>, %arg5: memref<8x4x4xf32, #tpu.memory_space<vmem>>, %arg6: memref<8x4x4xf32, #tpu.memory_space<vmem>>, %arg7: memref<8x4x4xf32, #tpu.memory_space<vmem>>, %arg8: memref<8x4x4xf32, #tpu.memory_space<vmem>>, %arg9: memref<8x2x4xf32, #tpu.memory_space<vmem>>, %arg10: memref<8x2x4xf32, #tpu.memory_space<vmem>>) attributes {dimension_semantics = [#tpu.dimension_semantics<parallel>, #tpu.dimension_semantics<parallel>], iteration_bounds = array<i64: 1, 1>, scalar_prefetch = 0 : i64, scratch_operands = 0 : i64, tpu.core_type = #tpu.core_type<tc>, window_params = [{transform_indices = @transform_0, window_bounds = array<i64: 2, 4, 4>}, {transform_indices = @transform_1, window_bounds = array<i64: 8, 2, 4>}, {transform_indices = @transform_2, window_bounds = array<i64: 8, 2, 4>}, {transform_indices = @transform_3, window_bounds = array<i64: 8, 4, 4>}, {transform_indices = @transform_4, window_bounds = array<i64: 8, 4, 4>}, {transform_indices = @transform_5, window_bounds = array<i64: 8, 4, 4>}, {transform_indices = @transform_6, window_bounds = array<i64: 8, 4, 4>}, {transform_indices = @transform_7, window_bounds = array<i64: 8, 2, 4>}, {transform_indices = @transform_8, window_bounds = array<i64: 8, 2, 4>}]} {
    %c0 = arith.constant 0 : index
    %c0_0 = arith.constant 0 : index
    %c0_1 = arith.constant 0 : index
    %0 = vector.load %arg3[%c0, %c0_0, %c0_1] : memref<8x2x4xf32, #tpu.memory_space<vmem>>, vector<8x2x4xf32>
    %c0_2 = arith.constant 0 : index
    %c0_3 = arith.constant 0 : index
    %c0_4 = arith.constant 0 : index
    %1 = vector.load %arg4[%c0_2, %c0_3, %c0_4] : memref<8x2x4xf32, #tpu.memory_space<vmem>>, vector<8x2x4xf32>
    %c0_5 = arith.constant 0 : index
    %c0_6 = arith.constant 0 : index
    %c0_7 = arith.constant 0 : index
    %2 = vector.load %arg7[%c0_5, %c0_6, %c0_7] : memref<8x4x4xf32, #tpu.memory_space<vmem>>, vector<8x4x4xf32>
    %c0_8 = arith.constant 0 : index
    %c0_9 = arith.constant 0 : index
    %c0_10 = arith.constant 0 : index
    %3 = vector.load %arg8[%c0_8, %c0_9, %c0_10] : memref<8x4x4xf32, #tpu.memory_space<vmem>>, vector<8x4x4xf32>
    %c0_11 = arith.constant 0 : index
    %c0_12 = arith.constant 0 : index
    %c0_13 = arith.constant 0 : index
    %4 = vector.load %arg5[%c0_11, %c0_12, %c0_13] : memref<8x4x4xf32, #tpu.memory_space<vmem>>, vector<8x4x4xf32>
    %c0_14 = arith.constant 0 : index
    %c0_15 = arith.constant 0 : index
    %c0_16 = arith.constant 0 : index
    %5 = vector.load %arg6[%c0_14, %c0_15, %c0_16] : memref<8x4x4xf32, #tpu.memory_space<vmem>>, vector<8x4x4xf32>
    %c0_17 = arith.constant 0 : index
    %c0_18 = arith.constant 0 : index
    %c0_19 = arith.constant 0 : index
    %6 = vector.load %arg2[%c0_17, %c0_18, %c0_19] : memref<2x4x4xf32, #tpu.memory_space<vmem>>, vector<2x4x4xf32>
    %cst = arith.constant dense<0.000000e+00> : vector<8x2x4xf32>
    %7 = tpu.matmul %0, %2, %cst {dimension_numbers = #tpu.dot_dimension_numbers<[2], [1], [1], [2], [0, 0, 0, 1, 1, 2], [0], [0]>, precision = #tpu.contract_precision<fp32>} : vector<8x2x4xf32>, vector<8x4x4xf32>, vector<8x2x4xf32> -> vector<8x2x4xf32>
    %cst_20 = arith.constant dense<0.000000e+00> : vector<8x2x4xf32>
    %8 = tpu.matmul %1, %3, %cst_20 {dimension_numbers = #tpu.dot_dimension_numbers<[2], [1], [1], [2], [0, 0, 0, 1, 1, 2], [0], [0]>, precision = #tpu.contract_precision<fp32>} : vector<8x2x4xf32>, vector<8x4x4xf32>, vector<8x2x4xf32> -> vector<8x2x4xf32>
    %9 = arith.subf %7, %8 : vector<8x2x4xf32>
    %cst_21 = arith.constant dense<0.000000e+00> : vector<8x2x4xf32>
    %10 = tpu.matmul %0, %3, %cst_21 {dimension_numbers = #tpu.dot_dimension_numbers<[2], [1], [1], [2], [0, 0, 0, 1, 1, 2], [0], [0]>, precision = #tpu.contract_precision<fp32>} : vector<8x2x4xf32>, vector<8x4x4xf32>, vector<8x2x4xf32> -> vector<8x2x4xf32>
    %cst_22 = arith.constant dense<0.000000e+00> : vector<8x2x4xf32>
    %11 = tpu.matmul %1, %2, %cst_22 {dimension_numbers = #tpu.dot_dimension_numbers<[2], [1], [1], [2], [0, 0, 0, 1, 1, 2], [0], [0]>, precision = #tpu.contract_precision<fp32>} : vector<8x2x4xf32>, vector<8x4x4xf32>, vector<8x2x4xf32> -> vector<8x2x4xf32>
    %12 = arith.addf %10, %11 : vector<8x2x4xf32>
    %cst_23 = arith.constant dense<0.000000e+00> : vector<8x2x4xf32>
    %13 = tpu.matmul %0, %4, %cst_23 {dimension_numbers = #tpu.dot_dimension_numbers<[2], [1], [1], [2], [0, 0, 0, 1, 1, 2], [0], [0]>, precision = #tpu.contract_precision<fp32>} : vector<8x2x4xf32>, vector<8x4x4xf32>, vector<8x2x4xf32> -> vector<8x2x4xf32>
    %cst_24 = arith.constant dense<0.000000e+00> : vector<8x2x4xf32>
    %14 = tpu.matmul %1, %4, %cst_24 {dimension_numbers = #tpu.dot_dimension_numbers<[2], [1], [1], [2], [0, 0, 0, 1, 1, 2], [0], [0]>, precision = #tpu.contract_precision<fp32>} : vector<8x2x4xf32>, vector<8x4x4xf32>, vector<8x2x4xf32> -> vector<8x2x4xf32>
    %cst_25 = arith.constant 0.000000e+00 : f32
    %15 = vector.broadcast %cst_25 : f32 to vector<8x2x4xf32>
    %cst_26 = arith.constant 0.000000e+00 : f32
    %16 = vector.broadcast %cst_26 : f32 to vector<8x2x4xf32>
    %17 = vector.extract_strided_slice %6 {offsets = [0, 0, 0], sizes = [2, 1, 4], strides = [1, 1, 1]} : vector<2x4x4xf32> to vector<2x1x4xf32>
    %18 = vector.shape_cast %17 : vector<2x1x4xf32> to vector<2x4xf32>
    %19 = vector.shape_cast %18 : vector<2x4xf32> to vector<1x2x4xf32>
    %20 = vector.extract_strided_slice %13 {offsets = [0, 0, 0], sizes = [8, 2, 1], strides = [1, 1, 1]} : vector<8x2x4xf32> to vector<8x2x1xf32>
    %21 = vector.broadcast %20 : vector<8x2x1xf32> to vector<8x2x4xf32>
    %22 = vector.broadcast %19 : vector<1x2x4xf32> to vector<8x2x4xf32>
    %23 = arith.mulf %21, %22 : vector<8x2x4xf32>
    %24 = arith.addf %15, %23 : vector<8x2x4xf32>
    %25 = vector.extract_strided_slice %14 {offsets = [0, 0, 0], sizes = [8, 2, 1], strides = [1, 1, 1]} : vector<8x2x4xf32> to vector<8x2x1xf32>
    %26 = vector.broadcast %25 : vector<8x2x1xf32> to vector<8x2x4xf32>
    %27 = vector.broadcast %19 : vector<1x2x4xf32> to vector<8x2x4xf32>
    %28 = arith.mulf %26, %27 : vector<8x2x4xf32>
    %29 = arith.addf %16, %28 : vector<8x2x4xf32>
    %30 = vector.extract_strided_slice %6 {offsets = [0, 1, 0], sizes = [2, 1, 4], strides = [1, 1, 1]} : vector<2x4x4xf32> to vector<2x1x4xf32>
    %31 = vector.shape_cast %30 : vector<2x1x4xf32> to vector<2x4xf32>
    %32 = vector.shape_cast %31 : vector<2x4xf32> to vector<1x2x4xf32>
    %33 = vector.extract_strided_slice %13 {offsets = [0, 0, 1], sizes = [8, 2, 1], strides = [1, 1, 1]} : vector<8x2x4xf32> to vector<8x2x1xf32>
    %34 = vector.broadcast %33 : vector<8x2x1xf32> to vector<8x2x4xf32>
    %35 = vector.broadcast %32 : vector<1x2x4xf32> to vector<8x2x4xf32>
    %36 = arith.mulf %34, %35 : vector<8x2x4xf32>
    %37 = arith.addf %24, %36 : vector<8x2x4xf32>
    %38 = vector.extract_strided_slice %14 {offsets = [0, 0, 1], sizes = [8, 2, 1], strides = [1, 1, 1]} : vector<8x2x4xf32> to vector<8x2x1xf32>
    %39 = vector.broadcast %38 : vector<8x2x1xf32> to vector<8x2x4xf32>
    %40 = vector.broadcast %32 : vector<1x2x4xf32> to vector<8x2x4xf32>
    %41 = arith.mulf %39, %40 : vector<8x2x4xf32>
    %42 = arith.addf %29, %41 : vector<8x2x4xf32>
    %43 = vector.extract_strided_slice %6 {offsets = [0, 2, 0], sizes = [2, 1, 4], strides = [1, 1, 1]} : vector<2x4x4xf32> to vector<2x1x4xf32>
    %44 = vector.shape_cast %43 : vector<2x1x4xf32> to vector<2x4xf32>
    %45 = vector.shape_cast %44 : vector<2x4xf32> to vector<1x2x4xf32>
    %46 = vector.extract_strided_slice %13 {offsets = [0, 0, 2], sizes = [8, 2, 1], strides = [1, 1, 1]} : vector<8x2x4xf32> to vector<8x2x1xf32>
    %47 = vector.broadcast %46 : vector<8x2x1xf32> to vector<8x2x4xf32>
    %48 = vector.broadcast %45 : vector<1x2x4xf32> to vector<8x2x4xf32>
    %49 = arith.mulf %47, %48 : vector<8x2x4xf32>
    %50 = arith.addf %37, %49 : vector<8x2x4xf32>
    %51 = vector.extract_strided_slice %14 {offsets = [0, 0, 2], sizes = [8, 2, 1], strides = [1, 1, 1]} : vector<8x2x4xf32> to vector<8x2x1xf32>
    %52 = vector.broadcast %51 : vector<8x2x1xf32> to vector<8x2x4xf32>
    %53 = vector.broadcast %45 : vector<1x2x4xf32> to vector<8x2x4xf32>
    %54 = arith.mulf %52, %53 : vector<8x2x4xf32>
    %55 = arith.addf %42, %54 : vector<8x2x4xf32>
    %56 = vector.extract_strided_slice %6 {offsets = [0, 3, 0], sizes = [2, 1, 4], strides = [1, 1, 1]} : vector<2x4x4xf32> to vector<2x1x4xf32>
    %57 = vector.shape_cast %56 : vector<2x1x4xf32> to vector<2x4xf32>
    %58 = vector.shape_cast %57 : vector<2x4xf32> to vector<1x2x4xf32>
    %59 = vector.extract_strided_slice %13 {offsets = [0, 0, 3], sizes = [8, 2, 1], strides = [1, 1, 1]} : vector<8x2x4xf32> to vector<8x2x1xf32>
    %60 = vector.broadcast %59 : vector<8x2x1xf32> to vector<8x2x4xf32>
    %61 = vector.broadcast %58 : vector<1x2x4xf32> to vector<8x2x4xf32>
    %62 = arith.mulf %60, %61 : vector<8x2x4xf32>
    %63 = arith.addf %50, %62 : vector<8x2x4xf32>
    %64 = vector.extract_strided_slice %14 {offsets = [0, 0, 3], sizes = [8, 2, 1], strides = [1, 1, 1]} : vector<8x2x4xf32> to vector<8x2x1xf32>
    %65 = vector.broadcast %64 : vector<8x2x1xf32> to vector<8x2x4xf32>
    %66 = vector.broadcast %58 : vector<1x2x4xf32> to vector<8x2x4xf32>
    %67 = arith.mulf %65, %66 : vector<8x2x4xf32>
    %68 = arith.addf %55, %67 : vector<8x2x4xf32>
    %cst_27 = arith.constant dense<0.000000e+00> : vector<8x2x4xf32>
    %69 = tpu.matmul %63, %5, %cst_27 {dimension_numbers = #tpu.dot_dimension_numbers<[2], [1], [1], [2], [0, 0, 0, 1, 1, 2], [0], [0]>, precision = #tpu.contract_precision<fp32>} : vector<8x2x4xf32>, vector<8x4x4xf32>, vector<8x2x4xf32> -> vector<8x2x4xf32>
    %70 = arith.addf %9, %69 : vector<8x2x4xf32>
    %c0_28 = arith.constant 0 : index
    %c0_29 = arith.constant 0 : index
    %c0_30 = arith.constant 0 : index
    %71 = vector.load %arg9[%c0_28, %c0_29, %c0_30] : memref<8x2x4xf32, #tpu.memory_space<vmem>>, vector<8x2x4xf32>
    tpu.vector_store %arg9[%c0_28, %c0_29, %c0_30], %70 {strides = array<i32>} : memref<8x2x4xf32, #tpu.memory_space<vmem>>, vector<8x2x4xf32>,
    %cst_31 = arith.constant dense<0.000000e+00> : vector<8x2x4xf32>
    %72 = tpu.matmul %68, %5, %cst_31 {dimension_numbers = #tpu.dot_dimension_numbers<[2], [1], [1], [2], [0, 0, 0, 1, 1, 2], [0], [0]>, precision = #tpu.contract_precision<fp32>} : vector<8x2x4xf32>, vector<8x4x4xf32>, vector<8x2x4xf32> -> vector<8x2x4xf32>
    %73 = arith.addf %12, %72 : vector<8x2x4xf32>
    %c0_32 = arith.constant 0 : index
    %c0_33 = arith.constant 0 : index
    %c0_34 = arith.constant 0 : index
    %74 = vector.load %arg10[%c0_32, %c0_33, %c0_34] : memref<8x2x4xf32, #tpu.memory_space<vmem>>, vector<8x2x4xf32>
    tpu.vector_store %arg10[%c0_32, %c0_33, %c0_34], %73 {strides = array<i32>} : memref<8x2x4xf32, #tpu.memory_space<vmem>>, vector<8x2x4xf32>,
    return
  }
  func.func @transform_0(%arg0: i32, %arg1: i32) -> (i32, i32, i32) {
    %c0_i32 = arith.constant 0 : i32
    %c0_i32_0 = arith.constant 0 : i32
    %c0_i32_1 = arith.constant 0 : i32
    return %arg1, %c0_i32, %c0_i32_0 : i32, i32, i32
  }
  func.func @transform_1(%arg0: i32, %arg1: i32) -> (i32, i32, i32) {
    %c0_i32 = arith.constant 0 : i32
    %c0_i32_0 = arith.constant 0 : i32
    return %arg0, %arg1, %c0_i32 : i32, i32, i32
  }
  func.func @transform_2(%arg0: i32, %arg1: i32) -> (i32, i32, i32) {
    %c0_i32 = arith.constant 0 : i32
    %c0_i32_0 = arith.constant 0 : i32
    return %arg0, %arg1, %c0_i32 : i32, i32, i32
  }
  func.func @transform_3(%arg0: i32, %arg1: i32) -> (i32, i32, i32) {
    %c0_i32 = arith.constant 0 : i32
    %c0_i32_0 = arith.constant 0 : i32
    %c0_i32_1 = arith.constant 0 : i32
    return %arg0, %c0_i32, %c0_i32_0 : i32, i32, i32
  }
  func.func @transform_4(%arg0: i32, %arg1: i32) -> (i32, i32, i32) {
    %c0_i32 = arith.constant 0 : i32
    %c0_i32_0 = arith.constant 0 : i32
    %c0_i32_1 = arith.constant 0 : i32
    return %arg0, %c0_i32, %c0_i32_0 : i32, i32, i32
  }
  func.func @transform_5(%arg0: i32, %arg1: i32) -> (i32, i32, i32) {
    %c0_i32 = arith.constant 0 : i32
    %c0_i32_0 = arith.constant 0 : i32
    %c0_i32_1 = arith.constant 0 : i32
    return %arg0, %c0_i32, %c0_i32_0 : i32, i32, i32
  }
  func.func @transform_6(%arg0: i32, %arg1: i32) -> (i32, i32, i32) {
    %c0_i32 = arith.constant 0 : i32
    %c0_i32_0 = arith.constant 0 : i32
    %c0_i32_1 = arith.constant 0 : i32
    return %arg0, %c0_i32, %c0_i32_0 : i32, i32, i32
  }
  func.func @transform_7(%arg0: i32, %arg1: i32) -> (i32, i32, i32) {
    %c0_i32 = arith.constant 0 : i32
    %c0_i32_0 = arith.constant 0 : i32
    return %arg0, %arg1, %c0_i32 : i32, i32, i32
  }
  func.func @transform_8(%arg0: i32, %arg1: i32) -> (i32, i32, i32) {
    %c0_i32 = arith.constant 0 : i32
    %c0_i32_0 = arith.constant 0 : i32
    return %arg0, %arg1, %c0_i32 : i32, i32, i32
  }
}

</mosaic_0001>

<bundles_post_ra>
// kernel: custom-call.1
= control target key start
LH: loop header
LB: loop body
LE: loop exit
PB: predicated region body
PF: predicated region fallthrough
CT: control target
= control target key end

     0   :  { %s61_s0 = inlined_call_operand.vmem [shape: c64[4,4,8], index: 0, kind: input, shape index: {}]   ;;  %s62_s1 = inlined_call_operand.vmem [shape: f32[4,4,8], index: 1, kind: output, shape index: {}]  }
   0x1   :  { %v20_v0 = vld [vmem:[%s61_s0 + $0x20] sm:$0xff]  ;;  %v21_v1 = vld [vmem:[%s61_s0 + $0x28] sm:$0xff]  ;;  %v23_v2 = vld [vmem:[%s61_s0 + $0x30] sm:$0xff] }
   0x2   :  { %4 = vst [vmem:[%s62_s1] sm:$0xff] %v20_v0  ;;  %v25_v3 = vld [vmem:[%s61_s0 + $0x38] sm:$0xff] }
   0x3   :  { %22 = vst [vmem:[%s62_s1 + $0x8] sm:$0xff] %v21_v1 }
   0x4   :  { %24 = vst [vmem:[%s62_s1 + $0x10] sm:$0xff] %v23_v2 }
   0x5   :  { %26 = vst [vmem:[%s62_s1 + $0x18] sm:$0xff] %v25_v3 }

// kernel: custom-call
= control target key start
LH: loop header
LB: loop body
LE: loop exit
PB: predicated region body
PF: predicated region fallthrough
CT: control target
= control target key end

     0   :  { %s56_s0 = inlined_call_operand.vmem [shape: c64[4,4,8], index: 0, kind: input, shape index: {}]   ;;  %s57_s1 = inlined_call_operand.vmem [shape: f32[4,4,8], index: 1, kind: output, shape index: {}]  }
   0x1   :  { %v2_v0 = vld [vmem:[%s56_s0] sm:$0xff]  ;;  %v16_v1 = vld [vmem:[%s56_s0 + $0x8] sm:$0xff]  ;;  %v18_v2 = vld [vmem:[%s56_s0 + $0x10] sm:$0xff] }
   0x2   :  { %3 = vst [vmem:[%s57_s1] sm:$0xff] %v2_v0  ;;  %v20_v3 = vld [vmem:[%s56_s0 + $0x18] sm:$0xff] }
   0x3   :  { %17 = vst [vmem:[%s57_s1 + $0x8] sm:$0xff] %v16_v1 }
   0x4   :  { %19 = vst [vmem:[%s57_s1 + $0x10] sm:$0xff] %v18_v2 }
   0x5   :  { %21 = vst [vmem:[%s57_s1 + $0x18] sm:$0xff] %v20_v3 }

// kernel: reverse.1
= control target key start
LH: loop header
LB: loop body
LE: loop exit
PB: predicated region body
PF: predicated region fallthrough
CT: control target
= control target key end

     0   :  { %s92_s0 = inlined_call_operand.vmem [shape: f32[2,4,7], index: 0, kind: input, shape index: {}]   ;;  %s93_s1 = inlined_call_operand.vmem [shape: f32[2,4,7], index: 1, kind: output, shape index: {}]  }
   0x1   :  { %v28_v0 = vld [vmem:[%s92_s0 + $0xc] sm:$0x3]  ;;  %v29_v1 = vld [vmem:[%s92_s0 + $0xa] sm:$0x3]  ;;  %v31_v2 = vld [vmem:[%s92_s0 + $0x8] sm:$0x3] }
   0x2   :  { %4 = vst [vmem:[%s93_s1] sm:$0x3] %v28_v0  ;;  %v33_v3 = vld [vmem:[%s92_s0 + $0x6] sm:$0x3]  ;;  %v35_v4 = vld [vmem:[%s92_s0 + $0x4] sm:$0x3] }
   0x3   :  { %30 = vst [vmem:[%s93_s1 + $0x2] sm:$0x3] %v29_v1  ;;  %v37_v5 = vld [vmem:[%s92_s0 + $0x2] sm:$0x3]  ;;  %v25_v6 = vld [vmem:[%s92_s0] sm:$0x3] }
   0x4   :  { %32 = vst [vmem:[%s93_s1 + $0x4] sm:$0x3] %v31_v2 }
   0x5   :  { %34 = vst [vmem:[%s93_s1 + $0x6] sm:$0x3] %v33_v3 }
   0x6   :  { %36 = vst [vmem:[%s93_s1 + $0x8] sm:$0x3] %v35_v4 }
   0x7   :  { %38 = vst [vmem:[%s93_s1 + $0xa] sm:$0x3] %v37_v5 }
   0x8   :  { %39 = vst [vmem:[%s93_s1 + $0xc] sm:$0x3] %v25_v6 }

// kernel: geps_spectral_conv1d.1
= control target key start
LH: loop header
LB: loop body
LE: loop exit
PB: predicated region body
PF: predicated region fallthrough
CT: control target
= control target key end

     0   :  { %vm82_vm0 = vcmask 1043456   ;;  %vm78_vm1 = vcmask 31744   ;;  %vm7259_vm2 = vcmask 1041409   ;;  %vm8857_vm3 = vcmask 25600   ;;  %s12179_s5 = inlined_call_operand.vmem [shape: f32[8,4,4], index: 5, kind: input, shape index: {}]   ;;  %s12180_s1 = inlined_call_operand.vmem [shape: f32[8,2,4], index: 1, kind: input, shape index: {}]   ;;  %s12181_s6 = inlined_call_operand.vmem [shape: f32[8,4,4], index: 6, kind: input, shape index: {}]   ;;  %s12182_s2 = inlined_call_operand.vmem [shape: f32[8,2,4], index: 2, kind: input, shape index: {}]   ;;  %s12183_s3 = inlined_call_operand.vmem [shape: f32[8,4,4], index: 3, kind: input, shape index: {}]   ;;  %s12184_s4 = inlined_call_operand.vmem [shape: f32[8,4,4], index: 4, kind: input, shape index: {}]   ;;  %s12185_s0 = inlined_call_operand.vmem [shape: f32[2,4,4], index: 0, kind: input, shape index: {}]   ;;  %s12186_s7 = inlined_call_operand.vmem [shape: f32[8,2,4], index: 7, kind: output, shape index: {0}]   ;;  %s12187_s8 = inlined_call_operand.vmem [shape: f32[8,2,4], index: 8, kind: output, shape index: {1}]  }
   0x1   :  { %v44_v0 = vld [vmem:[%s12179_s5] sm:$0xf]  ;;  %v45_v2 = vld [vmem:[%s12179_s5 + $0x4] sm:$0xf]  ;;  %v46_v11 = vld [vmem:[%s12179_s5 + $0x8] sm:$0xf] }
   0x2   :  { %v28_v1 = vld [vmem:[%s12180_s1] sm:$0x3]  ;;  %v84_v3 = vsel %vm82_vm0, %v44_v0, 0  ;;  %v236_v5 = vsel %vm82_vm0, %v45_v2, 0  ;;  %v29_v6 = vld [vmem:[%s12180_s1 + $0x2] sm:$0x3] }
   0x3   :  { %v80_v4 = vsel %vm78_vm1, %v28_v1, 0  ;;  %v10214_v7 = vand.u32 4294901760, %v84_v3  ;;  %v10218_v9 = vand.u32 4294901760, %v236_v5  ;;  %v233_v10 = vsel %vm78_vm1, %v29_v6, 0  ;;  %v47_v14 = vld [vmem:[%s12179_s5 + $0xc] sm:$0xf] }
   0x4   :  { %v10216_v8 = vand.u32 4294901760, %v80_v4  ;;  %v10224_v12 = vand.u32 4294901760, %v233_v10  ;;  %v388_v13 = vsel %vm82_vm0, %v46_v11, 0  ;;  %v540_v20 = vsel %vm82_vm0, %v47_v14, 0  ;;  %v30_v36 = vld [vmem:[%s12180_s1 + $0x4] sm:$0x3] }
   0x5   :  { %v10231_v15 = vsub.f32 %v84_v3, %v10214_v7  ;;  %178 = vmatpush.msra.mxu3 %v10214_v7  ;;  %102 = vmatpush.msra.mxu0 %v10214_v7  ;;  %v10239_v17 = vsub.f32 %v236_v5, %v10218_v9  ;;  %v10241_v18 = vand.u32 4294901760, %v388_v13  ;;  %v10264_v26 = vand.u32 4294901760, %v540_v20  ;;  %v31_v40 = vld [vmem:[%s12180_s1 + $0x6] sm:$0x3]  ;;  %v48_v48 = vld [vmem:[%s12179_s5 + $0x10] sm:$0xf] }
   0x6   :  { %12377 = vst [vmem:[#allocation2_spill] sm:$0xff] %v10216_v8  ;;  %v10234_v16 = vsub.f32 %v80_v4, %v10216_v8  ;;  %v10244_v19 = vsub.f32 %v233_v10, %v10224_v12  ;;  %v385_v38 = vsel %vm78_vm1, %v30_v36, 0  ;;  %v537_v43 = vsel %vm78_vm1, %v31_v40, 0  ;;  %v49_v52 = vld [vmem:[%s12179_s5 + $0x14] sm:$0xf] }
   0x7   :  { %12378 = vst [vmem:[#allocation3_spill] sm:$0xff] %v10224_v12  ;;  %155 = vmatpush.msra.mxu2 %v10231_v15  ;;  %v10252_v22 = vand.u32 4294901760, %v10231_v15  ;;  %v10255_v23 = vand.u32 4294901760, %v10239_v17  ;;  %v10258_v24 = vsub.f32 %v388_v13, %v10241_v18  ;;  %v10279_v31 = vsub.f32 %v540_v20, %v10264_v26  ;;  %v32_v0 = vld [vmem:[%s12180_s1 + $0x8] sm:$0x3] }
   0x8   :  { %12379 = vst [vmem:[#allocation4_spill] sm:$0xff] %v10234_v16  ;;  %v10249_v21 = vand.u32 4294901760, %v10234_v16  ;;  %158 = vmatmul.f32.vlgmr.msra.gmra.mxu2 %v10234_v16  ;;  %v10262_v25 = vand.u32 4294901760, %v10244_v19  ;;  %v10314_v42 = vand.u32 4294901760, %v385_v38  ;;  %v10323_v46 = vand.u32 4294901760, %v537_v43 }
   0x9   :  { %12380 = vst [vmem:[#allocation5_spill] sm:$0xff] %v10244_v19  ;;  %254 = vmatpush.msrb.mxu2 %v10218_v9  ;;  %v130_v28 = vsub.f32 %v10231_v15, %v10252_v22  ;;  %v282_v29 = vsub.f32 %v10239_v17, %v10255_v23  ;;  %204 = vmatpush.msrb.mxu0 %v10252_v22  ;;  %v10288_v35 = vand.u32 4294901760, %v10258_v24  ;;  %v10301_v39 = vand.u32 4294901760, %v10279_v31  ;;  %v33_v4 = vld [vmem:[%s12180_s1 + $0xa] sm:$0x3] }
   0xa   :  { %12381 = vst [vmem:[#allocation6_spill] sm:$0xff] %v10249_v21  ;;  %182 = vmatmul.f32.vlgmr.msra.gmra.mxu3 %v10249_v21  ;;  %v106_v27 = vsub.f32 %v10234_v16, %v10249_v21  ;;  %v258_v30 = vsub.f32 %v10244_v19, %v10262_v25  ;;  %v10327_v47 = vsub.f32 %v385_v38, %v10314_v42  ;;  %v692_v51 = vsel %vm82_vm0, %v48_v48, 0  ;;  %v51_v36 = vld [vmem:[%s12179_s5 + $0x1c] sm:$0xf] }
   0xb   :  { %12382 = vst [vmem:[#allocation7_spill] sm:$0xff] %v10262_v25  ;;  %356 = vmatpush.msra.mxu2 %v10255_v23  ;;  %v10283_v33 = vand.u32 4294901760, %v130_v28  ;;  %v10285_v34 = vand.u32 4294901760, %v282_v29  ;;  %v434_v41 = vsub.f32 %v10258_v24, %v10288_v35  ;;  %v586_v44 = vsub.f32 %v10279_v31, %v10301_v39 }
   0xc   :  { %v10281_v32 = vand.u32 4294901760, %v106_v27  ;;  %v10293_v37 = vand.u32 4294901760, %v258_v30  ;;  %12385 = vst [vmem:[#allocation10_spill] sm:$0xff] %v10314_v42  ;;  %v10339_v50 = vsub.f32 %v537_v43, %v10323_v46  ;;  %v10347_v53 = vand.u32 4294901760, %v10327_v47  ;;  %v50_v27 = vld [vmem:[%s12179_s5 + $0x18] sm:$0xf] }
   0xd   :  { %132 = vmatpush.msra.mxu1 %v10283_v33  ;;  %284 = vmatpush.msrb.mxu3 %v10285_v34  ;;  %v10321_v45 = vand.u32 4294901760, %v434_v41  ;;  %12386 = vst [vmem:[#allocation11_spill] sm:$0xff] %v10323_v46  ;;  %v10334_v49 = vand.u32 4294901760, %v586_v44  ;;  %v10351_v54 = vand.u32 4294901760, %v692_v51  ;;  %v844_v55 = vsel %vm82_vm0, %v49_v52, 0 }
   0xe   :  { %12383 = vst [vmem:[#allocation8_spill] sm:$0xff] %v10281_v32  ;;  %108 = vmatmul.f32.vlgmr.msra.gmra.mxu0 %v10281_v32  ;;  %134 = vmatmul.f32.vlgmr.msra.gmra.mxu1 %v10216_v8  ;;  %v10355_v56 = vand.u32 4294901760, %v10339_v50  ;;  %v410_v57 = vsub.f32 %v10327_v47, %v10347_v53  ;;  %v10362_v58 = vand.u32 4294901760, %v844_v55  ;;  %v689_v2 = vsel %vm78_vm1, %v32_v0, 0  ;;  %v34_v0 = vld [vmem:[%s12180_s1 + $0xc] sm:$0x3] }
   0xf   :  { %12384 = vst [vmem:[#allocation9_spill] sm:$0xff] %v10293_v37  ;;  %226 = vmatpush.msrb.mxu1 %v10214_v7  ;;  %307 = vmatpush.msra.mxu0 %v10239_v17  ;;  %v10366_v59 = vsub.f32 %v692_v51, %v10351_v54  ;;  %v10403_v6 = vand.u32 4294901760, %v689_v2  ;;  %v841_v10 = vsel %vm78_vm1, %v33_v4, 0  ;;  %v996_v30 = vsel %vm82_vm0, %v50_v27, 0 }
  0x10   :  { %260 = vmatmul.f32.vlgmr.msrb.gmra.mxu2 %v10293_v37  ;;  %378 = vmatpush.msra.mxu3 %v10218_v9  ;;  %12387 = vst [vmem:[#allocation12_spill] sm:$0xff] %v10327_v47  ;;  %v562_v60 = vsub.f32 %v10339_v50, %v10355_v56  ;;  %v10372_v61 = vand.u32 4294901760, %v410_v57  ;;  %v10377_v62 = vsub.f32 %v844_v55, %v10362_v58  ;;  %v10411_v14 = vand.u32 4294901760, %v841_v10 }
  0x11   :  { %330 = vmatpush.msra.mxu1 %v10218_v9  ;;  %459 = vmatpush.msrb.mxu2 %v10258_v24  ;;  %12388 = vst [vmem:[#allocation13_spill] sm:$0xff] %v10339_v50  ;;  %v10380_v63 = vand.u32 4294901760, %v10366_v59  ;;  %v10415_v20 = vsub.f32 %v689_v2, %v10403_v6  ;;  %v10439_v40 = vand.u32 4294901760, %v996_v30  ;;  %v1148_v41 = vsel %vm82_vm0, %v51_v36, 0 }
  0x12   :  { %286 = vmatmul.f32.vlgmr.msrb.gmra.mxu3 %v10224_v12  ;;  %12389 = vst [vmem:[#allocation14_spill] sm:$0xff] %v10347_v53  ;;  %v10385_v1 = vand.u32 4294901760, %v562_v60  ;;  %v10392_v3 = vand.u32 4294901760, %v10377_v62  ;;  %v10427_v29 = vsub.f32 %v841_v10, %v10411_v14  ;;  %v10450_v48 = vand.u32 4294901760, %v1148_v41  ;;  %v35_v10 = vld [vmem:[%s12180_s1 + $0xe] sm:$0x3] }
  0x13   :  { %482 = vmatpush.msrb.mxu3 %v10241_v18  ;;  %12390 = vst [vmem:[#allocation15_spill] sm:$0xff] %v10355_v56  ;;  %v738_v5 = vsub.f32 %v10366_v59, %v10380_v63  ;;  %v10435_v38 = vand.u32 4294901760, %v10415_v20  ;;  %v10454_v51 = vsub.f32 %v996_v30, %v10439_v40  ;;  %v993_v4 = vsel %vm78_vm1, %v34_v0, 0  ;;  %v52_v0 = vld [vmem:[%s12181_s6] sm:$0xf] }
  0x14   :  { %12391 = vst [vmem:[#allocation16_spill] sm:$0xff] %v10372_v61  ;;  %v890_v11 = vsub.f32 %v10377_v62, %v10392_v3  ;;  %v10443_v43 = vand.u32 4294901760, %v10427_v29  ;;  %v10465_v57 = vsub.f32 %v1148_v41, %v10450_v48  ;;  %v10491_v27 = vand.u32 4294901760, %v993_v4 }
  0x15   :  { %12392 = vst [vmem:[#allocation17_spill] sm:$0xff] %v10377_v62  ;;  %v10409_v13 = vand.u32 4294901760, %v738_v5  ;;  %v714_v44 = vsub.f32 %v10415_v20, %v10435_v38  ;;  %v10468_v60 = vand.u32 4294901760, %v10454_v51  ;;  %v1145_v30 = vsel %vm78_vm1, %v35_v10, 0 }
  0x16   :  { %206 = vmatmul.f32.vlgmr.msrb.gmra.mxu0 %v10216_v8  ;;  %228 = vmatmul.f32.vlgmr.msrb.gmra.mxu1 %v10216_v8  ;;  %12393 = vst [vmem:[#allocation18_spill] sm:$0xff] %v10380_v63  ;;  %v10422_v28 = vand.u32 4294901760, %v890_v11  ;;  %v866_v52 = vsub.f32 %v10427_v29, %v10443_v43  ;;  %v10480_v5 = vand.u32 4294901760, %v10465_v57 }
  0x17   :  { %406 = vmatpush.msrb.mxu0 %v10241_v18  ;;  %436 = vmatpush.msrb.mxu1 %v10321_v45  ;;  %12394 = vst [vmem:[#allocation19_spill] sm:$0xff] %v10385_v1  ;;  %v10460_v55 = vand.u32 4294901760, %v714_v44  ;;  %v1042_v11 = vsub.f32 %v10454_v51, %v10468_v60  ;;  %v10499_v44 = vand.u32 4294901760, %v1145_v30 }
  0x18   :  { %358 = vmatmul.f32.vlgmr.msra.gmra.mxu2 %v10224_v12  ;;  %12395 = vst [vmem:[#allocation20_spill] sm:$0xff] %v10392_v3  ;;  %v10473_v2 = vand.u32 4294901760, %v866_v52  ;;  %v1194_v36 = vsub.f32 %v10465_v57, %v10480_v5  ;;  %v10503_v52 = vsub.f32 %v993_v4, %v10491_v27  ;;  %v1300_v4 = vsel %vm82_vm0, %v52_v0, 0 }
  0x19   :  { %558 = vmatpush.msra.mxu2 %v10264_v26  ;;  %12396 = vst [vmem:[#allocation21_spill] sm:$0xff] %v10403_v6  ;;  %v10497_v41 = vand.u32 4294901760, %v1042_v11  ;;  %v10515_v11 = vsub.f32 %v1145_v30, %v10499_v44 }
  0x1a   :  { %380 = vmatmul.f32.vlgmr.msra.gmra.mxu3 %v10224_v12  ;;  %12397 = vst [vmem:[#allocation22_spill] sm:$0xff] %v10411_v14  ;;  %v10510_v10 = vand.u32 4294901760, %v1194_v36  ;;  %v10527_v36 = vand.u32 4294901760, %v1300_v4 }
  0x1b   :  { %588 = vmatpush.msra.mxu3 %v10334_v49  ;;  %12398 = vst [vmem:[#allocation23_spill] sm:$0xff] %v10415_v20 }
  0x1c   :  { %12399 = vst [vmem:[#allocation24_spill] sm:$0xff] %v10427_v29 }
  0x1d   :  { %12400 = vst [vmem:[#allocation25_spill] sm:$0xff] %v10435_v38 }
  0x1e   :  { %310 = vmatmul.f32.vlgmr.msra.gmra.mxu0 %v10244_v19  ;;  %334 = vmatmul.f32.vlgmr.msra.gmra.mxu1 %v10262_v25  ;;  %12401 = vst [vmem:[#allocation26_spill] sm:$0xff] %v10439_v40  ;;  %v39_v19 = vld [vmem:[%s12182_s2 + $0x6] sm:$0x3] }
  0x1f   :  { %508 = vmatpush.msra.mxu0 %v10288_v35  ;;  %530 = vmatpush.msra.mxu1 %v10241_v18  ;;  %12402 = vst [vmem:[#allocation27_spill] sm:$0xff] %v10443_v43 }
  0x20   :  { %462 = vmatmul.f32.vlgmr.msrb.gmra.mxu2 %v10327_v47  ;;  %12403 = vst [vmem:[#allocation28_spill] sm:$0xff] %v10450_v48 }
  0x21   :  { %660 = vmatpush.msrb.mxu2 %v10301_v39  ;;  %12404 = vst [vmem:[#allocation29_spill] sm:$0xff] %v10454_v51 }
  0x22   :  { %486 = vmatmul.f32.vlgmr.msrb.gmra.mxu3 %v10347_v53  ;;  %12405 = vst [vmem:[#allocation30_spill] sm:$0xff] %v10460_v55 }
  0x23   :  { %682 = vmatpush.msrb.mxu3 %v10264_v26  ;;  %12406 = vst [vmem:[#allocation31_spill] sm:$0xff] %v10465_v57 }
  0x24   :  { %12407 = vst [vmem:[#allocation32_spill] sm:$0xff] %v10468_v60 }
  0x25   :  { %12408 = vst [vmem:[#allocation33_spill] sm:$0xff] %v10473_v2 }
  0x26   :  { %412 = vmatmul.f32.vlgmr.msrb.gmra.mxu0 %v10372_v61  ;;  %438 = vmatmul.f32.vlgmr.msrb.gmra.mxu1 %v10314_v42  ;;  %12409 = vst [vmem:[#allocation34_spill] sm:$0xff] %v10480_v5 }
  0x27   :  { %611 = vmatpush.msrb.mxu0 %v10279_v31  ;;  %634 = vmatpush.msrb.mxu1 %v10264_v26  ;;  %12410 = vst [vmem:[#allocation35_spill] sm:$0xff] %v10491_v27 }
  0x28   :  { %564 = vmatmul.f32.vlgmr.msra.gmra.mxu2 %v10385_v1  ;;  %12411 = vst [vmem:[#allocation36_spill] sm:$0xff] %v10497_v41  ;;  %v54_v1 = vld [vmem:[%s12181_s6 + $0x8] sm:$0xf] }
  0x29   :  { %763 = vmatpush.msra.mxu2 %v10366_v59  ;;  %12412 = vst [vmem:[#allocation37_spill] sm:$0xff] %v10499_v44 }
  0x2a   :  { %590 = vmatmul.f32.vlgmr.msra.gmra.mxu3 %v10323_v46  ;;  %12413 = vst [vmem:[#allocation38_spill] sm:$0xff] %v10503_v52 }
  0x2b   :  { %786 = vmatpush.msra.mxu3 %v10351_v54  ;;  %12414 = vst [vmem:[#allocation39_spill] sm:$0xff] %v10510_v10 }
  0x2c   :  { %12415 = vst [vmem:[#allocation40_spill] sm:$0xff] %v10515_v11 }
  0x2d   :  { %12417 = vst [vmem:[#allocation42_spill] sm:$0xff] %v10527_v36 }
  0x2e   :  { %510 = vmatmul.f32.vlgmr.msra.gmra.mxu0 %v10314_v42  ;;  %532 = vmatmul.f32.vlgmr.msra.gmra.mxu1 %v10314_v42  ;;  %v55_v42 = vld [vmem:[%s12181_s6 + $0xc] sm:$0xf] }
  0x2f   :  { %710 = vmatpush.msra.mxu0 %v10351_v54  ;;  %740 = vmatpush.msra.mxu1 %v10409_v13 }
  0x30   :  { %662 = vmatmul.f32.vlgmr.msrb.gmra.mxu2 %v10323_v46 }
  0x31   :  { %862 = vmatpush.msrb.mxu2 %v10362_v58 }
  0x32   :  { %684 = vmatmul.f32.vlgmr.msrb.gmra.mxu3 %v10323_v46 }
  0x33   :  { %892 = vmatpush.msrb.mxu3 %v10422_v28 }
  0x36   :  { %614 = vmatmul.f32.vlgmr.msrb.gmra.mxu0 %v10339_v50  ;;  %638 = vmatmul.f32.vlgmr.msrb.gmra.mxu1 %v10355_v56 }
  0x37   :  { %812 = vmatpush.msrb.mxu0 %v10380_v63  ;;  %834 = vmatpush.msrb.mxu1 %v10351_v54 }
  0x38   :  { %766 = vmatmul.f32.vlgmr.msra.gmra.mxu2 %v10415_v20 }
  0x39   :  { %964 = vmatpush.msra.mxu2 %v10392_v3 }
  0x3a   :  { %790 = vmatmul.f32.vlgmr.msra.gmra.mxu3 %v10435_v38  ;;  %v10542_v38 = vsub.f32 %v1300_v4, %v10527_v36  ;;  %v36_v4 = vld [vmem:[%s12182_s2] sm:$0x3] }
  0x3b   :  { %986 = vmatpush.msra.mxu3 %v10362_v58 }
  0x3c   :  { %12420 = vst [vmem:[#allocation45_spill] sm:$0xff] %v10542_v38  ;;  %v10556_v20 = vand.u32 4294901760, %v10542_v38 }
  0x3e   :  { %716 = vmatmul.f32.vlgmr.msra.gmra.mxu0 %v10460_v55  ;;  %742 = vmatmul.f32.vlgmr.msra.gmra.mxu1 %v10403_v6  ;;  %v10531_v55 = vand.u32 4294901760, %v10515_v11  ;;  %12423 = vst [vmem:[#allocation48_spill] sm:$0xff] %v10556_v20 }
  0x3f   :  { %915 = vmatpush.msra.mxu0 %v10377_v62  ;;  %938 = vmatpush.msra.mxu1 %v10362_v58 }
  0x40   :  { %868 = vmatmul.f32.vlgmr.msrb.gmra.mxu2 %v10473_v2  ;;  %v53_v2 = vld [vmem:[%s12181_s6 + $0x4] sm:$0xf]  ;;  %12418 = vst [vmem:[#allocation43_spill] sm:$0xff] %v10531_v55 }
  0x41   :  { %1067 = vmatpush.msrb.mxu2 %v10454_v51  ;;  %v1452_v30 = vsel %vm82_vm0, %v53_v2, 0  ;;  %v1170_v2 = vsub.f32 %v10515_v11, %v10531_v55 }
  0x42   :  { %894 = vmatmul.f32.vlgmr.msrb.gmra.mxu3 %v10411_v14 }
  0x43   :  { %1090 = vmatpush.msrb.mxu3 %v10439_v40 }
  0x46   :  { %814 = vmatmul.f32.vlgmr.msrb.gmra.mxu0 %v10403_v6  ;;  %836 = vmatmul.f32.vlgmr.msrb.gmra.mxu1 %v10403_v6  ;;  %v10523_v6 = vand.u32 4294901760, %v10503_v52 }
  0x47   :  { %1014 = vmatpush.msrb.mxu0 %v10439_v40  ;;  %1044 = vmatpush.msrb.mxu1 %v10497_v41 }
  0x48   :  { %966 = vmatmul.f32.vlgmr.msra.gmra.mxu2 %v10411_v14  ;;  %12416 = vst [vmem:[#allocation41_spill] sm:$0xff] %v10523_v6  ;;  %v1018_v0 = vsub.f32 %v10503_v52, %v10523_v6 }
  0x49   :  { %1166 = vmatpush.msra.mxu2 %v10450_v48 }
  0x4a   :  { %988 = vmatmul.f32.vlgmr.msra.gmra.mxu3 %v10411_v14  ;;  %v10538_v14 = vand.u32 4294901760, %v1452_v30 }
  0x4b   :  { %1196 = vmatpush.msra.mxu3 %v10510_v10 }
  0x4c   :  { %12419 = vst [vmem:[#allocation44_spill] sm:$0xff] %v10538_v14 }
  0x4e   :  { %918 = vmatmul.f32.vlgmr.msra.gmra.mxu0 %v10427_v29  ;;  %942 = vmatmul.f32.vlgmr.msra.gmra.mxu1 %v10443_v43  ;;  %v10548_v29 = vand.u32 4294901760, %v1018_v0  ;;  %v10553_v43 = vsub.f32 %v1452_v30, %v10538_v14  ;;  %v1297_v0 = vsel %vm78_vm1, %v36_v4, 0 }
  0x4f   :  { %1116 = vmatpush.msra.mxu0 %v10468_v60  ;;  %1138 = vmatpush.msra.mxu1 %v10439_v40 }
  0x50   :  { %1070 = vmatmul.f32.vlgmr.msrb.gmra.mxu2 %v10503_v52  ;;  %12421 = vst [vmem:[#allocation46_spill] sm:$0xff] %v10548_v29  ;;  %v10561_v52 = vand.u32 4294901760, %v1170_v2  ;;  %v10568_v30 = vand.u32 4294901760, %v10553_v43  ;;  %v1346_v2 = vsub.f32 %v10542_v38, %v10556_v20 }
  0x51   :  { %1268 = vmatpush.msrb.mxu2 %v10480_v5  ;;  %12422 = vst [vmem:[#allocation47_spill] sm:$0xff] %v10553_v43 }
  0x52   :  { %1094 = vmatmul.f32.vlgmr.msrb.gmra.mxu3 %v10523_v6  ;;  %12424 = vst [vmem:[#allocation49_spill] sm:$0xff] %v10561_v52  ;;  %v37_v6 = vld [vmem:[%s12182_s2 + $0x2] sm:$0x3]  ;;  %v1498_v56 = vsub.f32 %v10553_v43, %v10568_v30  ;;  %v10585_v50 = vand.u32 4294901760, %v1346_v2 }
  0x53   :  { %1290 = vmatpush.msrb.mxu3 %v10450_v48  ;;  %12425 = vst [vmem:[#allocation50_spill] sm:$0xff] %v10568_v30  ;;  %v1449_v4 = vsel %vm78_vm1, %v37_v6, 0 }
  0x54   :  { %12427 = vst [vmem:[#allocation52_spill] sm:$0xff] %v10585_v50  ;;  %v10587_v46 = vand.u32 4294901760, %v1449_v4  ;;  %v10598_v6 = vand.u32 4294901760, %v1498_v56 }
  0x56   :  { %1020 = vmatmul.f32.vlgmr.msrb.gmra.mxu0 %v10548_v29  ;;  %1046 = vmatmul.f32.vlgmr.msrb.gmra.mxu1 %v10491_v27  ;;  %v10579_v29 = vand.u32 4294901760, %v1297_v0  ;;  %12428 = vst [vmem:[#allocation53_spill] sm:$0xff] %v10587_v46  ;;  %v10603_v2 = vsub.f32 %v1449_v4, %v10587_v46  ;;  %v1756_v4 = vsel %vm82_vm0, %v55_v42, 0 }
  0x57   :  { %1219 = vmatpush.msrb.mxu0 %v10465_v57  ;;  %1242 = vmatpush.msrb.mxu1 %v10450_v48  ;;  %12430 = vst [vmem:[#allocation55_spill] sm:$0xff] %v10598_v6 }
  0x58   :  { %1172 = vmatmul.f32.vlgmr.msra.gmra.mxu2 %v10561_v52  ;;  %12426 = vst [vmem:[#allocation51_spill] sm:$0xff] %v10579_v29  ;;  %v10591_v52 = vsub.f32 %v1297_v0, %v10579_v29  ;;  %v1604_v0 = vsel %vm82_vm0, %v54_v1, 0  ;;  %v10619_v61 = vand.u32 4294901760, %v10603_v2 }
  0x59   :  { %1371 = vmatpush.msra.mxu2 %v10542_v38  ;;  %12431 = vst [vmem:[#allocation56_spill] sm:$0xff] %v10603_v2  ;;  %v10615_v56 = vand.u32 4294901760, %v1604_v0 }
  0x5a   :  { %1198 = vmatmul.f32.vlgmr.msra.gmra.mxu3 %v10499_v44  ;;  %12429 = vst [vmem:[#allocation54_spill] sm:$0xff] %v10591_v52  ;;  %v1474_v42 = vsub.f32 %v10603_v2, %v10619_v61 }
  0x5b   :  { %1394 = vmatpush.msra.mxu3 %v10527_v36  ;;  %12433 = vst [vmem:[#allocation58_spill] sm:$0xff] %v10615_v56  ;;  %v10630_v53 = vsub.f32 %v1604_v0, %v10615_v56  ;;  %v38_v0 = vld [vmem:[%s12182_s2 + $0x4] sm:$0x3] }
  0x5c   :  { %12434 = vst [vmem:[#allocation59_spill] sm:$0xff] %v10619_v61  ;;  %v10649_v25 = vand.u32 4294901760, %v1474_v42 }
  0x5d   :  { %12436 = vst [vmem:[#allocation61_spill] sm:$0xff] %v10630_v53  ;;  %v10644_v47 = vand.u32 4294901760, %v10630_v53 }
  0x5e   :  { %1118 = vmatmul.f32.vlgmr.msra.gmra.mxu0 %v10491_v27  ;;  %1140 = vmatmul.f32.vlgmr.msra.gmra.mxu1 %v10491_v27  ;;  %v10611_v27 = vand.u32 4294901760, %v10591_v52  ;;  %12440 = vst [vmem:[#allocation65_spill] sm:$0xff] %v10649_v25 }
  0x5f   :  { %1318 = vmatpush.msra.mxu0 %v10527_v36  ;;  %1348 = vmatpush.msra.mxu1 %v10585_v50  ;;  %12439 = vst [vmem:[#allocation64_spill] sm:$0xff] %v10644_v47  ;;  %v1650_v42 = vsub.f32 %v10630_v53, %v10644_v47 }
  0x60   :  { %1270 = vmatmul.f32.vlgmr.msrb.gmra.mxu2 %v10499_v44  ;;  %12432 = vst [vmem:[#allocation57_spill] sm:$0xff] %v10611_v27  ;;  %v1322_v1 = vsub.f32 %v10591_v52, %v10611_v27 }
  0x61   :  { %1470 = vmatpush.msrb.mxu2 %v10538_v14 }
  0x62   :  { %1292 = vmatmul.f32.vlgmr.msrb.gmra.mxu3 %v10499_v44  ;;  %v10626_v44 = vand.u32 4294901760, %v1756_v4 }
  0x63   :  { %1500 = vmatpush.msrb.mxu3 %v10598_v6 }
  0x64   :  { %12435 = vst [vmem:[#allocation60_spill] sm:$0xff] %v10626_v44 }
  0x66   :  { %1222 = vmatmul.f32.vlgmr.msrb.gmra.mxu0 %v10515_v11  ;;  %1246 = vmatmul.f32.vlgmr.msrb.gmra.mxu1 %v10531_v55  ;;  %v10636_v11 = vand.u32 4294901760, %v1322_v1  ;;  %v10641_v55 = vsub.f32 %v1756_v4, %v10626_v44  ;;  %v1601_v1 = vsel %vm78_vm1, %v38_v0, 0  ;;  %v1753_v0 = vsel %vm78_vm1, %v39_v19, 0 }
  0x67   :  { %1420 = vmatpush.msrb.mxu0 %v10556_v20  ;;  %1442 = vmatpush.msrb.mxu1 %v10527_v36  ;;  %v10667_v12 = vand.u32 4294901760, %v1601_v1  ;;  %v10675_v8 = vand.u32 4294901760, %v1753_v0 }
  0x68   :  { %1374 = vmatmul.f32.vlgmr.msra.gmra.mxu2 %v10591_v52  ;;  %12437 = vst [vmem:[#allocation62_spill] sm:$0xff] %v10636_v11  ;;  %v10656_v4 = vand.u32 4294901760, %v10641_v55 }
  0x69   :  { %1572 = vmatpush.msra.mxu2 %v10568_v30  ;;  %12438 = vst [vmem:[#allocation63_spill] sm:$0xff] %v10641_v55  ;;  %v10679_v32 = vsub.f32 %v1601_v1, %v10667_v12  ;;  %v57_v30 = vld [vmem:[%s12181_s6 + $0x14] sm:$0xf] }
  0x6a   :  { %1398 = vmatmul.f32.vlgmr.msra.gmra.mxu3 %v10611_v27  ;;  %12441 = vst [vmem:[#allocation66_spill] sm:$0xff] %v10656_v4  ;;  %v1802_v37 = vsub.f32 %v10641_v55, %v10656_v4 }
  0x6b   :  { %1594 = vmatpush.msra.mxu3 %v10538_v14  ;;  %12442 = vst [vmem:[#allocation67_spill] sm:$0xff] %v10667_v12  ;;  %v10699_v21 = vand.u32 4294901760, %v10679_v32 }
  0x6c   :  { %12444 = vst [vmem:[#allocation69_spill] sm:$0xff] %v10675_v8  ;;  %v10686_v19 = vand.u32 4294901760, %v1802_v37 }
  0x6d   :  { %12445 = vst [vmem:[#allocation70_spill] sm:$0xff] %v10679_v32 }
  0x6e   :  { %1324 = vmatmul.f32.vlgmr.msra.gmra.mxu0 %v10636_v11  ;;  %1350 = vmatmul.f32.vlgmr.msra.gmra.mxu1 %v10579_v29  ;;  %12446 = vst [vmem:[#allocation71_spill] sm:$0xff] %v10686_v19 }
  0x6f   :  { %1523 = vmatpush.msra.mxu0 %v10553_v43  ;;  %1546 = vmatpush.msra.mxu1 %v10538_v14  ;;  %v10673_v43 = vand.u32 4294901760, %v1650_v42  ;;  %v10691_v42 = vsub.f32 %v1753_v0, %v10675_v8  ;;  %12448 = vst [vmem:[#allocation73_spill] sm:$0xff] %v10699_v21  ;;  %v2060_v0 = vsel %vm82_vm0, %v57_v30, 0 }
  0x70   :  { %1476 = vmatmul.f32.vlgmr.msrb.gmra.mxu2 %v10649_v25  ;;  %v10714_v16 = vand.u32 4294901760, %v2060_v0 }
  0x71   :  { %1675 = vmatpush.msrb.mxu2 %v10630_v53  ;;  %12443 = vst [vmem:[#allocation68_spill] sm:$0xff] %v10673_v43  ;;  %v56_v53 = vld [vmem:[%s12181_s6 + $0x10] sm:$0xf] }
  0x72   :  { %1502 = vmatmul.f32.vlgmr.msrb.gmra.mxu3 %v10587_v46  ;;  %12447 = vst [vmem:[#allocation72_spill] sm:$0xff] %v10691_v42  ;;  %v1908_v1 = vsel %vm82_vm0, %v56_v53, 0  ;;  %v1626_v53 = vsub.f32 %v10679_v32, %v10699_v21 }
  0x73   :  { %1698 = vmatpush.msrb.mxu3 %v10615_v56  ;;  %v10703_v37 = vand.u32 4294901760, %v1908_v1  ;;  %12451 = vst [vmem:[#allocation76_spill] sm:$0xff] %v10714_v16 }
  0x74   :  { %v10724_v20 = vand.u32 4294901760, %v1626_v53 }
  0x75   :  { %12449 = vst [vmem:[#allocation74_spill] sm:$0xff] %v10703_v37 }
  0x76   :  { %1422 = vmatmul.f32.vlgmr.msrb.gmra.mxu0 %v10579_v29  ;;  %1444 = vmatmul.f32.vlgmr.msrb.gmra.mxu1 %v10579_v29  ;;  %12453 = vst [vmem:[#allocation78_spill] sm:$0xff] %v10724_v20 }
  0x77   :  { %1622 = vmatpush.msrb.mxu0 %v10615_v56  ;;  %1652 = vmatpush.msrb.mxu1 %v10673_v43  ;;  %v10707_v43 = vand.u32 4294901760, %v10691_v42 }
  0x78   :  { %1574 = vmatmul.f32.vlgmr.msra.gmra.mxu2 %v10587_v46 }
  0x79   :  { %1774 = vmatpush.msra.mxu2 %v10626_v44  ;;  %12450 = vst [vmem:[#allocation75_spill] sm:$0xff] %v10707_v43  ;;  %v1778_v30 = vsub.f32 %v10691_v42, %v10707_v43 }
  0x7a   :  { %1596 = vmatmul.f32.vlgmr.msra.gmra.mxu3 %v10587_v46 }
  0x7b   :  { %1804 = vmatpush.msra.mxu3 %v10686_v19  ;;  %v10718_v19 = vsub.f32 %v1908_v1, %v10703_v37  ;;  %v40_v1 = vld [vmem:[%s12182_s2 + $0x8] sm:$0x3]  ;;  %v10737_v6 = vand.u32 4294901760, %v1778_v30 }
  0x7c   :  { %v1905_v53 = vsel %vm78_vm1, %v40_v1, 0 }
  0x7d   :  { %12452 = vst [vmem:[#allocation77_spill] sm:$0xff] %v10718_v19 }
  0x7e   :  { %1526 = vmatmul.f32.vlgmr.msra.gmra.mxu0 %v10603_v2  ;;  %1550 = vmatmul.f32.vlgmr.msra.gmra.mxu1 %v10619_v61  ;;  %12456 = vst [vmem:[#allocation81_spill] sm:$0xff] %v10737_v6 }
  0x7f   :  { %1724 = vmatpush.msra.mxu0 %v10644_v47  ;;  %1746 = vmatpush.msra.mxu1 %v10615_v56  ;;  %v10729_v47 = vsub.f32 %v2060_v0, %v10714_v16  ;;  %v10732_v56 = vand.u32 4294901760, %v10718_v19 }
  0x80   :  { %1678 = vmatmul.f32.vlgmr.msrb.gmra.mxu2 %v10679_v32 }
  0x81   :  { %1876 = vmatpush.msrb.mxu2 %v10656_v4  ;;  %12454 = vst [vmem:[#allocation79_spill] sm:$0xff] %v10729_v47  ;;  %v10744_v0 = vand.u32 4294901760, %v10729_v47  ;;  %v41_v4 = vld [vmem:[%s12182_s2 + $0xa] sm:$0x3]  ;;  %v1954_v30 = vsub.f32 %v10718_v19, %v10732_v56 }
  0x82   :  { %1702 = vmatmul.f32.vlgmr.msrb.gmra.mxu3 %v10699_v21  ;;  %12455 = vst [vmem:[#allocation80_spill] sm:$0xff] %v10732_v56  ;;  %v2057_v1 = vsel %vm78_vm1, %v41_v4, 0  ;;  %v58_v4 = vld [vmem:[%s12181_s6 + $0x18] sm:$0xf] }
  0x83   :  { %1898 = vmatpush.msrb.mxu3 %v10626_v44  ;;  %12457 = vst [vmem:[#allocation82_spill] sm:$0xff] %v10744_v0  ;;  %v2106_v50 = vsub.f32 %v10729_v47, %v10744_v0  ;;  %v10761_v38 = vand.u32 4294901760, %v1954_v30  ;;  %v10763_v60 = vand.u32 4294901760, %v2057_v1 }
  0x85   :  { %12459 = vst [vmem:[#allocation84_spill] sm:$0xff] %v10761_v38  ;;  %v10774_v30 = vand.u32 4294901760, %v2106_v50 }
  0x86   :  { %1628 = vmatmul.f32.vlgmr.msrb.gmra.mxu0 %v10724_v20  ;;  %1654 = vmatmul.f32.vlgmr.msrb.gmra.mxu1 %v10667_v12  ;;  %12460 = vst [vmem:[#allocation85_spill] sm:$0xff] %v10763_v60 }
  0x87   :  { %1827 = vmatpush.msrb.mxu0 %v10641_v55  ;;  %1850 = vmatpush.msrb.mxu1 %v10626_v44  ;;  %v10755_v55 = vand.u32 4294901760, %v1905_v53  ;;  %12462 = vst [vmem:[#allocation87_spill] sm:$0xff] %v10774_v30 }
  0x88   :  { %1780 = vmatmul.f32.vlgmr.msra.gmra.mxu2 %v10737_v6 }
  0x89   :  { %1979 = vmatpush.msra.mxu2 %v10718_v19  ;;  %12458 = vst [vmem:[#allocation83_spill] sm:$0xff] %v10755_v55  ;;  %v10767_v19 = vsub.f32 %v1905_v53, %v10755_v55  ;;  %v2212_v53 = vsel %vm82_vm0, %v58_v4, 0 }
  0x8a   :  { %1806 = vmatmul.f32.vlgmr.msra.gmra.mxu3 %v10675_v8 }
  0x8b   :  { %v109_v14 = vpop.f32.mrf.mxu0  ;;  %2002 = vmatpush.msra.mxu3 %v10703_v37  ;;  %v135_v44 = vpop.f32.mrf.mxu1  ;;  %12461 = vst [vmem:[#allocation86_spill] sm:$0xff] %v10767_v19  ;;  %v10789_v50 = vand.u32 4294901760, %v10767_v19 }
  0x8c   :  { %v159_v36 = vpop.f32.mrf.mxu2  ;;  %v136_v57 = vadd.f32 %v135_v44, %v109_v14  ;;  %v10781_v44 = vsub.f32 %v2057_v1, %v10763_v60  ;;  %v10797_v1 = vand.u32 4294901760, %v2212_v53 }
  0x8d   :  { %v183_v5 = vpop.f32.mrf.mxu3  ;;  %12464 = vst [vmem:[#allocation89_spill] sm:$0xff] %v10789_v50  ;;  %v1930_v40 = vsub.f32 %v10767_v19, %v10789_v50 }
  0x8e   :  { %1726 = vmatmul.f32.vlgmr.msra.gmra.mxu0 %v10667_v12  ;;  %v160_v10 = vadd.f32 %v159_v36, %v136_v57  ;;  %1748 = vmatmul.f32.vlgmr.msra.gmra.mxu1 %v10667_v12  ;;  %12463 = vst [vmem:[#allocation88_spill] sm:$0xff] %v10781_v44  ;;  %v59_v57 = vld [vmem:[%s12181_s6 + $0x1c] sm:$0xf]  ;;  %v10801_v48 = vand.u32 4294901760, %v10781_v44 }
  0x8f   :  { %1926 = vmatpush.msra.mxu0 %v10703_v37  ;;  %1956 = vmatpush.msra.mxu1 %v10761_v38  ;;  %12465 = vst [vmem:[#allocation90_spill] sm:$0xff] %v10797_v1  ;;  %v2364_v4 = vsel %vm82_vm0, %v59_v57, 0  ;;  %v10812_v57 = vsub.f32 %v2212_v53, %v10797_v1 }
  0x90   :  { %v10777_v14 = vadd.f32 %v183_v5, %v160_v10  ;;  %1878 = vmatmul.f32.vlgmr.msrb.gmra.mxu2 %v10675_v8  ;;  %12466 = vst [vmem:[#allocation91_spill] sm:$0xff] %v10801_v48 }
  0x91   :  { %2078 = vmatpush.msrb.mxu2 %v10714_v16  ;;  %12467 = vst [vmem:[#allocation92_spill] sm:$0xff] %v10812_v57  ;;  %v10826_v3 = vand.u32 4294901760, %v10812_v57 }
  0x92   :  { %1900 = vmatmul.f32.vlgmr.msrb.gmra.mxu3 %v10675_v8 }
  0x93   :  { %v10792_v5 = vpop.f32.mrf.mxu0  ;;  %2108 = vmatpush.msrb.mxu3 %v10774_v30  ;;  %v10795_v10 = vpop.f32.mrf.mxu1  ;;  %v10808_v30 = vand.u32 4294901760, %v2364_v4  ;;  %12469 = vst [vmem:[#allocation94_spill] sm:$0xff] %v10826_v3 }
  0x94   :  { %v261_v36 = vpop.f32.mrf.mxu2 }
  0x95   :  { %v287_v38 = vpop.f32.mrf.mxu3 }
  0x96   :  { %v288_v41 = vadd.f32 %v287_v38, %v261_v36  ;;  %1830 = vmatmul.f32.vlgmr.msrb.gmra.mxu0 %v10691_v42  ;;  %1854 = vmatmul.f32.vlgmr.msrb.gmra.mxu1 %v10707_v43  ;;  %v2082_v38 = vsub.f32 %v10781_v44, %v10801_v48  ;;  %v10818_v36 = vand.u32 4294901760, %v1930_v40 }
  0x97   :  { %2028 = vmatpush.msrb.mxu0 %v10732_v56  ;;  %2050 = vmatpush.msrb.mxu1 %v10703_v37  ;;  %v10823_v56 = vsub.f32 %v2364_v4, %v10808_v30  ;;  %v43_v4 = vld [vmem:[%s12182_s2 + $0xe] sm:$0x3] }
  0x98   :  { %1982 = vmatmul.f32.vlgmr.msra.gmra.mxu2 %v10767_v19  ;;  %12468 = vst [vmem:[#allocation93_spill] sm:$0xff] %v10818_v36  ;;  %v10831_v19 = vand.u32 4294901760, %v2082_v38 }
  0x99   :  { %2180 = vmatpush.msra.mxu2 %v10744_v0 }
  0x9a   :  { %2006 = vmatmul.f32.vlgmr.msra.gmra.mxu3 %v10789_v50  ;;  %v42_v50 = vld [vmem:[%s12182_s2 + $0xc] sm:$0x3]  ;;  %12470 = vst [vmem:[#allocation95_spill] sm:$0xff] %v10831_v19 }
  0x9b   :  { %v311_v51 = vpop.f32.mrf.mxu0  ;;  %2202 = vmatpush.msra.mxu3 %v10714_v16  ;;  %v335_v53 = vpop.f32.mrf.mxu1 }
  0x9c   :  { %v312_v37 = vadd.f32 %v311_v51, %v288_v41  ;;  %v359_v62 = vpop.f32.mrf.mxu2  ;;  %v2209_v51 = vsel %vm78_vm1, %v42_v50, 0  ;;  %v10838_v41 = vand.u32 4294901760, %v10823_v56 }
  0x9d   :  { %v381_v40 = vpop.f32.mrf.mxu3  ;;  %v10851_v50 = vand.u32 4294901760, %v2209_v51 }
  0x9e   :  { %v336_v0 = vadd.f32 %v335_v53, %v312_v37  ;;  %1932 = vmatmul.f32.vlgmr.msra.gmra.mxu0 %v10818_v36  ;;  %1958 = vmatmul.f32.vlgmr.msra.gmra.mxu1 %v10755_v55  ;;  %12471 = vst [vmem:[#allocation96_spill] sm:$0xff] %v10838_v41  ;;  %v2258_v37 = vsub.f32 %v10812_v57, %v10826_v3  ;;  %v2361_v53 = vsel %vm78_vm1, %v43_v4, 0 }
  0x9f   :  { %2131 = vmatpush.msra.mxu0 %v10729_v47  ;;  %2154 = vmatpush.msra.mxu1 %v10714_v16  ;;  %12473 = vst [vmem:[#allocation98_spill] sm:$0xff] %v10851_v50 }
  0xa0   :  { %v360_v63 = vadd.f32 %v359_v62, %v336_v0  ;;  %2084 = vmatmul.f32.vlgmr.msrb.gmra.mxu2 %v10831_v19  ;;  %v2410_v62 = vsub.f32 %v10823_v56, %v10838_v41  ;;  %v10857_v36 = vand.u32 4294901760, %v2258_v37 }
  0xa1   :  { %2283 = vmatpush.msrb.mxu2 %v10812_v57  ;;  %v10863_v57 = vsub.f32 %v2209_v51, %v10851_v50 }
  0xa2   :  { %v10847_v38 = vadd.f32 %v381_v40, %v360_v63  ;;  %2110 = vmatmul.f32.vlgmr.msrb.gmra.mxu3 %v10763_v60  ;;  %12474 = vst [vmem:[#allocation99_spill] sm:$0xff] %v10857_v36  ;;  %v10867_v19 = vand.u32 4294901760, %v2410_v62 }
  0xa3   :  { %v413_v47 = vpop.f32.mrf.mxu0  ;;  %2306 = vmatpush.msrb.mxu3 %v10797_v1  ;;  %v439_v0 = vpop.f32.mrf.mxu1  ;;  %12476 = vst [vmem:[#allocation101_spill] sm:$0xff] %v10863_v57  ;;  %v10878_v51 = vand.u32 4294901760, %v10863_v57 }
  0xa4   :  { %12472 = vst [vmem:[#allocation97_spill] sm:$0xff] %v10847_v38  ;;  %v463_v16 = vpop.f32.mrf.mxu2  ;;  %v440_v63 = vadd.f32 %v439_v0, %v413_v47  ;;  %v10859_v38 = vand.u32 4294901760, %v2361_v53 }
  0xa5   :  { %v487_v40 = vpop.f32.mrf.mxu3  ;;  %12477 = vst [vmem:[#allocation102_spill] sm:$0xff] %v10867_v19 }
  0xa6   :  { %12475 = vst [vmem:[#allocation100_spill] sm:$0xff] %v10859_v38  ;;  %2030 = vmatmul.f32.vlgmr.msrb.gmra.mxu0 %v10755_v55  ;;  %v464_v4 = vadd.f32 %v463_v16, %v440_v63  ;;  %2052 = vmatmul.f32.vlgmr.msrb.gmra.mxu1 %v10755_v55  ;;  %v10874_v47 = vsub.f32 %v2361_v53, %v10859_v38 }
  0xa7   :  { %2230 = vmatpush.msrb.mxu0 %v10797_v1  ;;  %2260 = vmatpush.msrb.mxu1 %v10857_v36  ;;  %12479 = vst [vmem:[#allocation104_spill] sm:$0xff] %v10878_v51 }
  0xa8   :  { %v10870_v37 = vadd.f32 %v487_v40, %v464_v4  ;;  %2182 = vmatmul.f32.vlgmr.msra.gmra.mxu2 %v10763_v60  ;;  %12478 = vst [vmem:[#allocation103_spill] sm:$0xff] %v10874_v47  ;;  %v10887_v40 = vand.u32 4294901760, %v10874_v47  ;;  %v2234_v4 = vsub.f32 %v10863_v57, %v10878_v51 }
  0xa9   :  { %2382 = vmatpush.msra.mxu2 %v10808_v30 }
  0xaa   :  { %2204 = vmatmul.f32.vlgmr.msra.gmra.mxu3 %v10763_v60  ;;  %12481 = vst [vmem:[#allocation106_spill] sm:$0xff] %v10887_v40  ;;  %v10899_v36 = vand.u32 4294901760, %v2234_v4 }
  0xab   :  { %v10881_v16 = vpop.f32.mrf.mxu0  ;;  %2412 = vmatpush.msra.mxu3 %v10867_v19  ;;  %v10884_v62 = vpop.f32.mrf.mxu1  ;;  %v2386_v19 = vsub.f32 %v10874_v47, %v10887_v40 }
  0xac   :  { %12480 = vst [vmem:[#allocation105_spill] sm:$0xff] %v10884_v62  ;;  %v565_v0 = vpop.f32.mrf.mxu2 }
  0xad   :  { %v591_v63 = vpop.f32.mrf.mxu3  ;;  %12482 = vst [vmem:[#allocation107_spill] sm:$0xff] %v10899_v36  ;;  %v10903_v62 = vand.u32 4294901760, %v2386_v19 }
  0xae   :  { %v592_v53 = vadd.f32 %v591_v63, %v565_v0  ;;  %2134 = vmatmul.f32.vlgmr.msra.gmra.mxu0 %v10781_v44  ;;  %2158 = vmatmul.f32.vlgmr.msra.gmra.mxu1 %v10801_v48 }
  0xaf   :  { %2332 = vmatpush.msra.mxu0 %v10826_v3  ;;  %2354 = vmatpush.msra.mxu1 %v10797_v1  ;;  %12483 = vst [vmem:[#allocation108_spill] sm:$0xff] %v10903_v62 }
  0xb0   :  { %2286 = vmatmul.f32.vlgmr.msrb.gmra.mxu2 %v10863_v57 }
  0xb1   :  { %2484 = vmatpush.msrb.mxu2 %v10838_v41 }
  0xb2   :  { %2310 = vmatmul.f32.vlgmr.msrb.gmra.mxu3 %v10878_v51 }
  0xb3   :  { %v615_v0 = vpop.f32.mrf.mxu0  ;;  %2506 = vmatpush.msrb.mxu3 %v10808_v30  ;;  %v639_v48 = vpop.f32.mrf.mxu1 }
  0xb4   :  { %v616_v63 = vadd.f32 %v615_v0, %v592_v53  ;;  %v663_v44 = vpop.f32.mrf.mxu2 }
  0xb5   :  { %v685_v3 = vpop.f32.mrf.mxu3 }
  0xb6   :  { %v640_v1 = vadd.f32 %v639_v48, %v616_v63  ;;  %2236 = vmatmul.f32.vlgmr.msrb.gmra.mxu0 %v10899_v36  ;;  %2262 = vmatmul.f32.vlgmr.msrb.gmra.mxu1 %v10851_v50 }
  0xb7   :  { %2435 = vmatpush.msrb.mxu0 %v10823_v56  ;;  %2458 = vmatpush.msrb.mxu1 %v10808_v30 }
  0xb8   :  { %v664_v4 = vadd.f32 %v663_v44, %v640_v1  ;;  %2388 = vmatmul.f32.vlgmr.msra.gmra.mxu2 %v10903_v62 }
  0xb9   :  { %2589 = vmatpush.msra.mxu2 %v10231_v15 }
  0xba   :  { %v10910_v41 = vadd.f32 %v685_v3, %v664_v4  ;;  %2414 = vmatmul.f32.vlgmr.msra.gmra.mxu3 %v10859_v38 }
  0xbb   :  { %v717_v19 = vpop.f32.mrf.mxu0  ;;  %2612 = vmatpush.msra.mxu3 %v10214_v7  ;;  %v743_v48 = vpop.f32.mrf.mxu1 }
  0xbc   :  { %12484 = vst [vmem:[#allocation109_spill] sm:$0xff] %v10910_v41  ;;  %v767_v53 = vpop.f32.mrf.mxu2  ;;  %v744_v0 = vadd.f32 %v743_v48, %v717_v19 }
  0xbd   :  { %v791_v63 = vpop.f32.mrf.mxu3 }
  0xbe   :  { %2334 = vmatmul.f32.vlgmr.msra.gmra.mxu0 %v10851_v50  ;;  %v768_v44 = vadd.f32 %v767_v53, %v744_v0  ;;  %2356 = vmatmul.f32.vlgmr.msra.gmra.mxu1 %v10851_v50 }
  0xbf   :  { %2536 = vmatpush.msra.mxu0 %v10214_v7  ;;  %2566 = vmatpush.msra.mxu1 %v10283_v33 }
  0xc0   :  { %v10919_v3 = vadd.f32 %v791_v63, %v768_v44  ;;  %2486 = vmatmul.f32.vlgmr.msrb.gmra.mxu2 %v10859_v38 }
  0xc1   :  { %2682 = vmatpush.msrb.mxu2 %v10218_v9 }
  0xc2   :  { %2508 = vmatmul.f32.vlgmr.msrb.gmra.mxu3 %v10859_v38 }
  0xc3   :  { %v10924_v15 = vpop.f32.mrf.mxu0  ;;  %2712 = vmatpush.msrb.mxu3 %v10285_v34  ;;  %v10927_v1 = vpop.f32.mrf.mxu1 }
  0xc4   :  { %v869_v4 = vpop.f32.mrf.mxu2 }
  0xc5   :  { %v895_v19 = vpop.f32.mrf.mxu3 }
  0xc6   :  { %v896_v48 = vadd.f32 %v895_v19, %v869_v4  ;;  %2438 = vmatmul.f32.vlgmr.msrb.gmra.mxu0 %v10874_v47  ;;  %2462 = vmatmul.f32.vlgmr.msrb.gmra.mxu1 %v10887_v40 }
  0xc7   :  { %2638 = vmatpush.msrb.mxu0 %v10252_v22  ;;  %2660 = vmatpush.msrb.mxu1 %v10214_v7 }
  0xc8   :  { %2592 = vmatmul.f32.vlgmr.msra.gmra.mxu2 %v10591_v52 }
  0xc9   :  { %2784 = vmatpush.msra.mxu2 %v10255_v23 }
  0xca   :  { %2616 = vmatmul.f32.vlgmr.msra.gmra.mxu3 %v10611_v27 }
  0xcb   :  { %v919_v33 = vpop.f32.mrf.mxu0  ;;  %2806 = vmatpush.msra.mxu3 %v10218_v9  ;;  %v943_v53 = vpop.f32.mrf.mxu1 }
  0xcc   :  { %v920_v34 = vadd.f32 %v919_v33, %v896_v48  ;;  %v967_v0 = vpop.f32.mrf.mxu2 }
  0xcd   :  { %v989_v63 = vpop.f32.mrf.mxu3 }
  0xce   :  { %v944_v44 = vadd.f32 %v943_v53, %v920_v34  ;;  %2542 = vmatmul.f32.vlgmr.msra.gmra.mxu0 %v10636_v11  ;;  %2568 = vmatmul.f32.vlgmr.msra.gmra.mxu1 %v10579_v29 }
  0xcf   :  { %2735 = vmatpush.msra.mxu0 %v10239_v17  ;;  %2758 = vmatpush.msra.mxu1 %v10218_v9 }
  0xd0   :  { %v968_v7 = vadd.f32 %v967_v0, %v944_v44  ;;  %2688 = vmatmul.f32.vlgmr.msrb.gmra.mxu2 %v10649_v25 }
  0xd1   :  { %2881 = vmatpush.msrb.mxu2 %v10258_v24 }
  0xd2   :  { %v10942_v22 = vadd.f32 %v989_v63, %v968_v7  ;;  %2714 = vmatmul.f32.vlgmr.msrb.gmra.mxu3 %v10587_v46 }
  0xd3   :  { %v1021_v23 = vpop.f32.mrf.mxu0  ;;  %2904 = vmatpush.msrb.mxu3 %v10241_v18  ;;  %v1047_v4 = vpop.f32.mrf.mxu1 }
  0xd4   :  { %12485 = vst [vmem:[#allocation110_spill] sm:$0xff] %v10942_v22  ;;  %v1071_v19 = vpop.f32.mrf.mxu2  ;;  %v1048_v48 = vadd.f32 %v1047_v4, %v1021_v23 }
  0xd5   :  { %v1095_v33 = vpop.f32.mrf.mxu3 }
  0xd6   :  { %2640 = vmatmul.f32.vlgmr.msrb.gmra.mxu0 %v10579_v29  ;;  %v1072_v17 = vadd.f32 %v1071_v19, %v1048_v48  ;;  %2662 = vmatmul.f32.vlgmr.msrb.gmra.mxu1 %v10579_v29 }
  0xd7   :  { %2828 = vmatpush.msrb.mxu0 %v10241_v18  ;;  %2858 = vmatpush.msrb.mxu1 %v10321_v45 }
  0xd8   :  { %v10951_v9 = vadd.f32 %v1095_v33, %v1072_v17  ;;  %2786 = vmatmul.f32.vlgmr.msra.gmra.mxu2 %v10587_v46 }
  0xd9   :  { %2974 = vmatpush.msra.mxu2 %v10264_v26 }
  0xda   :  { %2808 = vmatmul.f32.vlgmr.msra.gmra.mxu3 %v10587_v46 }
  0xdb   :  { %v10956_v24 = vpop.f32.mrf.mxu0  ;;  %3004 = vmatpush.msra.mxu3 %v10334_v49  ;;  %v10959_v34 = vpop.f32.mrf.mxu1 }
  0xdc   :  { %v1173_v53 = vpop.f32.mrf.mxu2 }
  0xdd   :  { %v1199_v0 = vpop.f32.mrf.mxu3 }
  0xde   :  { %v1200_v63 = vadd.f32 %v1199_v0, %v1173_v53  ;;  %2738 = vmatmul.f32.vlgmr.msra.gmra.mxu0 %v10603_v2  ;;  %2762 = vmatmul.f32.vlgmr.msra.gmra.mxu1 %v10619_v61  ;;  %v12579_v61 = vld [vmem:[#allocation40_spill] sm:$0xff]  ;;  %v12580_v2 = vld [vmem:[#allocation43_spill] sm:$0xff] }
  0xdf   :  { %2930 = vmatpush.msra.mxu0 %v10288_v35  ;;  %2952 = vmatpush.msra.mxu1 %v10241_v18 }
  0xe0   :  { %2884 = vmatmul.f32.vlgmr.msrb.gmra.mxu2 %v10679_v32 }
  0xe1   :  { %3076 = vmatpush.msrb.mxu2 %v10301_v39 }
  0xe2   :  { %2908 = vmatmul.f32.vlgmr.msrb.gmra.mxu3 %v10699_v21 }
  0xe3   :  { %v1223_v45 = vpop.f32.mrf.mxu0  ;;  %3098 = vmatpush.msrb.mxu3 %v10264_v26  ;;  %v1247_v44 = vpop.f32.mrf.mxu1 }
  0xe4   :  { %v1224_v49 = vadd.f32 %v1223_v45, %v1200_v63  ;;  %v1271_v7 = vpop.f32.mrf.mxu2 }
  0xe5   :  { %v1293_v23 = vpop.f32.mrf.mxu3 }
  0xe6   :  { %v1248_v4 = vadd.f32 %v1247_v44, %v1224_v49  ;;  %2834 = vmatmul.f32.vlgmr.msrb.gmra.mxu0 %v10724_v20  ;;  %2860 = vmatmul.f32.vlgmr.msrb.gmra.mxu1 %v10667_v12 }
  0xe7   :  { %3027 = vmatpush.msrb.mxu0 %v10279_v31  ;;  %3050 = vmatpush.msrb.mxu1 %v10264_v26 }
  0xe8   :  { %v1272_v18 = vadd.f32 %v1271_v7, %v1248_v4  ;;  %2980 = vmatmul.f32.vlgmr.msra.gmra.mxu2 %v10737_v6 }
  0xe9   :  { %3173 = vmatpush.msra.mxu2 %v10366_v59  ;;  %v208_v59 = vadd.f32 %v10792_v5, %v10777_v14  ;;  %v12489_v14 = vld [vmem:[#allocation18_spill] sm:$0xff] }
  0xea   :  { %v10974_v35 = vadd.f32 %v1293_v23, %v1272_v18  ;;  %3006 = vmatmul.f32.vlgmr.msra.gmra.mxu3 %v10675_v8  ;;  %v12491_v23 = vld [vmem:[#allocation89_spill] sm:$0xff] }
  0xeb   :  { %v1325_v39 = vpop.f32.mrf.mxu0  ;;  %3196 = vmatpush.msra.mxu3 %v10351_v54  ;;  %v1351_v19 = vpop.f32.mrf.mxu1  ;;  %v10990_v44 = vadd.f32 %v10795_v10, %v208_v59  ;;  %v12492_v10 = vld [vmem:[#allocation20_spill] sm:$0xff] }
  0xec   :  { %12486 = vst [vmem:[#allocation111_spill] sm:$0xff] %v10974_v35  ;;  %v1375_v48 = vpop.f32.mrf.mxu2  ;;  %v1352_v33 = vadd.f32 %v1351_v19, %v1325_v39  ;;  %v12557_v35 = vld [vmem:[#allocation25_spill] sm:$0xff] }
  0xed   :  { %v1399_v17 = vpop.f32.mrf.mxu3  ;;  %12487 = vst [vmem:[#allocation112_spill] sm:$0xff] %v10990_v44 }
  0xee   :  { %2932 = vmatmul.f32.vlgmr.msra.gmra.mxu0 %v10667_v12  ;;  %v1376_v31 = vadd.f32 %v1375_v48, %v1352_v33  ;;  %2954 = vmatmul.f32.vlgmr.msra.gmra.mxu1 %v10667_v12 }
  0xef   :  { %3120 = vmatpush.msra.mxu0 %v10351_v54  ;;  %3150 = vmatpush.msra.mxu1 %v10409_v13 }
  0xf0   :  { %v1400_v26 = vadd.f32 %v1399_v17, %v1376_v31  ;;  %3078 = vmatmul.f32.vlgmr.msrb.gmra.mxu2 %v10675_v8  ;;  %v12493_v17 = vld [vmem:[#allocation93_spill] sm:$0xff] }
  0xf1   :  { %3266 = vmatpush.msrb.mxu2 %v10362_v58  ;;  %v12494_v31 = vld [vmem:[#allocation17_spill] sm:$0xff] }
  0xf2   :  { %3100 = vmatmul.f32.vlgmr.msrb.gmra.mxu3 %v10675_v8  ;;  %v12576_v8 = vld [vmem:[#allocation35_spill] sm:$0xff] }
  0xf3   :  { %v1423_v53 = vpop.f32.mrf.mxu0  ;;  %3296 = vmatpush.msrb.mxu3 %v10422_v28  ;;  %v1445_v63 = vpop.f32.mrf.mxu1  ;;  %v12490_v28 = vld [vmem:[#allocation86_spill] sm:$0xff] }
  0xf4   :  { %v1424_v0 = vadd.f32 %v1423_v53, %v1400_v26  ;;  %v1477_v45 = vpop.f32.mrf.mxu2  ;;  %v12495_v26 = vld [vmem:[#allocation95_spill] sm:$0xff]  ;;  %v12497_v53 = vld [vmem:[#allocation29_spill] sm:$0xff] }
  0xf5   :  { %v1503_v49 = vpop.f32.mrf.mxu3 }
  0xf6   :  { %v10992_v13 = vadd.f32 %v1445_v63, %v1424_v0  ;;  %v1504_v7 = vadd.f32 %v1503_v49, %v1477_v45  ;;  %3030 = vmatmul.f32.vlgmr.msrb.gmra.mxu0 %v10691_v42  ;;  %3054 = vmatmul.f32.vlgmr.msrb.gmra.mxu1 %v10707_v43  ;;  %v12498_v63 = vld [vmem:[#allocation26_spill] sm:$0xff] }
  0xf7   :  { %3222 = vmatpush.msrb.mxu0 %v12489_v14  ;;  %3244 = vmatpush.msrb.mxu1 %v10351_v54  ;;  %v12575_v42 = vld [vmem:[#allocation46_spill] sm:$0xff] }
  0xf8   :  { %12488 = vst [vmem:[#allocation113_spill] sm:$0xff] %v10992_v13  ;;  %3176 = vmatmul.f32.vlgmr.msra.gmra.mxu2 %v12490_v28  ;;  %v12558_v13 = vld [vmem:[#allocation82_spill] sm:$0xff] }
  0xf9   :  { %3368 = vmatpush.msra.mxu2 %v12492_v10 }
  0xfa   :  { %3200 = vmatmul.f32.vlgmr.msra.gmra.mxu3 %v12491_v23 }
  0xfb   :  { %v1527_v4 = vpop.f32.mrf.mxu0  ;;  %3390 = vmatpush.msra.mxu3 %v10362_v58  ;;  %v1551_v39 = vpop.f32.mrf.mxu1 }
  0xfc   :  { %v1528_v18 = vadd.f32 %v1527_v4, %v1504_v7  ;;  %v1575_v19 = vpop.f32.mrf.mxu2 }
  0xfd   :  { %v1597_v48 = vpop.f32.mrf.mxu3 }
  0xfe   :  { %v1552_v33 = vadd.f32 %v1551_v39, %v1528_v18  ;;  %3126 = vmatmul.f32.vlgmr.msra.gmra.mxu0 %v12493_v17  ;;  %3152 = vmatmul.f32.vlgmr.msra.gmra.mxu1 %v10755_v55  ;;  %v12500_v18 = vld [vmem:[#allocation36_spill] sm:$0xff]  ;;  %v12572_v17 = vld [vmem:[#allocation41_spill] sm:$0xff] }
  0xff   :  { %3319 = vmatpush.msra.mxu0 %v12494_v31  ;;  %3342 = vmatpush.msra.mxu1 %v10362_v58  ;;  %v12502_v31 = vld [vmem:[#allocation39_spill] sm:$0xff] }
 0x100   :  { %v1576_v54 = vadd.f32 %v1575_v19, %v1552_v33  ;;  %3272 = vmatmul.f32.vlgmr.msrb.gmra.mxu2 %v12495_v26  ;;  %v512_v19 = vadd.f32 %v10881_v16, %v10870_v37  ;;  %v12507_v37 = vld [vmem:[#allocation91_spill] sm:$0xff]  ;;  %v12508_v16 = vld [vmem:[#allocation32_spill] sm:$0xff] }
 0x101   :  { %3465 = vmatpush.msrb.mxu2 %v12497_v53 }
 0x102   :  { %v11009_v59 = vadd.f32 %v1597_v48, %v1576_v54  ;;  %3298 = vmatmul.f32.vlgmr.msrb.gmra.mxu3 %v10763_v60  ;;  %v12501_v48 = vld [vmem:[#allocation28_spill] sm:$0xff] }
 0x103   :  { %v1629_v0 = vpop.f32.mrf.mxu0  ;;  %3488 = vmatpush.msrb.mxu3 %v12498_v63  ;;  %v1655_v7 = vpop.f32.mrf.mxu1 }
 0x104   :  { %12496 = vst [vmem:[#allocation18_spill] sm:$0xff] %v11009_v59  ;;  %v1679_v14 = vpop.f32.mrf.mxu2  ;;  %v1656_v10 = vadd.f32 %v1655_v7, %v1629_v0  ;;  %v12549_v59 = vld [vmem:[#allocation74_spill] sm:$0xff] }
 0x105   :  { %v1703_v4 = vpop.f32.mrf.mxu3 }
 0x106   :  { %3224 = vmatmul.f32.vlgmr.msrb.gmra.mxu0 %v10755_v55  ;;  %v1680_v58 = vadd.f32 %v1679_v14, %v1656_v10  ;;  %3246 = vmatmul.f32.vlgmr.msrb.gmra.mxu1 %v10755_v55  ;;  %v12503_v14 = vld [vmem:[#allocation105_spill] sm:$0xff]  ;;  %v12571_v55 = vld [vmem:[#allocation38_spill] sm:$0xff] }
 0x107   :  { %3412 = vmatpush.msrb.mxu0 %v12498_v63  ;;  %3442 = vmatpush.msrb.mxu1 %v12500_v18  ;;  %v11027_v10 = vadd.f32 %v12503_v14, %v512_v19  ;;  %v12506_v18 = vld [vmem:[#allocation88_spill] sm:$0xff] }
 0x108   :  { %v1704_v39 = vadd.f32 %v1703_v4, %v1680_v58  ;;  %3370 = vmatmul.f32.vlgmr.msra.gmra.mxu2 %v10763_v60 }
 0x109   :  { %3558 = vmatpush.msra.mxu2 %v12501_v48  ;;  %12504 = vst [vmem:[#allocation20_spill] sm:$0xff] %v11027_v10  ;;  %v12543_v10 = vld [vmem:[#allocation10_spill] sm:$0xff] }
 0x10a   :  { %3392 = vmatmul.f32.vlgmr.msra.gmra.mxu3 %v10763_v60  ;;  %v12570_v60 = vld [vmem:[#allocation94_spill] sm:$0xff] }
 0x10b   :  { %v1727_v33 = vpop.f32.mrf.mxu0  ;;  %3588 = vmatpush.msra.mxu3 %v12502_v31  ;;  %v1749_v53 = vpop.f32.mrf.mxu1 }
 0x10c   :  { %v1728_v54 = vadd.f32 %v1727_v33, %v1704_v39  ;;  %v1781_v0 = vpop.f32.mrf.mxu2  ;;  %v12509_v39 = vld [vmem:[#allocation34_spill] sm:$0xff] }
 0x10d   :  { %v1807_v7 = vpop.f32.mrf.mxu3 }
 0x10e   :  { %v11029_v4 = vadd.f32 %v1749_v53, %v1728_v54  ;;  %v1808_v58 = vadd.f32 %v1807_v7, %v1781_v0  ;;  %3322 = vmatmul.f32.vlgmr.msra.gmra.mxu0 %v12506_v18  ;;  %3346 = vmatmul.f32.vlgmr.msra.gmra.mxu1 %v12507_v37  ;;  %v12510_v7 = vld [vmem:[#allocation31_spill] sm:$0xff] }
 0x10f   :  { %3514 = vmatpush.msra.mxu0 %v12508_v16  ;;  %3536 = vmatpush.msra.mxu1 %v12498_v63  ;;  %v12569_v18 = vld [vmem:[#allocation27_spill] sm:$0xff] }
 0x110   :  { %12505 = vst [vmem:[#allocation17_spill] sm:$0xff] %v11029_v4  ;;  %3468 = vmatmul.f32.vlgmr.msrb.gmra.mxu2 %v10863_v57  ;;  %v12544_v4 = vld [vmem:[#allocation63_spill] sm:$0xff] }
 0x111   :  { %3660 = vmatpush.msrb.mxu2 %v12509_v39  ;;  %v12513_v39 = vld [vmem:[#allocation42_spill] sm:$0xff] }
 0x112   :  { %3492 = vmatmul.f32.vlgmr.msrb.gmra.mxu3 %v10878_v51  ;;  %v12565_v51 = vld [vmem:[#allocation90_spill] sm:$0xff] }
 0x113   :  { %v1831_v19 = vpop.f32.mrf.mxu0  ;;  %3682 = vmatpush.msrb.mxu3 %v12501_v48  ;;  %v1855_v31 = vpop.f32.mrf.mxu1 }
 0x114   :  { %v1832_v33 = vadd.f32 %v1831_v19, %v1808_v58  ;;  %v1879_v54 = vpop.f32.mrf.mxu2  ;;  %v12512_v58 = vld [vmem:[#allocation45_spill] sm:$0xff] }
 0x115   :  { %v1901_v53 = vpop.f32.mrf.mxu3 }
 0x116   :  { %v1856_v0 = vadd.f32 %v1855_v31, %v1832_v33  ;;  %3418 = vmatmul.f32.vlgmr.msrb.gmra.mxu0 %v10899_v36  ;;  %3444 = vmatmul.f32.vlgmr.msrb.gmra.mxu1 %v10851_v50  ;;  %v12563_v36 = vld [vmem:[#allocation22_spill] sm:$0xff] }
 0x117   :  { %3611 = vmatpush.msrb.mxu0 %v12510_v7  ;;  %3634 = vmatpush.msrb.mxu1 %v12501_v48 }
 0x118   :  { %v1880_v63 = vadd.f32 %v1879_v54, %v1856_v0  ;;  %3564 = vmatmul.f32.vlgmr.msra.gmra.mxu2 %v10903_v62  ;;  %v12560_v62 = vld [vmem:[#allocation21_spill] sm:$0xff] }
 0x119   :  { %3757 = vmatpush.msra.mxu2 %v12512_v58  ;;  %v12515_v58 = vld [vmem:[#allocation44_spill] sm:$0xff] }
 0x11a   :  { %v11046_v14 = vadd.f32 %v1901_v53, %v1880_v63  ;;  %3590 = vmatmul.f32.vlgmr.msra.gmra.mxu3 %v10859_v38  ;;  %v12514_v53 = vld [vmem:[#allocation52_spill] sm:$0xff]  ;;  %v816_v63 = vadd.f32 %v10924_v15, %v10919_v3  ;;  %v12525_v15 = vld [vmem:[#allocation47_spill] sm:$0xff] }
 0x11b   :  { %v1933_v16 = vpop.f32.mrf.mxu0  ;;  %3780 = vmatpush.msra.mxu3 %v12513_v39  ;;  %v1959_v33 = vpop.f32.mrf.mxu1  ;;  %v12519_v3 = vld [vmem:[#allocation48_spill] sm:$0xff] }
 0x11c   :  { %12511 = vst [vmem:[#allocation29_spill] sm:$0xff] %v11046_v14  ;;  %v1983_v31 = vpop.f32.mrf.mxu2  ;;  %v1960_v7 = vadd.f32 %v1959_v33, %v1933_v16  ;;  %v12516_v33 = vld [vmem:[#allocation55_spill] sm:$0xff]  ;;  %v11064_v5 = vadd.f32 %v10927_v1, %v816_v63  ;;  %v12522_v1 = vld [vmem:[#allocation50_spill] sm:$0xff] }
 0x11d   :  { %v2007_v54 = vpop.f32.mrf.mxu3  ;;  %v12530_v14 = vld [vmem:[#allocation58_spill] sm:$0xff] }
 0x11e   :  { %3516 = vmatmul.f32.vlgmr.msra.gmra.mxu0 %v10851_v50  ;;  %v1984_v48 = vadd.f32 %v1983_v31, %v1960_v7  ;;  %3538 = vmatmul.f32.vlgmr.msra.gmra.mxu1 %v10851_v50  ;;  %12517 = vst [vmem:[#allocation26_spill] sm:$0xff] %v11064_v5  ;;  %v12528_v5 = vld [vmem:[#allocation3_spill] sm:$0xff]  ;;  %v12562_v50 = vld [vmem:[#allocation33_spill] sm:$0xff] }
 0x11f   :  { %3704 = vmatpush.msra.mxu0 %v12513_v39  ;;  %3734 = vmatpush.msra.mxu1 %v12514_v53  ;;  %v12520_v53 = vld [vmem:[#allocation4_spill] sm:$0xff] }
 0x120   :  { %v2008_v0 = vadd.f32 %v2007_v54, %v1984_v48  ;;  %3662 = vmatmul.f32.vlgmr.msrb.gmra.mxu2 %v10859_v38 }
 0x121   :  { %3850 = vmatpush.msrb.mxu2 %v12515_v58 }
 0x122   :  { %3684 = vmatmul.f32.vlgmr.msrb.gmra.mxu3 %v10859_v38  ;;  %v12559_v38 = vld [vmem:[#allocation30_spill] sm:$0xff] }
 0x123   :  { %v2031_v16 = vpop.f32.mrf.mxu0  ;;  %3880 = vmatpush.msrb.mxu3 %v12516_v33  ;;  %v2053_v7 = vpop.f32.mrf.mxu1 }
 0x124   :  { %v2032_v31 = vadd.f32 %v2031_v16, %v2008_v0  ;;  %v2085_v19 = vpop.f32.mrf.mxu2  ;;  %v12521_v0 = vld [vmem:[#allocation6_spill] sm:$0xff] }
 0x125   :  { %v2111_v49 = vpop.f32.mrf.mxu3 }
 0x126   :  { %v11066_v54 = vadd.f32 %v2053_v7, %v2032_v31  ;;  %v2112_v48 = vadd.f32 %v2111_v49, %v2085_v19  ;;  %3614 = vmatmul.f32.vlgmr.msrb.gmra.mxu0 %v10874_v47  ;;  %3638 = vmatmul.f32.vlgmr.msrb.gmra.mxu1 %v10887_v40  ;;  %v12523_v7 = vld [vmem:[#allocation8_spill] sm:$0xff] }
 0x127   :  { %3806 = vmatpush.msrb.mxu0 %v12519_v3  ;;  %3828 = vmatpush.msrb.mxu1 %v12513_v39  ;;  %v12524_v3 = vld [vmem:[#allocation2_spill] sm:$0xff] }
 0x128   :  { %12518 = vst [vmem:[#allocation36_spill] sm:$0xff] %v11066_v54  ;;  %3760 = vmatmul.f32.vlgmr.msra.gmra.mxu2 %v12520_v53  ;;  %v12526_v54 = vld [vmem:[#allocation9_spill] sm:$0xff] }
 0x129   :  { %3952 = vmatpush.msra.mxu2 %v12522_v1 }
 0x12a   :  { %3784 = vmatmul.f32.vlgmr.msra.gmra.mxu3 %v12521_v0 }
 0x12b   :  { %v2135_v63 = vpop.f32.mrf.mxu0  ;;  %3974 = vmatpush.msra.mxu3 %v12515_v58  ;;  %v2159_v19 = vpop.f32.mrf.mxu1 }
 0x12c   :  { %v2136_v49 = vadd.f32 %v2135_v63, %v2112_v48  ;;  %v2183_v16 = vpop.f32.mrf.mxu2  ;;  %v12529_v48 = vld [vmem:[#allocation61_spill] sm:$0xff] }
 0x12d   :  { %v2205_v33 = vpop.f32.mrf.mxu3 }
 0x12e   :  { %v2160_v31 = vadd.f32 %v2159_v19, %v2136_v49  ;;  %3710 = vmatmul.f32.vlgmr.msra.gmra.mxu0 %v12523_v7  ;;  %3736 = vmatmul.f32.vlgmr.msra.gmra.mxu1 %v12524_v3 }
 0x12f   :  { %3903 = vmatpush.msra.mxu0 %v12525_v15  ;;  %3926 = vmatpush.msra.mxu1 %v12515_v58 }
 0x130   :  { %v2184_v39 = vadd.f32 %v2183_v16, %v2160_v31  ;;  %3856 = vmatmul.f32.vlgmr.msrb.gmra.mxu2 %v12526_v54 }
 0x131   :  { %4049 = vmatpush.msrb.mxu2 %v12529_v48  ;;  %v12532_v48 = vld [vmem:[#allocation60_spill] sm:$0xff] }
 0x132   :  { %v11083_v1 = vadd.f32 %v2205_v33, %v2184_v39  ;;  %3882 = vmatmul.f32.vlgmr.msrb.gmra.mxu3 %v12528_v5  ;;  %v12531_v33 = vld [vmem:[#allocation68_spill] sm:$0xff]  ;;  %v1120_v39 = vadd.f32 %v10956_v24, %v10951_v9  ;;  %v12537_v9 = vld [vmem:[#allocation7_spill] sm:$0xff] }
 0x133   :  { %v2237_v63 = vpop.f32.mrf.mxu0  ;;  %4072 = vmatpush.msrb.mxu3 %v12530_v14  ;;  %v2263_v19 = vpop.f32.mrf.mxu1  ;;  %v12538_v24 = vld [vmem:[#allocation64_spill] sm:$0xff] }
 0x134   :  { %12527 = vst [vmem:[#allocation28_spill] sm:$0xff] %v11083_v1  ;;  %v2287_v41 = vpop.f32.mrf.mxu2  ;;  %v2264_v15 = vadd.f32 %v2263_v19, %v2237_v63  ;;  %v12533_v19 = vld [vmem:[#allocation71_spill] sm:$0xff]  ;;  %v11101_v22 = vadd.f32 %v10959_v34, %v1120_v39  ;;  %v12541_v34 = vld [vmem:[#allocation66_spill] sm:$0xff] }
 0x135   :  { %v2311_v16 = vpop.f32.mrf.mxu3 }
 0x136   :  { %3808 = vmatmul.f32.vlgmr.msrb.gmra.mxu0 %v12524_v3  ;;  %v2288_v58 = vadd.f32 %v2287_v41, %v2264_v15  ;;  %3830 = vmatmul.f32.vlgmr.msrb.gmra.mxu1 %v12524_v3  ;;  %12534 = vst [vmem:[#allocation39_spill] sm:$0xff] %v11101_v22  ;;  %v12547_v22 = vld [vmem:[#allocation11_spill] sm:$0xff] }
 0x137   :  { %3996 = vmatpush.msrb.mxu0 %v12530_v14  ;;  %4026 = vmatpush.msrb.mxu1 %v12531_v33  ;;  %v12536_v33 = vld [vmem:[#allocation5_spill] sm:$0xff] }
 0x138   :  { %v2312_v31 = vadd.f32 %v2311_v16, %v2288_v58  ;;  %3954 = vmatmul.f32.vlgmr.msra.gmra.mxu2 %v12528_v5 }
 0x139   :  { %4142 = vmatpush.msra.mxu2 %v12532_v48 }
 0x13a   :  { %3976 = vmatmul.f32.vlgmr.msra.gmra.mxu3 %v12528_v5 }
 0x13b   :  { %v2335_v63 = vpop.f32.mrf.mxu0  ;;  %4172 = vmatpush.msra.mxu3 %v12533_v19  ;;  %v2357_v15 = vpop.f32.mrf.mxu1 }
 0x13c   :  { %v2336_v41 = vadd.f32 %v2335_v63, %v2312_v31  ;;  %v2389_v49 = vpop.f32.mrf.mxu2  ;;  %v12539_v31 = vld [vmem:[#allocation12_spill] sm:$0xff]  ;;  %v12540_v63 = vld [vmem:[#allocation14_spill] sm:$0xff] }
 0x13d   :  { %v2415_v1 = vpop.f32.mrf.mxu3 }
 0x13e   :  { %v11103_v16 = vadd.f32 %v2357_v15, %v2336_v41  ;;  %v2416_v58 = vadd.f32 %v2415_v1, %v2389_v49  ;;  %3906 = vmatmul.f32.vlgmr.msra.gmra.mxu0 %v12536_v33  ;;  %3930 = vmatmul.f32.vlgmr.msra.gmra.mxu1 %v12537_v9 }
 0x13f   :  { %4098 = vmatpush.msra.mxu0 %v12538_v24  ;;  %4120 = vmatpush.msra.mxu1 %v12530_v14  ;;  %v12542_v24 = vld [vmem:[#allocation16_spill] sm:$0xff] }
 0x140   :  { %12535 = vst [vmem:[#allocation105_spill] sm:$0xff] %v11103_v16  ;;  %4052 = vmatmul.f32.vlgmr.msrb.gmra.mxu2 %v12539_v31  ;;  %v12545_v16 = vld [vmem:[#allocation19_spill] sm:$0xff] }
 0x141   :  { %4244 = vmatpush.msrb.mxu2 %v12541_v34 }
 0x142   :  { %4076 = vmatmul.f32.vlgmr.msrb.gmra.mxu3 %v12540_v63 }
 0x143   :  { %v2439_v39 = vpop.f32.mrf.mxu0  ;;  %4266 = vmatpush.msrb.mxu3 %v12532_v48  ;;  %v2463_v49 = vpop.f32.mrf.mxu1 }
 0x144   :  { %v2440_v1 = vadd.f32 %v2439_v39, %v2416_v58  ;;  %v2487_v19 = vpop.f32.mrf.mxu2  ;;  %v12548_v58 = vld [vmem:[#allocation77_spill] sm:$0xff] }
 0x145   :  { %v2509_v41 = vpop.f32.mrf.mxu3 }
 0x146   :  { %v2464_v15 = vadd.f32 %v2463_v49, %v2440_v1  ;;  %4002 = vmatmul.f32.vlgmr.msrb.gmra.mxu0 %v12542_v24  ;;  %4028 = vmatmul.f32.vlgmr.msrb.gmra.mxu1 %v12543_v10 }
 0x147   :  { %4195 = vmatpush.msrb.mxu0 %v12544_v4  ;;  %4218 = vmatpush.msrb.mxu1 %v12532_v48 }
 0x148   :  { %v2488_v14 = vadd.f32 %v2487_v19, %v2464_v15  ;;  %4148 = vmatmul.f32.vlgmr.msra.gmra.mxu2 %v12545_v16 }
 0x149   :  { %4341 = vmatpush.msra.mxu2 %v12548_v58 }
 0x14a   :  { %v11120_v34 = vadd.f32 %v2509_v41, %v2488_v14  ;;  %4174 = vmatmul.f32.vlgmr.msra.gmra.mxu3 %v12547_v22  ;;  %v12550_v41 = vld [vmem:[#allocation84_spill] sm:$0xff] }
 0x14b   :  { %v2543_v39 = vpop.f32.mrf.mxu0  ;;  %4364 = vmatpush.msra.mxu3 %v12549_v59  ;;  %v2569_v49 = vpop.f32.mrf.mxu1  ;;  %v12551_v14 = vld [vmem:[#allocation76_spill] sm:$0xff] }
 0x14c   :  { %12546 = vst [vmem:[#allocation32_spill] sm:$0xff] %v11120_v34  ;;  %v2593_v45 = vpop.f32.mrf.mxu2  ;;  %v2570_v4 = vadd.f32 %v2569_v49, %v2543_v39  ;;  %v12552_v39 = vld [vmem:[#allocation87_spill] sm:$0xff]  ;;  %v12553_v34 = vld [vmem:[#allocation13_spill] sm:$0xff] }
 0x14d   :  { %v2617_v19 = vpop.f32.mrf.mxu3 }
 0x14e   :  { %4100 = vmatmul.f32.vlgmr.msra.gmra.mxu0 %v12543_v10  ;;  %v2594_v48 = vadd.f32 %v2593_v45, %v2570_v4  ;;  %4122 = vmatmul.f32.vlgmr.msra.gmra.mxu1 %v12543_v10 }
 0x14f   :  { %4288 = vmatpush.msra.mxu0 %v12549_v59  ;;  %4318 = vmatpush.msra.mxu1 %v12550_v41  ;;  %v12554_v41 = vld [vmem:[#allocation15_spill] sm:$0xff] }
 0x150   :  { %v11131_v15 = vadd.f32 %v2617_v19, %v2594_v48  ;;  %4246 = vmatmul.f32.vlgmr.msrb.gmra.mxu2 %v12547_v22  ;;  %v12555_v19 = vld [vmem:[#allocation80_spill] sm:$0xff]  ;;  %v12556_v48 = vld [vmem:[#allocation23_spill] sm:$0xff] }
 0x151   :  { %4434 = vmatpush.msrb.mxu2 %v12551_v14 }
 0x152   :  { %4268 = vmatmul.f32.vlgmr.msrb.gmra.mxu3 %v12547_v22 }
 0x153   :  { %v11136_v58 = vpop.f32.mrf.mxu0  ;;  %4464 = vmatpush.msrb.mxu3 %v12552_v39  ;;  %v11139_v49 = vpop.f32.mrf.mxu1 }
 0x154   :  { %v2689_v45 = vpop.f32.mrf.mxu2 }
 0x155   :  { %v2715_v4 = vpop.f32.mrf.mxu3 }
 0x156   :  { %v2716_v1 = vadd.f32 %v2715_v4, %v2689_v45  ;;  %4198 = vmatmul.f32.vlgmr.msrb.gmra.mxu0 %v12553_v34  ;;  %4222 = vmatmul.f32.vlgmr.msrb.gmra.mxu1 %v12554_v41 }
 0x157   :  { %4390 = vmatpush.msrb.mxu0 %v12555_v19  ;;  %4412 = vmatpush.msrb.mxu1 %v12549_v59  ;;  %v12561_v19 = vld [vmem:[#allocation79_spill] sm:$0xff] }
 0x158   :  { %4344 = vmatmul.f32.vlgmr.msra.gmra.mxu2 %v12556_v48 }
 0x159   :  { %4536 = vmatpush.msra.mxu2 %v12558_v13 }
 0x15a   :  { %4368 = vmatmul.f32.vlgmr.msra.gmra.mxu3 %v12557_v35 }
 0x15b   :  { %v2739_v39 = vpop.f32.mrf.mxu0  ;;  %4558 = vmatpush.msra.mxu3 %v12551_v14  ;;  %v2763_v40 = vpop.f32.mrf.mxu1 }
 0x15c   :  { %v2740_v44 = vadd.f32 %v2739_v39, %v2716_v1  ;;  %v2787_v45 = vpop.f32.mrf.mxu2  ;;  %v12564_v1 = vld [vmem:[#allocation92_spill] sm:$0xff] }
 0x15d   :  { %v2809_v4 = vpop.f32.mrf.mxu3 }
 0x15e   :  { %v2764_v47 = vadd.f32 %v2763_v40, %v2740_v44  ;;  %4294 = vmatmul.f32.vlgmr.msra.gmra.mxu0 %v12559_v38  ;;  %4320 = vmatmul.f32.vlgmr.msra.gmra.mxu1 %v12560_v62 }
 0x15f   :  { %4487 = vmatpush.msra.mxu0 %v12561_v19  ;;  %4510 = vmatpush.msra.mxu1 %v12551_v14 }
 0x160   :  { %v2788_v59 = vadd.f32 %v2787_v45, %v2764_v47  ;;  %4440 = vmatmul.f32.vlgmr.msrb.gmra.mxu2 %v12562_v50  ;;  %v60_v47 = vld [vmem:[%s12183_s3] sm:$0xf]  ;;  %v12566_v45 = vld [vmem:[#allocation99_spill] sm:$0xff] }
 0x161   :  { %4633 = vmatpush.msrb.mxu2 %v12564_v1  ;;  %v4857_v19 = vsel %vm82_vm0, %v60_v47, 0  ;;  %v12567_v1 = vld [vmem:[#allocation102_spill] sm:$0xff] }
 0x162   :  { %v11154_v13 = vadd.f32 %v2809_v4, %v2788_v59  ;;  %4466 = vmatmul.f32.vlgmr.msrb.gmra.mxu3 %v12563_v36  ;;  %v61_v59 = vld [vmem:[%s12183_s3 + $0x4] sm:$0xf] }
 0x163   :  { %v2835_v39 = vpop.f32.mrf.mxu0  ;;  %4656 = vmatpush.msrb.mxu3 %v12565_v51  ;;  %v2861_v40 = vpop.f32.mrf.mxu1 }
 0x164   :  { %v2885_v44 = vpop.f32.mrf.mxu2  ;;  %v2862_v57 = vadd.f32 %v2861_v40, %v2835_v39  ;;  %v11180_v40 = vand.u32 4294901760, %v4857_v19 }
 0x165   :  { %v2909_v37 = vpop.f32.mrf.mxu3 }
 0x166   :  { %4392 = vmatmul.f32.vlgmr.msrb.gmra.mxu0 %v12560_v62  ;;  %v2886_v14 = vadd.f32 %v2885_v44, %v2862_v57  ;;  %4414 = vmatmul.f32.vlgmr.msrb.gmra.mxu1 %v12560_v62  ;;  %v5006_v44 = vsel %vm82_vm0, %v61_v59, 0  ;;  %v12573_v59 = vld [vmem:[#allocation96_spill] sm:$0xff] }
 0x167   :  { %4580 = vmatpush.msrb.mxu0 %v12565_v51  ;;  %4610 = vmatpush.msrb.mxu1 %v12566_v45  ;;  %v12568_v45 = vld [vmem:[#allocation24_spill] sm:$0xff]  ;;  %v11186_v26 = vand.u32 4294901760, %v5006_v44 }
 0x168   :  { %v11166_v4 = vadd.f32 %v2909_v37, %v2886_v14  ;;  %4538 = vmatmul.f32.vlgmr.msra.gmra.mxu2 %v12563_v36 }
 0x169   :  { %4726 = vmatpush.msra.mxu2 %v10808_v30 }
 0x16a   :  { %4560 = vmatmul.f32.vlgmr.msra.gmra.mxu3 %v12563_v36 }
 0x16b   :  { %v11175_v57 = vpop.f32.mrf.mxu0  ;;  %4756 = vmatpush.msra.mxu3 %v12567_v1  ;;  %v11178_v39 = vpop.f32.mrf.mxu1  ;;  %v11190_v1 = vsub.f32 %v4857_v19, %v11180_v40 }
 0x16c   :  { %v2981_v37 = vpop.f32.mrf.mxu2 }
 0x16d   :  { %v3007_v47 = vpop.f32.mrf.mxu3 }
 0x16e   :  { %v3008_v14 = vadd.f32 %v3007_v47, %v2981_v37  ;;  %4490 = vmatmul.f32.vlgmr.msra.gmra.mxu0 %v12568_v45  ;;  %4514 = vmatmul.f32.vlgmr.msra.gmra.mxu1 %v12569_v18  ;;  %v11197_v47 = vsub.f32 %v5006_v44, %v11186_v26 }
 0x16f   :  { %4682 = vmatpush.msra.mxu0 %v12570_v60  ;;  %4704 = vmatpush.msra.mxu1 %v12565_v51  ;;  %v11200_v51 = vand.u32 4294901760, %v11190_v1 }
 0x170   :  { %4636 = vmatmul.f32.vlgmr.msrb.gmra.mxu2 %v12571_v55  ;;  %12574 = vst [vmem:[#allocation34_spill] sm:$0xff] %v11197_v47 }
 0x171   :  { %4828 = vmatpush.msrb.mxu2 %v12573_v59  ;;  %v11206_v59 = vand.u32 4294901760, %v11197_v47  ;;  %v4903_v44 = vsub.f32 %v11190_v1, %v11200_v51 }
 0x172   :  { %4660 = vmatmul.f32.vlgmr.msrb.gmra.mxu3 %v12572_v17 }
 0x173   :  { %v3031_v37 = vpop.f32.mrf.mxu0  ;;  %4850 = vmatpush.msrb.mxu3 %v10808_v30  ;;  %v3055_v23 = vpop.f32.mrf.mxu1 }
 0x174   :  { %v3032_v60 = vadd.f32 %v3031_v37, %v3008_v14  ;;  %v3079_v28 = vpop.f32.mrf.mxu2  ;;  %v12577_v14 = vld [vmem:[#allocation49_spill] sm:$0xff] }
 0x175   :  { %v3101_v19 = vpop.f32.mrf.mxu3 }
 0x176   :  { %v3056_v43 = vadd.f32 %v3055_v23, %v3032_v60  ;;  %4586 = vmatmul.f32.vlgmr.msrb.gmra.mxu0 %v12575_v42  ;;  %4612 = vmatmul.f32.vlgmr.msrb.gmra.mxu1 %v12576_v8  ;;  %v12578_v23 = vld [vmem:[#allocation37_spill] sm:$0xff] }
 0x177   :  { %4779 = vmatpush.msrb.mxu0 %v10823_v56  ;;  %4802 = vmatpush.msrb.mxu1 %v10808_v30  ;;  %v5052_v56 = vsub.f32 %v11197_v47, %v11206_v59  ;;  %v11219_v30 = vand.u32 4294901760, %v4903_v44 }
 0x178   :  { %v3080_v6 = vadd.f32 %v3079_v28, %v3056_v43  ;;  %4732 = vmatmul.f32.vlgmr.msra.gmra.mxu2 %v12577_v14 }
 0x179   :  { %4928 = vmatpush.msra.mxu2 %v11190_v1  ;;  %v11227_v21 = vand.u32 4294901760, %v5052_v56 }
 0x17a   :  { %v11212_v37 = vadd.f32 %v3101_v19, %v3080_v6  ;;  %4758 = vmatmul.f32.vlgmr.msra.gmra.mxu3 %v12578_v23  ;;  %v62_v6 = vld [vmem:[%s12183_s3 + $0x8] sm:$0xf] }
 0x17b   :  { %v3127_v60 = vpop.f32.mrf.mxu0  ;;  %4951 = vmatpush.msra.mxu3 %v11180_v40  ;;  %v3153_v43 = vpop.f32.mrf.mxu1  ;;  %v5155_v44 = vsel %vm82_vm0, %v62_v6, 0 }
 0x17c   :  { %v3177_v28 = vpop.f32.mrf.mxu2  ;;  %v3154_v12 = vadd.f32 %v3153_v43, %v3127_v60  ;;  %v63_v60 = vld [vmem:[%s12183_s3 + $0xc] sm:$0xf]  ;;  %v11244_v43 = vand.u32 4294901760, %v5155_v44 }
 0x17d   :  { %v3201_v20 = vpop.f32.mrf.mxu3 }
 0x17e   :  { %4684 = vmatmul.f32.vlgmr.msra.gmra.mxu0 %v12576_v8  ;;  %v3178_v19 = vadd.f32 %v3177_v28, %v3154_v12  ;;  %4706 = vmatmul.f32.vlgmr.msra.gmra.mxu1 %v12576_v8  ;;  %v5304_v28 = vsel %vm82_vm0, %v63_v60, 0  ;;  %v11254_v25 = vsub.f32 %v5155_v44, %v11244_v43 }
 0x17f   :  { %4875 = vmatpush.msra.mxu0 %v11180_v40  ;;  %4905 = vmatpush.msra.mxu1 %v11219_v30  ;;  %v11250_v46 = vand.u32 4294901760, %v5304_v28 }
 0x180   :  { %v11230_v32 = vadd.f32 %v3201_v20, %v3178_v19  ;;  %4830 = vmatmul.f32.vlgmr.msrb.gmra.mxu2 %v12578_v23  ;;  %12581 = vst [vmem:[#allocation31_spill] sm:$0xff] %v11254_v25  ;;  %v11264_v27 = vand.u32 4294901760, %v11254_v25 }
 0x181   :  { %5024 = vmatpush.msrb.mxu2 %v11186_v26 }
 0x182   :  { %4852 = vmatmul.f32.vlgmr.msrb.gmra.mxu3 %v12578_v23  ;;  %12583 = vst [vmem:[#allocation42_spill] sm:$0xff] %v11264_v27 }
 0x183   :  { %v11239_v12 = vpop.f32.mrf.mxu0  ;;  %5054 = vmatpush.msrb.mxu3 %v11227_v21  ;;  %v11242_v56 = vpop.f32.mrf.mxu1 }
 0x184   :  { %v3273_v20 = vpop.f32.mrf.mxu2 }
 0x185   :  { %v3299_v6 = vpop.f32.mrf.mxu3 }
 0x186   :  { %v3300_v19 = vadd.f32 %v3299_v6, %v3273_v20  ;;  %4782 = vmatmul.f32.vlgmr.msrb.gmra.mxu0 %v12579_v61  ;;  %4806 = vmatmul.f32.vlgmr.msrb.gmra.mxu1 %v12580_v2  ;;  %v11261_v20 = vsub.f32 %v5304_v28, %v11250_v46  ;;  %v5201_v28 = vsub.f32 %v11254_v25, %v11264_v27 }
 0x187   :  { %4977 = vmatpush.msrb.mxu0 %v11200_v51  ;;  %4999 = vmatpush.msrb.mxu1 %v11180_v40 }
 0x188   :  { %4931 = vmatmul.f32.vlgmr.msra.gmra.mxu2 %v12520_v53  ;;  %12582 = vst [vmem:[#allocation45_spill] sm:$0xff] %v11261_v20  ;;  %v11270_v53 = vand.u32 4294901760, %v11261_v20 }
 0x189   :  { %5126 = vmatpush.msra.mxu2 %v11206_v59 }
 0x18a   :  { %4955 = vmatmul.f32.vlgmr.msra.gmra.mxu3 %v12521_v0 }
 0x18b   :  { %v3323_v60 = vpop.f32.mrf.mxu0  ;;  %5148 = vmatpush.msra.mxu3 %v11186_v26  ;;  %v3347_v29 = vpop.f32.mrf.mxu1 }
 0x18c   :  { %v3324_v6 = vadd.f32 %v3323_v60, %v3300_v19  ;;  %v3371_v11 = vpop.f32.mrf.mxu2  ;;  %v11283_v60 = vand.u32 4294901760, %v5201_v28 }
 0x18d   :  { %v3393_v44 = vpop.f32.mrf.mxu3 }
 0x18e   :  { %v3348_v52 = vadd.f32 %v3347_v29, %v3324_v6  ;;  %4881 = vmatmul.f32.vlgmr.msra.gmra.mxu0 %v12523_v7  ;;  %4907 = vmatmul.f32.vlgmr.msra.gmra.mxu1 %v12524_v3  ;;  %v5350_v7 = vsub.f32 %v11261_v20, %v11270_v53 }
 0x18f   :  { %5077 = vmatpush.msra.mxu0 %v11197_v47  ;;  %5100 = vmatpush.msra.mxu1 %v11186_v26 }
 0x190   :  { %v3372_v0 = vadd.f32 %v3371_v11, %v3348_v52  ;;  %5030 = vmatmul.f32.vlgmr.msrb.gmra.mxu2 %v12526_v54  ;;  %v64_v54 = vld [vmem:[%s12183_s3 + $0x10] sm:$0xf] }
 0x191   :  { %5226 = vmatpush.msrb.mxu2 %v11254_v25  ;;  %v5453_v28 = vsel %vm82_vm0, %v64_v54, 0 }
 0x192   :  { %v11276_v19 = vadd.f32 %v3393_v44, %v3372_v0  ;;  %5056 = vmatmul.f32.vlgmr.msrb.gmra.mxu3 %v12528_v5  ;;  %v11291_v0 = vand.u32 4294901760, %v5350_v7 }
 0x193   :  { %v3419_v29 = vpop.f32.mrf.mxu0  ;;  %5249 = vmatpush.msrb.mxu3 %v11244_v43  ;;  %v3445_v52 = vpop.f32.mrf.mxu1 }
 0x194   :  { %v3469_v11 = vpop.f32.mrf.mxu2  ;;  %v3446_v6 = vadd.f32 %v3445_v52, %v3419_v29  ;;  %12584 = vst [vmem:[#allocation52_spill] sm:$0xff] %v11291_v0  ;;  %v65_v29 = vld [vmem:[%s12183_s3 + $0x14] sm:$0xf]  ;;  %v11308_v52 = vand.u32 4294901760, %v5453_v28 }
 0x195   :  { %v3493_v47 = vpop.f32.mrf.mxu3 }
 0x196   :  { %4979 = vmatmul.f32.vlgmr.msrb.gmra.mxu0 %v12524_v3  ;;  %v3470_v44 = vadd.f32 %v3469_v11, %v3446_v6  ;;  %5001 = vmatmul.f32.vlgmr.msrb.gmra.mxu1 %v12524_v3  ;;  %v5602_v11 = vsel %vm82_vm0, %v65_v29, 0 }
 0x197   :  { %5173 = vmatpush.msrb.mxu0 %v11244_v43  ;;  %5203 = vmatpush.msrb.mxu1 %v11283_v60 }
 0x198   :  { %v11294_v25 = vadd.f32 %v3493_v47, %v3470_v44  ;;  %5128 = vmatmul.f32.vlgmr.msra.gmra.mxu2 %v12528_v5  ;;  %v11318_v44 = vsub.f32 %v5453_v28, %v11308_v52 }
 0x199   :  { %5322 = vmatpush.msra.mxu2 %v11250_v46 }
 0x19a   :  { %5150 = vmatmul.f32.vlgmr.msra.gmra.mxu3 %v12528_v5  ;;  %v11314_v5 = vand.u32 4294901760, %v5602_v11 }
 0x19b   :  { %v11303_v3 = vpop.f32.mrf.mxu0  ;;  %5352 = vmatpush.msra.mxu3 %v11291_v0  ;;  %v11306_v7 = vpop.f32.mrf.mxu1 }
 0x19c   :  { %v3565_v47 = vpop.f32.mrf.mxu2 }
 0x19d   :  { %v3591_v6 = vpop.f32.mrf.mxu3 }
 0x19e   :  { %v3592_v54 = vadd.f32 %v3591_v6, %v3565_v47  ;;  %5080 = vmatmul.f32.vlgmr.msra.gmra.mxu0 %v12536_v33  ;;  %5104 = vmatmul.f32.vlgmr.msra.gmra.mxu1 %v12537_v9  ;;  %v11325_v33 = vsub.f32 %v5602_v11, %v11314_v5 }
 0x19f   :  { %5275 = vmatpush.msra.mxu0 %v11264_v27  ;;  %5297 = vmatpush.msra.mxu1 %v11244_v43  ;;  %v11328_v27 = vand.u32 4294901760, %v11318_v44 }
 0x1a0   :  { %5229 = vmatmul.f32.vlgmr.msrb.gmra.mxu2 %v12539_v31  ;;  %v2642_v31 = vadd.f32 %v11136_v58, %v11131_v15 }
 0x1a1   :  { %5424 = vmatpush.msrb.mxu2 %v11270_v53 }
 0x1a2   :  { %5253 = vmatmul.f32.vlgmr.msrb.gmra.mxu3 %v12540_v63  ;;  %v11336_v63 = vand.u32 4294901760, %v11325_v33  ;;  %v2664_v15 = vadd.f32 %v11139_v49, %v2642_v31  ;;  %v66_v49 = vld [vmem:[%s12183_s3 + $0x18] sm:$0xf] }
 0x1a3   :  { %v3615_v29 = vpop.f32.mrf.mxu0  ;;  %5446 = vmatpush.msrb.mxu3 %v11250_v46  ;;  %v3639_v47 = vpop.f32.mrf.mxu1 }
 0x1a4   :  { %v3616_v9 = vadd.f32 %v3615_v29, %v3592_v54  ;;  %v3663_v6 = vpop.f32.mrf.mxu2  ;;  %v5499_v54 = vsub.f32 %v11318_v44, %v11328_v27 }
 0x1a5   :  { %v3685_v28 = vpop.f32.mrf.mxu3 }
 0x1a6   :  { %v3640_v0 = vadd.f32 %v3639_v47, %v3616_v9  ;;  %5179 = vmatmul.f32.vlgmr.msrb.gmra.mxu0 %v12542_v24  ;;  %5205 = vmatmul.f32.vlgmr.msrb.gmra.mxu1 %v12543_v10 }
 0x1a7   :  { %5375 = vmatpush.msrb.mxu0 %v11261_v20  ;;  %5398 = vmatpush.msrb.mxu1 %v11250_v46 }
 0x1a8   :  { %v3664_v11 = vadd.f32 %v3663_v6, %v3640_v0  ;;  %5328 = vmatmul.f32.vlgmr.msra.gmra.mxu2 %v12545_v16  ;;  %v5648_v0 = vsub.f32 %v11325_v33, %v11336_v63  ;;  %v11350_v6 = vand.u32 4294901760, %v5499_v54  ;;  %v67_v54 = vld [vmem:[%s12183_s3 + $0x1c] sm:$0xf] }
 0x1a9   :  { %5524 = vmatpush.msra.mxu2 %v11318_v44 }
 0x1aa   :  { %v11343_v58 = vadd.f32 %v3685_v28, %v3664_v11  ;;  %5354 = vmatmul.f32.vlgmr.msra.gmra.mxu3 %v12547_v22  ;;  %v11358_v28 = vand.u32 4294901760, %v5648_v0  ;;  %v5751_v11 = vsel %vm82_vm0, %v66_v49, 0 }
 0x1ab   :  { %v3711_v24 = vpop.f32.mrf.mxu0  ;;  %5547 = vmatpush.msra.mxu3 %v11308_v52  ;;  %v3737_v9 = vpop.f32.mrf.mxu1  ;;  %v11375_v0 = vand.u32 4294901760, %v5751_v11 }
 0x1ac   :  { %v3712_v29 = vadd.f32 %v3711_v24, %v2664_v15  ;;  %v3761_v47 = vpop.f32.mrf.mxu2 }
 0x1ad   :  { %v3785_v16 = vpop.f32.mrf.mxu3  ;;  %v11386_v49 = vsub.f32 %v5751_v11, %v11375_v0 }
 0x1ae   :  { %v3738_v20 = vadd.f32 %v3737_v9, %v3712_v29  ;;  %5277 = vmatmul.f32.vlgmr.msra.gmra.mxu0 %v12543_v10  ;;  %5299 = vmatmul.f32.vlgmr.msra.gmra.mxu1 %v12543_v10  ;;  %v5900_v29 = vsel %vm82_vm0, %v67_v54, 0 }
 0x1af   :  { %5471 = vmatpush.msra.mxu0 %v11308_v52  ;;  %5501 = vmatpush.msra.mxu1 %v11350_v6 }
 0x1b0   :  { %v3762_v31 = vadd.f32 %v3761_v47, %v3738_v20  ;;  %5426 = vmatmul.f32.vlgmr.msrb.gmra.mxu2 %v12547_v22 }
 0x1b1   :  { %5620 = vmatpush.msrb.mxu2 %v11314_v5 }
 0x1b2   :  { %v11366_v15 = vadd.f32 %v3785_v16, %v3762_v31  ;;  %5448 = vmatmul.f32.vlgmr.msrb.gmra.mxu3 %v12547_v22  ;;  %v11382_v22 = vand.u32 4294901760, %v5900_v29 }
 0x1b3   :  { %v11370_v10 = vpop.f32.mrf.mxu0  ;;  %5650 = vmatpush.msrb.mxu3 %v11358_v28  ;;  %v11373_v20 = vpop.f32.mrf.mxu1 }
 0x1b4   :  { %v3857_v24 = vpop.f32.mrf.mxu2 }
 0x1b5   :  { %v3858_v9 = vadd.f32 %v3857_v24, %v11154_v13  ;;  %v3883_v47 = vpop.f32.mrf.mxu3  ;;  %v11396_v24 = vand.u32 4294901760, %v11386_v49 }
 0x1b6   :  { %5378 = vmatmul.f32.vlgmr.msrb.gmra.mxu0 %v12553_v34  ;;  %5402 = vmatmul.f32.vlgmr.msrb.gmra.mxu1 %v12554_v41  ;;  %v11393_v34 = vsub.f32 %v5900_v29, %v11382_v22 }
 0x1b7   :  { %v3884_v16 = vadd.f32 %v3883_v47, %v3858_v9  ;;  %5573 = vmatpush.msrb.mxu0 %v11328_v27  ;;  %5595 = vmatpush.msrb.mxu1 %v11308_v52  ;;  %v5797_v47 = vsub.f32 %v11386_v49, %v11396_v24 }
 0x1b8   :  { %5527 = vmatmul.f32.vlgmr.msra.gmra.mxu2 %v12556_v48  ;;  %v2934_v48 = vadd.f32 %v11175_v57, %v11166_v4 }
 0x1b9   :  { %5722 = vmatpush.msra.mxu2 %v11336_v63 }
 0x1ba   :  { %5551 = vmatmul.f32.vlgmr.msra.gmra.mxu3 %v12557_v35  ;;  %v11404_v35 = vand.u32 4294901760, %v11393_v34  ;;  %v2956_v4 = vadd.f32 %v11178_v39, %v2934_v48 }
 0x1bb   :  { %v3907_v13 = vpop.f32.mrf.mxu0  ;;  %5744 = vmatpush.msra.mxu3 %v11314_v5  ;;  %v3931_v31 = vpop.f32.mrf.mxu1 }
 0x1bc   :  { %v3908_v41 = vadd.f32 %v3907_v13, %v3884_v16  ;;  %v3955_v54 = vpop.f32.mrf.mxu2  ;;  %v5946_v16 = vsub.f32 %v11393_v34, %v11404_v35 }
 0x1bd   :  { %v3977_v11 = vpop.f32.mrf.mxu3 }
 0x1be   :  { %v3932_v9 = vadd.f32 %v3931_v31, %v3908_v41  ;;  %5477 = vmatmul.f32.vlgmr.msra.gmra.mxu0 %v12559_v38  ;;  %5503 = vmatmul.f32.vlgmr.msra.gmra.mxu1 %v12560_v62  ;;  %v11423_v39 = vand.u32 4294901760, %v5946_v16 }
 0x1bf   :  { %5673 = vmatpush.msra.mxu0 %v11325_v33  ;;  %5696 = vmatpush.msra.mxu1 %v11314_v5 }
 0x1c0   :  { %v3956_v29 = vadd.f32 %v3955_v54, %v3932_v9  ;;  %5626 = vmatmul.f32.vlgmr.msrb.gmra.mxu2 %v12562_v50  ;;  %v11418_v54 = vand.u32 4294901760, %v5797_v47 }
 0x1c1   :  { %5822 = vmatpush.msrb.mxu2 %v11386_v49 }
 0x1c2   :  { %v11411_v57 = vadd.f32 %v3977_v11, %v3956_v29  ;;  %5652 = vmatmul.f32.vlgmr.msrb.gmra.mxu3 %v12563_v36 }
 0x1c3   :  { %v4003_v38 = vpop.f32.mrf.mxu0  ;;  %5845 = vmatpush.msrb.mxu3 %v11375_v0  ;;  %v4029_v41 = vpop.f32.mrf.mxu1 }
 0x1c4   :  { %v4004_v13 = vadd.f32 %v4003_v38, %v2956_v4  ;;  %v4053_v31 = vpop.f32.mrf.mxu2 }
 0x1c5   :  { %v4077_v50 = vpop.f32.mrf.mxu3 }
 0x1c6   :  { %v4030_v9 = vadd.f32 %v4029_v41, %v4004_v13  ;;  %5575 = vmatmul.f32.vlgmr.msrb.gmra.mxu0 %v12560_v62  ;;  %5597 = vmatmul.f32.vlgmr.msrb.gmra.mxu1 %v12560_v62 }
 0x1c7   :  { %5769 = vmatpush.msrb.mxu0 %v11375_v0  ;;  %5799 = vmatpush.msrb.mxu1 %v11418_v54 }
 0x1c8   :  { %v4054_v11 = vadd.f32 %v4053_v31, %v4030_v9  ;;  %5724 = vmatmul.f32.vlgmr.msra.gmra.mxu2 %v12563_v36 }
 0x1c9   :  { %5918 = vmatpush.msra.mxu2 %v11382_v22 }
 0x1ca   :  { %v11427_v48 = vadd.f32 %v4077_v50, %v4054_v11  ;;  %5746 = vmatmul.f32.vlgmr.msra.gmra.mxu3 %v12563_v36 }
 0x1cb   :  { %v11431_v29 = vpop.f32.mrf.mxu0  ;;  %5948 = vmatpush.msra.mxu3 %v11423_v39  ;;  %v11434_v62 = vpop.f32.mrf.mxu1 }
 0x1cc   :  { %12585 = vst [vmem:[#allocation44_spill] sm:$0xff] %v11431_v29  ;;  %v4149_v47 = vpop.f32.mrf.mxu2 }
 0x1cd   :  { %12586 = vst [vmem:[#allocation55_spill] sm:$0xff] %v11434_v62  ;;  %v4150_v4 = vadd.f32 %v4149_v47, %v11212_v37  ;;  %v4175_v38 = vpop.f32.mrf.mxu3 }
 0x1ce   :  { %5676 = vmatmul.f32.vlgmr.msra.gmra.mxu0 %v12568_v45  ;;  %5700 = vmatmul.f32.vlgmr.msra.gmra.mxu1 %v12569_v18  ;;  %v3226_v18 = vadd.f32 %v11239_v12, %v11230_v32 }
 0x1cf   :  { %v4176_v16 = vadd.f32 %v4175_v38, %v4150_v4  ;;  %5871 = vmatpush.msra.mxu0 %v11396_v24  ;;  %5893 = vmatpush.msra.mxu1 %v11375_v0 }
 0x1d0   :  { %5825 = vmatmul.f32.vlgmr.msrb.gmra.mxu2 %v12571_v55 }
 0x1d1   :  { %6020 = vmatpush.msrb.mxu2 %v11404_v35 }
 0x1d2   :  { %5849 = vmatmul.f32.vlgmr.msrb.gmra.mxu3 %v12572_v17  ;;  %v3248_v17 = vadd.f32 %v11242_v56, %v3226_v18 }
 0x1d3   :  { %v4199_v36 = vpop.f32.mrf.mxu0  ;;  %6042 = vmatpush.msrb.mxu3 %v11382_v22  ;;  %v4223_v13 = vpop.f32.mrf.mxu1 }
 0x1d4   :  { %v4200_v37 = vadd.f32 %v4199_v36, %v4176_v16  ;;  %v4247_v41 = vpop.f32.mrf.mxu2  ;;  %v12592_v36 = vld [vmem:[#allocation57_spill] sm:$0xff] }
 0x1d5   :  { %v4269_v45 = vpop.f32.mrf.mxu3 }
 0x1d6   :  { %v4224_v31 = vadd.f32 %v4223_v13, %v4200_v37  ;;  %5775 = vmatmul.f32.vlgmr.msrb.gmra.mxu0 %v12575_v42  ;;  %5801 = vmatmul.f32.vlgmr.msrb.gmra.mxu1 %v12576_v8 }
 0x1d7   :  { %5971 = vmatpush.msrb.mxu0 %v11393_v34  ;;  %5994 = vmatpush.msrb.mxu1 %v11382_v22 }
 0x1d8   :  { %v4248_v55 = vadd.f32 %v4247_v41, %v4224_v31  ;;  %5924 = vmatmul.f32.vlgmr.msra.gmra.mxu2 %v12577_v14 }
 0x1d9   :  { %6117 = vmatpush.msra.mxu2 %v11190_v1 }
 0x1da   :  { %v11453_v50 = vadd.f32 %v4269_v45, %v4248_v55  ;;  %5950 = vmatmul.f32.vlgmr.msra.gmra.mxu3 %v12578_v23  ;;  %v12595_v45 = vld [vmem:[#allocation34_spill] sm:$0xff] }
 0x1db   :  { %v4295_v32 = vpop.f32.mrf.mxu0  ;;  %6140 = vmatpush.msra.mxu3 %v11180_v40  ;;  %v4321_v12 = vpop.f32.mrf.mxu1 }
 0x1dc   :  { %12587 = vst [vmem:[#allocation48_spill] sm:$0xff] %v11453_v50  ;;  %v4296_v42 = vadd.f32 %v4295_v32, %v3248_v17  ;;  %v4345_v9 = vpop.f32.mrf.mxu2  ;;  %v12598_v17 = vld [vmem:[#allocation53_spill] sm:$0xff]  ;;  %v12599_v32 = vld [vmem:[#allocation31_spill] sm:$0xff] }
 0x1dd   :  { %v4369_v11 = vpop.f32.mrf.mxu3 }
 0x1de   :  { %v4322_v47 = vadd.f32 %v4321_v12, %v4296_v42  ;;  %5873 = vmatmul.f32.vlgmr.msra.gmra.mxu0 %v12576_v8  ;;  %5895 = vmatmul.f32.vlgmr.msra.gmra.mxu1 %v12576_v8 }
 0x1df   :  { %6064 = vmatpush.msra.mxu0 %v11180_v40  ;;  %6094 = vmatpush.msra.mxu1 %v11219_v30 }
 0x1e0   :  { %v4346_v14 = vadd.f32 %v4345_v9, %v4322_v47  ;;  %6022 = vmatmul.f32.vlgmr.msrb.gmra.mxu2 %v12578_v23  ;;  %v12375_v47 = vmov 0  }
 0x1e1   :  { %6210 = vmatpush.msrb.mxu2 %v11186_v26  ;;  %10086 = vset.pattern.permute.xlu0 %v12375_v47 }
 0x1e2   :  { %v11463_v1 = vadd.f32 %v4369_v11, %v4346_v14  ;;  %6044 = vmatmul.f32.vlgmr.msrb.gmra.mxu3 %v12578_v23  ;;  %v12591_v23 = vld [vmem:[#allocation54_spill] sm:$0xff]  ;;  %10090 = vset.pattern.permute.xlu2 %v12375_v47 }
 0x1e3   :  { %v11467_v56 = vpop.f32.mrf.mxu0  ;;  %6240 = vmatpush.msrb.mxu3 %v11227_v21  ;;  %v11470_v4 = vpop.f32.mrf.mxu1 }
 0x1e4   :  { %12588 = vst [vmem:[#allocation4_spill] sm:$0xff] %v11463_v1  ;;  %v4441_v8 = vpop.f32.mrf.mxu2 }
 0x1e5   :  { %12589 = vst [vmem:[#allocation6_spill] sm:$0xff] %v11467_v56  ;;  %v4442_v38 = vadd.f32 %v4441_v8, %v11276_v19  ;;  %v4467_v16 = vpop.f32.mrf.mxu3 }
 0x1e6   :  { %12590 = vst [vmem:[#allocation50_spill] sm:$0xff] %v11470_v4  ;;  %5974 = vmatmul.f32.vlgmr.msrb.gmra.mxu0 %v12579_v61  ;;  %5998 = vmatmul.f32.vlgmr.msrb.gmra.mxu1 %v12580_v2  ;;  %v3518_v2 = vadd.f32 %v11303_v3, %v11294_v25 }
 0x1e7   :  { %v4468_v30 = vadd.f32 %v4467_v16, %v4442_v38  ;;  %6166 = vmatpush.msrb.mxu0 %v11200_v51  ;;  %6188 = vmatpush.msrb.mxu1 %v11180_v40  ;;  %v12593_v51 = vld [vmem:[#allocation62_spill] sm:$0xff]  ;;  %v12594_v40 = vld [vmem:[#allocation51_spill] sm:$0xff]  ;;  %v12602_v38 = vld [vmem:[#allocation52_spill] sm:$0xff] }
 0x1e8   :  { %6120 = vmatmul.f32.vlgmr.msra.gmra.mxu2 %v12591_v23  ;;  %v3540_v31 = vadd.f32 %v11306_v7, %v3518_v2  ;;  %v12371_v7 = vmov 2  }
 0x1e9   :  { %6312 = vmatpush.msra.mxu2 %v11206_v59  ;;  %v12596_v59 = vld [vmem:[#allocation65_spill] sm:$0xff]  ;;  %10088 = vset.pattern.permute.xlu1 %v12371_v7 }
 0x1ea   :  { %6144 = vmatmul.f32.vlgmr.msra.gmra.mxu3 %v12592_v36  ;;  %v12604_v36 = vld [vmem:[#allocation56_spill] sm:$0xff] }
 0x1eb   :  { %v4491_v21 = vpop.f32.mrf.mxu0  ;;  %6334 = vmatpush.msra.mxu3 %v11186_v26  ;;  %v4515_v37 = vpop.f32.mrf.mxu1 }
 0x1ec   :  { %v4492_v19 = vadd.f32 %v4491_v21, %v4468_v30  ;;  %v4539_v13 = vpop.f32.mrf.mxu2 }
 0x1ed   :  { %v4561_v61 = vpop.f32.mrf.mxu3 }
 0x1ee   :  { %v4516_v41 = vadd.f32 %v4515_v37, %v4492_v19  ;;  %6070 = vmatmul.f32.vlgmr.msra.gmra.mxu0 %v12593_v51  ;;  %6096 = vmatmul.f32.vlgmr.msra.gmra.mxu1 %v12594_v40  ;;  %v12605_v19 = vld [vmem:[#allocation59_spill] sm:$0xff]  ;;  %v12606_v37 = vld [vmem:[#allocation42_spill] sm:$0xff] }
 0x1ef   :  { %6263 = vmatpush.msra.mxu0 %v12595_v45  ;;  %6286 = vmatpush.msra.mxu1 %v11186_v26 }
 0x1f0   :  { %v4540_v18 = vadd.f32 %v4539_v13, %v4516_v41  ;;  %6216 = vmatmul.f32.vlgmr.msrb.gmra.mxu2 %v12596_v59  ;;  %v12607_v13 = vld [vmem:[#allocation70_spill] sm:$0xff]  ;;  %v12610_v59 = vld [vmem:[#allocation67_spill] sm:$0xff] }
 0x1f1   :  { %6409 = vmatpush.msrb.mxu2 %v12599_v32  ;;  %v12614_v32 = vld [vmem:[#allocation69_spill] sm:$0xff] }
 0x1f2   :  { %v11489_v55 = vadd.f32 %v4561_v61, %v4540_v18  ;;  %6242 = vmatmul.f32.vlgmr.msrb.gmra.mxu3 %v12598_v17  ;;  %v12608_v61 = vld [vmem:[#allocation73_spill] sm:$0xff]  ;;  %v12609_v18 = vld [vmem:[#allocation78_spill] sm:$0xff] }
 0x1f3   :  { %v4587_v25 = vpop.f32.mrf.mxu0  ;;  %6432 = vmatpush.msrb.mxu3 %v11244_v43  ;;  %v4613_v42 = vpop.f32.mrf.mxu1 }
 0x1f4   :  { %12597 = vst [vmem:[#allocation8_spill] sm:$0xff] %v11489_v55  ;;  %v4588_v3 = vadd.f32 %v4587_v25, %v3540_v31  ;;  %v4637_v12 = vpop.f32.mrf.mxu2  ;;  %v12611_v31 = vld [vmem:[#allocation45_spill] sm:$0xff] }
 0x1f5   :  { %v4661_v9 = vpop.f32.mrf.mxu3 }
 0x1f6   :  { %v4614_v11 = vadd.f32 %v4613_v42, %v4588_v3  ;;  %6168 = vmatmul.f32.vlgmr.msrb.gmra.mxu0 %v12594_v40  ;;  %6190 = vmatmul.f32.vlgmr.msrb.gmra.mxu1 %v12594_v40 }
 0x1f7   :  { %6356 = vmatpush.msrb.mxu0 %v11244_v43  ;;  %6386 = vmatpush.msrb.mxu1 %v11283_v60 }
 0x1f8   :  { %v4638_v26 = vadd.f32 %v4637_v12, %v4614_v11  ;;  %6314 = vmatmul.f32.vlgmr.msra.gmra.mxu2 %v12598_v17 }
 0x1f9   :  { %6502 = vmatpush.msra.mxu2 %v11250_v46 }
 0x1fa   :  { %v11501_v14 = vadd.f32 %v4661_v9, %v4638_v26  ;;  %6336 = vmatmul.f32.vlgmr.msra.gmra.mxu3 %v12598_v17  ;;  %v12612_v17 = vld [vmem:[#allocation81_spill] sm:$0xff] }
 0x1fb   :  { %v11505_v8 = vpop.f32.mrf.mxu0  ;;  %6532 = vmatpush.msra.mxu3 %v12602_v38  ;;  %v11509_v60 = vpop.f32.mrf.mxu1 }
 0x1fc   :  { %12600 = vst [vmem:[#allocation2_spill] sm:$0xff] %v11501_v14  ;;  %v4733_v16 = vpop.f32.mrf.mxu2 }
 0x1fd   :  { %12601 = vst [vmem:[#allocation47_spill] sm:$0xff] %v11505_v8  ;;  %v4734_v30 = vadd.f32 %v4733_v16, %v11343_v58  ;;  %v4759_v23 = vpop.f32.mrf.mxu3 }
 0x1fe   :  { %12603 = vst [vmem:[#allocation9_spill] sm:$0xff] %v11509_v60  ;;  %6266 = vmatmul.f32.vlgmr.msra.gmra.mxu0 %v12604_v36  ;;  %6290 = vmatmul.f32.vlgmr.msra.gmra.mxu1 %v12605_v19  ;;  %v12615_v36 = vld [vmem:[#allocation72_spill] sm:$0xff]  ;;  %v12617_v19 = vld [vmem:[#allocation86_spill] sm:$0xff]  ;;  %v12635_v60 = vmov 3  }
 0x1ff   :  { %v4760_v21 = vadd.f32 %v4759_v23, %v4734_v30  ;;  %6458 = vmatpush.msra.mxu0 %v12606_v37  ;;  %6480 = vmatpush.msra.mxu1 %v11244_v43  ;;  %v12618_v37 = vld [vmem:[#allocation89_spill] sm:$0xff] }
 0x200   :  { %6412 = vmatmul.f32.vlgmr.msrb.gmra.mxu2 %v12607_v13 }
 0x201   :  { %6604 = vmatpush.msrb.mxu2 %v11270_v53 }
 0x202   :  { %6436 = vmatmul.f32.vlgmr.msrb.gmra.mxu3 %v12608_v61 }
 0x203   :  { %v4783_v2 = vpop.f32.mrf.mxu0  ;;  %6626 = vmatpush.msrb.mxu3 %v11250_v46  ;;  %v4807_v41 = vpop.f32.mrf.mxu1 }
 0x204   :  { %v4784_v58 = vadd.f32 %v4783_v2, %v4760_v21  ;;  %v4831_v51 = vpop.f32.mrf.mxu2  ;;  %v12616_v21 = vld [vmem:[#allocation75_spill] sm:$0xff] }
 0x205   :  { %v4853_v40 = vpop.f32.mrf.mxu3 }
 0x206   :  { %v4808_v45 = vadd.f32 %v4807_v41, %v4784_v58  ;;  %6362 = vmatmul.f32.vlgmr.msrb.gmra.mxu0 %v12609_v18  ;;  %6388 = vmatmul.f32.vlgmr.msrb.gmra.mxu1 %v12610_v59  ;;  %v12621_v18 = vld [vmem:[#allocation95_spill] sm:$0xff] }
 0x207   :  { %6555 = vmatpush.msrb.mxu0 %v12611_v31  ;;  %6578 = vmatpush.msrb.mxu1 %v11250_v46 }
 0x208   :  { %v4832_v43 = vadd.f32 %v4831_v51, %v4808_v45  ;;  %6508 = vmatmul.f32.vlgmr.msra.gmra.mxu2 %v12612_v17  ;;  %v12620_v51 = vld [vmem:[#allocation83_spill] sm:$0xff]  ;;  %v12373_v45 = vmov 1  }
 0x209   :  { %6701 = vmatpush.msra.mxu2 %v11318_v44 }
 0x20a   :  { %v11525_v53 = vadd.f32 %v4853_v40, %v4832_v43  ;;  %6534 = vmatmul.f32.vlgmr.msra.gmra.mxu3 %v12614_v32 }
 0x20b   :  { %v4882_v25 = vpop.f32.mrf.mxu0  ;;  %6724 = vmatpush.msra.mxu3 %v11308_v52  ;;  %v4908_v3 = vpop.f32.mrf.mxu1 }
 0x20c   :  { %12613 = vst [vmem:[#allocation3_spill] sm:$0xff] %v11525_v53  ;;  %v4932_v42 = vpop.f32.mrf.mxu2  ;;  %v4909_v12 = vadd.f32 %v4908_v3, %v4882_v25 }
 0x20d   :  { %v4956_v9 = vpop.f32.mrf.mxu3 }
 0x20e   :  { %6460 = vmatmul.f32.vlgmr.msra.gmra.mxu0 %v12610_v59  ;;  %v4933_v11 = vadd.f32 %v4932_v42, %v4909_v12  ;;  %6482 = vmatmul.f32.vlgmr.msra.gmra.mxu1 %v12610_v59  ;;  %v12622_v59 = vld [vmem:[#allocation85_spill] sm:$0xff] }
 0x20f   :  { %6648 = vmatpush.msra.mxu0 %v11308_v52  ;;  %6678 = vmatpush.msra.mxu1 %v11350_v6 }
 0x210   :  { %v4957_v46 = vadd.f32 %v4956_v9, %v4933_v11  ;;  %6606 = vmatmul.f32.vlgmr.msrb.gmra.mxu2 %v12614_v32  ;;  %v12623_v11 = vld [vmem:[#allocation88_spill] sm:$0xff] }
 0x211   :  { %6794 = vmatpush.msrb.mxu2 %v11314_v5 }
 0x212   :  { %6628 = vmatmul.f32.vlgmr.msrb.gmra.mxu3 %v12614_v32 }
 0x213   :  { %v4980_v44 = vpop.f32.mrf.mxu0  ;;  %6824 = vmatpush.msrb.mxu3 %v11358_v28  ;;  %v5002_v38 = vpop.f32.mrf.mxu1 }
 0x214   :  { %v4981_v26 = vadd.f32 %v4980_v44, %v4957_v46  ;;  %v5031_v16 = vpop.f32.mrf.mxu2  ;;  %v12624_v46 = vld [vmem:[#allocation91_spill] sm:$0xff] }
 0x215   :  { %v5057_v30 = vpop.f32.mrf.mxu3 }
 0x216   :  { %v5003_v23 = vadd.f32 %v5002_v38, %v4981_v26  ;;  %6558 = vmatmul.f32.vlgmr.msrb.gmra.mxu0 %v12615_v36  ;;  %6582 = vmatmul.f32.vlgmr.msrb.gmra.mxu1 %v12616_v21  ;;  %v5058_v6 = vadd.f32 %v5057_v30, %v5031_v16  ;;  %v12625_v26 = vld [vmem:[#allocation101_spill] sm:$0xff]  ;;  %v12628_v21 = vld [vmem:[#allocation98_spill] sm:$0xff] }
 0x217   :  { %6750 = vmatpush.msrb.mxu0 %v11328_v27  ;;  %6772 = vmatpush.msrb.mxu1 %v11308_v52  ;;  %v12619_v27 = vld [vmem:[#allocation93_spill] sm:$0xff]  ;;  %v12369_v52 = vmov 3  }
 0x218   :  { %7434 = vperm.xlu1 %10088, %v5003_v23   ;;  %7218 = vperm.xlu0 %10086, %v5003_v23  }
 0x219   :  { %6704 = vmatmul.f32.vlgmr.msra.gmra.mxu2 %v12617_v19 }
 0x21a   :  { %6728 = vmatmul.f32.vlgmr.msra.gmra.mxu3 %v12618_v37  ;;  %6896 = vmatpush.msra.mxu2 %v11336_v63 }
 0x21b   :  { %v5081_v28 = vpop.f32.mrf.mxu0  ;;  %6918 = vmatpush.msra.mxu3 %v11314_v5  ;;  %v5105_v61 = vpop.f32.mrf.mxu1 }
 0x21c   :  { %v5082_v13 = vadd.f32 %v5081_v28, %v5058_v6  ;;  %v5129_v2 = vpop.f32.mrf.mxu2  ;;  %v12630_v28 = vld [vmem:[#allocation100_spill] sm:$0xff] }
 0x21d   :  { %v5151_v58 = vpop.f32.mrf.mxu3 }
 0x21e   :  { %v5106_v41 = vadd.f32 %v5105_v61, %v5082_v13  ;;  %6654 = vmatmul.f32.vlgmr.msra.gmra.mxu0 %v12619_v27  ;;  %6680 = vmatmul.f32.vlgmr.msra.gmra.mxu1 %v12620_v51 }
 0x21f   :  { %6847 = vmatpush.msra.mxu0 %v11325_v33  ;;  %6870 = vmatpush.msra.mxu1 %v11314_v5 }
 0x220   :  { %v5130_v40 = vadd.f32 %v5129_v2, %v5106_v41  ;;  %10089 = vset.pattern.permute.xlu1 %v12369_v52  ;;  %10087 = vset.pattern.permute.xlu0 %v12373_v45 }
 0x221   :  { %7534 = vperm.xlu1 %10089, %v5003_v23   ;;  %7335 = vperm.xlu0 %10087, %v5003_v23  }
 0x222   :  { %v5152_v63 = vadd.f32 %v5151_v58, %v5130_v40  ;;  %6800 = vmatmul.f32.vlgmr.msrb.gmra.mxu2 %v12621_v18  ;;  %6826 = vmatmul.f32.vlgmr.msrb.gmra.mxu3 %v12622_v59 }
 0x223   :  { %v5180_v31 = vpop.f32.mrf.mxu0  ;;  %6993 = vmatpush.msrb.mxu2 %v11386_v49  ;;  %v5206_v33 = vpop.f32.mrf.mxu1  ;;  %7016 = vmatpush.msrb.mxu3 %v11375_v0 }
 0x224   :  { %7223 = vperm.xlu2 %10090, %v5152_v63   ;;  %v5230_v43 = vpop.f32.mrf.mxu2  ;;  %v5207_v17 = vadd.f32 %v5206_v33, %v5180_v31  ;;  %v12632_v31 = vld [vmem:[#allocation106_spill] sm:$0xff] }
 0x225   :  { %v5254_v32 = vpop.f32.mrf.mxu3 }
 0x226   :  { %6752 = vmatmul.f32.vlgmr.msrb.gmra.mxu0 %v12620_v51  ;;  %v5231_v25 = vadd.f32 %v5230_v43, %v5207_v17  ;;  %6774 = vmatmul.f32.vlgmr.msrb.gmra.mxu1 %v12620_v51 }
 0x227   :  { %6940 = vmatpush.msrb.mxu0 %v11375_v0  ;;  %6970 = vmatpush.msrb.mxu1 %v11418_v54 }
 0x228   :  { %v5255_v3 = vadd.f32 %v5254_v32, %v5231_v25 }
 0x229   :  { %10092 = vset.pattern.permute.xlu1 %v12371_v7  ;;  %10094 = vset.pattern.permute.xlu0 %v12375_v47 }
 0x22a   :  { %7438 = vperm.xlu1 %10092, %v5152_v63   ;;  %6898 = vmatmul.f32.vlgmr.msra.gmra.mxu2 %v12622_v59 }
 0x22b   :  { %v5278_v5 = vpop.f32.mrf.mxu0  ;;  %6920 = vmatmul.f32.vlgmr.msra.gmra.mxu3 %v12622_v59  ;;  %7086 = vmatpush.msra.mxu2 %v11382_v22  ;;  %v5300_v42 = vpop.f32.mrf.mxu1  ;;  %v12631_v59 = vld [vmem:[#allocation103_spill] sm:$0xff] }
 0x22c   :  { %v5279_v49 = vadd.f32 %v5278_v5, %v5255_v3  ;;  %10091 = vset.pattern.permute.xlu2 %v12373_v45  ;;  %v5329_v12 = vpop.f32.mrf.mxu2  ;;  %7116 = vmatpush.msra.mxu3 %v11423_v39  ;;  %v12626_v39 = vld [vmem:[#allocation104_spill] sm:$0xff] }
 0x22d   :  { %7339 = vperm.xlu2 %10091, %v5152_v63   ;;  %v5355_v54 = vpop.f32.mrf.mxu3 }
 0x22e   :  { %v5301_v9 = vadd.f32 %v5300_v42, %v5279_v49  ;;  %6850 = vmatmul.f32.vlgmr.msra.gmra.mxu0 %v12623_v11  ;;  %6874 = vmatmul.f32.vlgmr.msra.gmra.mxu1 %v12624_v46  ;;  %v5356_v44 = vadd.f32 %v5355_v54, %v5329_v12 }
 0x22f   :  { %7042 = vmatpush.msra.mxu0 %v11396_v24  ;;  %7064 = vmatpush.msra.mxu1 %v11375_v0  ;;  %v12627_v0 = vld [vmem:[#allocation107_spill] sm:$0xff] }
 0x230   :  { %7228 = vperm.xlu0 %10094, %v5301_v9  }
 0x232   :  { %10095 = vset.pattern.permute.xlu1 %v12373_v45  ;;  %6996 = vmatmul.f32.vlgmr.msrb.gmra.mxu2 %v12625_v26 }
 0x233   :  { %v5379_v38 = vpop.f32.mrf.mxu0  ;;  %7343 = vperm.xlu1 %10095, %v5301_v9   ;;  %7020 = vmatmul.f32.vlgmr.msrb.gmra.mxu3 %v12626_v39  ;;  %v5403_v30 = vpop.f32.mrf.mxu1 }
 0x234   :  { %v5380_v16 = vadd.f32 %v5379_v38, %v5356_v44  ;;  %v5427_v23 = vpop.f32.mrf.mxu2  ;;  %7188 = vmatpush.msrb.mxu2 %v11404_v35  ;;  %7210 = vmatpush.msrb.mxu3 %v11382_v22  ;;  %v12629_v35 = vld [vmem:[#allocation108_spill] sm:$0xff] }
 0x235   :  { %10093 = vset.pattern.permute.xlu2 %v12369_v52  ;;  %v5449_v24 = vpop.f32.mrf.mxu3 }
 0x236   :  { %v5404_v36 = vadd.f32 %v5403_v30, %v5380_v16  ;;  %7538 = vperm.xlu2 %10093, %v5152_v63   ;;  %6946 = vmatmul.f32.vlgmr.msrb.gmra.mxu0 %v12627_v0 }
 0x237   :  { %6972 = vmatmul.f32.vlgmr.msrb.gmra.mxu1 %v12628_v21  ;;  %7139 = vmatpush.msrb.mxu0 %v11393_v34 }
 0x238   :  { %v5428_v6 = vadd.f32 %v5427_v23, %v5404_v36  ;;  %10099 = vset.pattern.permute.xlu0 %v12373_v45  ;;  %7162 = vmatpush.msrb.mxu1 %v11382_v22 }
 0x23a   :  { %v5450_v19 = vadd.f32 %v5449_v24, %v5428_v6  ;;  %7092 = vmatmul.f32.vlgmr.msra.gmra.mxu2 %v12629_v35 }
 0x23b   :  { %v5478_v37 = vpop.f32.mrf.mxu0  ;;  %10097 = vset.pattern.permute.xlu1 %v12369_v52  ;;  %7118 = vmatmul.f32.vlgmr.msra.gmra.mxu3 %v12630_v28  ;;  %v5504_v13 = vpop.f32.mrf.mxu1 }
 0x23c   :  { %7542 = vperm.xlu1 %10097, %v5301_v9   ;;  %7347 = vperm.xlu0 %10099, %v5450_v19   ;;  %v5528_v61 = vpop.f32.mrf.mxu2  ;;  %v5505_v2 = vadd.f32 %v5504_v13, %v5478_v37 }
 0x23d   :  { %v5552_v58 = vpop.f32.mrf.mxu3 }
 0x23e   :  { %10096 = vset.pattern.permute.xlu2 %v12371_v7  ;;  %7044 = vmatmul.f32.vlgmr.msra.gmra.mxu0 %v12628_v21  ;;  %v5529_v34 = vadd.f32 %v5528_v61, %v5505_v2 }
 0x23f   :  { %7442 = vperm.xlu2 %10096, %v5301_v9   ;;  %7066 = vmatmul.f32.vlgmr.msra.gmra.mxu1 %v12628_v21 }
 0x240   :  { %v5553_v22 = vadd.f32 %v5552_v58, %v5529_v34 }
 0x242   :  { %7190 = vmatmul.f32.vlgmr.msrb.gmra.mxu2 %v12630_v28 }
 0x243   :  { %v5576_v41 = vpop.f32.mrf.mxu0  ;;  %7212 = vmatmul.f32.vlgmr.msrb.gmra.mxu3 %v12630_v28  ;;  %v5598_v51 = vpop.f32.mrf.mxu1 }
 0x244   :  { %v5577_v27 = vadd.f32 %v5576_v41, %v5553_v22  ;;  %10100 = vset.pattern.permute.xlu1 %v12371_v7  ;;  %v5627_v40 = vpop.f32.mrf.mxu2  ;;  %10104 = vset.pattern.permute.xlu0 %v12371_v7 }
 0x245   :  { %7446 = vperm.xlu1 %10100, %v5450_v19   ;;  %v5653_v63 = vpop.f32.mrf.mxu3 }
 0x246   :  { %v5599_v18 = vadd.f32 %v5598_v51, %v5577_v27  ;;  %7142 = vmatmul.f32.vlgmr.msrb.gmra.mxu0 %v12631_v59  ;;  %v5654_v33 = vadd.f32 %v5653_v63, %v5627_v40  ;;  %v68_v51 = vld [vmem:[%s12184_s4] sm:$0xf] }
 0x247   :  { %10098 = vset.pattern.permute.xlu2 %v12375_v47  ;;  %7166 = vmatmul.f32.vlgmr.msrb.gmra.mxu1 %v12632_v31  ;;  %v7637_v63 = vsel %vm82_vm0, %v68_v51, 0 }
 0x248   :  { %7233 = vperm.xlu2 %10098, %v5450_v19   ;;  %7450 = vperm.xlu0 %10104, %v5599_v18  }
 0x24b   :  { %v5677_v43 = vpop.f32.mrf.mxu0  ;;  %v5701_v32 = vpop.f32.mrf.mxu1 }
 0x24c   :  { %v5678_v17 = vadd.f32 %v5677_v43, %v5654_v33  ;;  %v5725_v25 = vpop.f32.mrf.mxu2  ;;  %v11615_v33 = vand.u32 4294901760, %v7637_v63 }
 0x24d   :  { %10102 = vset.pattern.permute.xlu1 %v12375_v47  ;;  %v5747_v3 = vpop.f32.mrf.mxu3 }
 0x24e   :  { %v5702_v5 = vadd.f32 %v5701_v32, %v5678_v17  ;;  %7238 = vperm.xlu1 %10102, %v5599_v18   ;;  %v11620_v32 = vsub.f32 %v7637_v63, %v11615_v33  ;;  %7731 = vmatpush.msra.mxu3 %v11615_v33  ;;  %v76_v63 = vld [vmem:[%s12185_s0] sm:$0xf] }
 0x24f   :  { %7655 = vmatpush.msra.mxu0 %v11615_v33 }
 0x250   :  { %v5726_v49 = vadd.f32 %v5725_v25, %v5702_v5  ;;  %10101 = vset.pattern.permute.xlu2 %v12369_v52  ;;  %10109 = vset.pattern.permute.xlu0 %v12369_v52 }
 0x251   :  { %7546 = vperm.xlu2 %10101, %v5450_v19   ;;  %7708 = vmatpush.msra.mxu2 %v11620_v32 }
 0x252   :  { %v5748_v42 = vadd.f32 %v5747_v3, %v5726_v49  ;;  %v11626_v3 = vand.u32 4294901760, %v11620_v32 }
 0x253   :  { %v5776_v12 = vpop.f32.mrf.mxu0  ;;  %v5802_v54 = vpop.f32.mrf.mxu1 }
 0x254   :  { %v5826_v9 = vpop.f32.mrf.mxu2  ;;  %7554 = vperm.xlu0 %10109, %v5748_v42   ;;  %v5803_v46 = vadd.f32 %v5802_v54, %v5776_v12  ;;  %v7683_v5 = vsub.f32 %v11620_v32, %v11626_v3  ;;  %7757 = vmatpush.msrb.mxu0 %v11626_v3 }
 0x255   :  { %v5850_v11 = vpop.f32.mrf.mxu3 }
 0x256   :  { %10105 = vset.pattern.permute.xlu1 %v12369_v52  ;;  %v5827_v44 = vadd.f32 %v5826_v9, %v5803_v46  ;;  %v11634_v9 = vand.u32 4294901760, %v7683_v5  ;;  %v70_v5 = vld [vmem:[%s12184_s4 + $0x8] sm:$0xf] }
 0x257   :  { %7550 = vperm.xlu1 %10105, %v5599_v18  }
 0x258   :  { %v5851_v30 = vadd.f32 %v5850_v11, %v5827_v44  ;;  %7685 = vmatpush.msra.mxu1 %v11634_v9 }
 0x259   :  { %10103 = vset.pattern.permute.xlu2 %v12373_v45 }
 0x25a   :  { %7351 = vperm.xlu2 %10103, %v5599_v18   ;;  %7779 = vmatpush.msrb.mxu1 %v11615_v33 }
 0x25b   :  { %v5874_v26 = vpop.f32.mrf.mxu0  ;;  %v5896_v38 = vpop.f32.mrf.mxu1 }
 0x25c   :  { %v5925_v39 = vpop.f32.mrf.mxu2  ;;  %10114 = vset.pattern.permute.xlu0 %v12375_v47  ;;  %v5875_v24 = vadd.f32 %v5874_v26, %v5851_v30  ;;  %v69_v26 = vld [vmem:[%s12184_s4 + $0x4] sm:$0xf] }
 0x25d   :  { %v5951_v16 = vpop.f32.mrf.mxu3 }
 0x25e   :  { %v5952_v23 = vadd.f32 %v5951_v16, %v5925_v39  ;;  %v5897_v37 = vadd.f32 %v5896_v38, %v5875_v24  ;;  %v7789_v39 = vsel %vm82_vm0, %v69_v26, 0 }
 0x25f   :  { %10107 = vset.pattern.permute.xlu1 %v12373_v45  ;;  %v11646_v16 = vand.u32 4294901760, %v7789_v39 }
 0x260   :  { %7355 = vperm.xlu1 %10107, %v5748_v42  }
 0x261   :  { %v11652_v24 = vsub.f32 %v7789_v39, %v11646_v16  ;;  %7807 = vmatpush.msrb.mxu2 %v11646_v16 }
 0x262   :  { %10106 = vset.pattern.permute.xlu2 %v12375_v47 }
 0x263   :  { %v5975_v36 = vpop.f32.mrf.mxu0  ;;  %7243 = vperm.xlu2 %10106, %v5748_v42   ;;  %v5999_v21 = vpop.f32.mrf.mxu1 }
 0x264   :  { %v5976_v0 = vadd.f32 %v5975_v36, %v5952_v23  ;;  %v6023_v6 = vpop.f32.mrf.mxu2 }
 0x265   :  { %v6045_v19 = vpop.f32.mrf.mxu3 }
 0x266   :  { %v6000_v35 = vadd.f32 %v5999_v21, %v5976_v0 }
 0x268   :  { %v6024_v28 = vadd.f32 %v6023_v6, %v6000_v35  ;;  %10110 = vset.pattern.permute.xlu1 %v12375_v47 }
 0x269   :  { %7248 = vperm.xlu1 %10110, %v5897_v37  }
 0x26a   :  { %v11604_v13 = vadd.f32 %v6045_v19, %v6024_v28  ;;  %v11658_v19 = vand.u32 4294901760, %v11652_v24 }
 0x26b   :  { %v6071_v61 = vpop.f32.mrf.mxu0  ;;  %10108 = vset.pattern.permute.xlu2 %v12371_v7  ;;  %v6097_v2 = vpop.f32.mrf.mxu1 }
 0x26c   :  { %7454 = vperm.xlu2 %10108, %v5748_v42   ;;  %v6121_v58 = vpop.f32.mrf.mxu2  ;;  %7253 = vperm.xlu0 %10114, %v11604_v13   ;;  %v6098_v34 = vadd.f32 %v6097_v2, %v6071_v61  ;;  %v7835_v28 = vsub.f32 %v11652_v24, %v11658_v19 }
 0x26d   :  { %v6145_v22 = vpop.f32.mrf.mxu3 }
 0x26e   :  { %v6122_v41 = vadd.f32 %v6121_v58, %v6098_v34  ;;  %v11664_v2 = vand.u32 4294901760, %v7835_v28 }
 0x270   :  { %v6146_v27 = vadd.f32 %v6145_v22, %v6122_v41  ;;  %v77_v22 = vld [vmem:[%s12185_s0 + $0x4] sm:$0xf]  ;;  %7837 = vmatpush.msrb.mxu3 %v11664_v2 }
 0x271   :  { %10112 = vset.pattern.permute.xlu1 %v12371_v7  ;;  %v7566_v26 = vrot.slane %v77_v22, 2 }
 0x272   :  { %7458 = vperm.xlu1 %10112, %v5897_v37  }
 0x273   :  { %v6169_v40 = vpop.f32.mrf.mxu0  ;;  %v6191_v59 = vpop.f32.mrf.mxu1 }
 0x274   :  { %v6170_v18 = vadd.f32 %v6169_v40, %v6146_v27  ;;  %10111 = vset.pattern.permute.xlu2 %v12373_v45  ;;  %10119 = vset.pattern.permute.xlu0 %v12373_v45  ;;  %v6217_v31 = vpop.f32.mrf.mxu2 }
 0x275   :  { %7359 = vperm.xlu2 %10111, %v5897_v37   ;;  %v6243_v43 = vpop.f32.mrf.mxu3 }
 0x276   :  { %v11617_v17 = vadd.f32 %v6191_v59, %v6170_v18  ;;  %v6244_v25 = vadd.f32 %v6243_v43, %v6217_v31  ;;  %v7258_v18 = vrot.slane %v77_v22, 7  ;;  %v7366_v31 = vrot.slane %v76_v63, 1 }
 0x277   :  { %v7465_v43 = vrot.slane %v76_v63, 2 }
 0x278   :  { %7386 = vperm.xlu0 %10119, %v11617_v17  }
 0x27a   :  { %10115 = vset.pattern.permute.xlu1 %v12373_v45 }
 0x27b   :  { %7363 = vperm.xlu1 %10115, %v11604_v13   ;;  %v6267_v49 = vpop.f32.mrf.mxu0  ;;  %v6291_v12 = vpop.f32.mrf.mxu1 }
 0x27c   :  { %v6268_v42 = vadd.f32 %v6267_v49, %v6244_v25  ;;  %v6315_v54 = vpop.f32.mrf.mxu2  ;;  %v7466_v25 = vrot.slane %v77_v22, 1 }
 0x27d   :  { %10113 = vset.pattern.permute.xlu2 %v12369_v52  ;;  %v6337_v11 = vpop.f32.mrf.mxu3 }
 0x27e   :  { %7558 = vperm.xlu2 %10113, %v5897_v37   ;;  %v11637_v46 = vpop.permute.xlu2 %7223  ;;  %v6292_v44 = vadd.f32 %v6291_v12, %v6268_v42  ;;  %v11685_v42 = vsel %vm7259_vm2, %v7258_v18, %v76_v63  ;;  %v7941_v12 = vsel %vm82_vm0, %v70_v5, 0 }
 0x27f   :  { %v11703_v28 = vand.u32 4294901760, %v7941_v12  ;;  %v7263_v18 = vmul.f32 %v11685_v42, %v11637_v46 }
 0x280   :  { %v6316_v38 = vadd.f32 %v6315_v54, %v6292_v44  ;;  %10124 = vset.pattern.permute.xlu0 %v12371_v7  ;;  %v11689_v54 = vsel %vm7259_vm2, %v77_v22, %v7366_v31  ;;  %v7565_v44 = vrot.slane %v76_v63, 3 }
 0x282   :  { %v11648_v30 = vadd.f32 %v6337_v11, %v6316_v38  ;;  %v11692_v11 = vsel %vm7259_vm2, %v7466_v25, %v7465_v43 }
 0x283   :  { %10117 = vset.pattern.permute.xlu1 %v12369_v52  ;;  %v6363_v23 = vpop.f32.mrf.mxu0  ;;  %v6389_v36 = vpop.f32.mrf.mxu1 }
 0x284   :  { %7562 = vperm.xlu1 %10117, %v11604_v13   ;;  %v6413_v0 = vpop.f32.mrf.mxu2  ;;  %7490 = vperm.xlu0 %10124, %v11648_v30   ;;  %v6390_v21 = vadd.f32 %v6389_v36, %v6363_v23 }
 0x285   :  { %v6437_v6 = vpop.f32.mrf.mxu3 }
 0x286   :  { %10116 = vset.pattern.permute.xlu2 %v12371_v7  ;;  %v6414_v37 = vadd.f32 %v6413_v0, %v6390_v21 }
 0x287   :  { %7462 = vperm.xlu2 %10116, %v11604_v13   ;;  %v7340_v35 = vpop.permute.xlu2 %7339 }
 0x288   :  { %v6438_v61 = vadd.f32 %v6437_v6, %v6414_v37 }
 0x28a   :  { %v7435_v58 = vpop.permute.xlu1 %7434  ;;  %v7219_v34 = vpop.permute.xlu0 %7218 }
 0x28b   :  { %v6461_v41 = vpop.f32.mrf.mxu0  ;;  %v6483_v27 = vpop.f32.mrf.mxu1  ;;  %v7262_v23 = vmul.f32 %v11685_v42, %v7219_v34  ;;  %v11708_v34 = vsel %vm7259_vm2, %v7566_v26, %v7565_v44 }
 0x28c   :  { %10120 = vset.pattern.permute.xlu1 %v12371_v7  ;;  %v6462_v13 = vadd.f32 %v6461_v41, %v6438_v61  ;;  %v6509_v51 = vpop.f32.mrf.mxu2  ;;  %10129 = vset.pattern.permute.xlu0 %v12369_v52  ;;  %v7469_v61 = vmul.f32 %v11692_v11, %v7435_v58  ;;  %v7370_v41 = vmul.f32 %v11689_v54, %v7340_v35  ;;  %v71_v35 = vld [vmem:[%s12184_s4 + $0xc] sm:$0xf] }
 0x28d   :  { %7486 = vperm.xlu1 %10120, %v11617_v17   ;;  %v6535_v40 = vpop.f32.mrf.mxu3  ;;  %v11718_v58 = vsub.f32 %v7941_v12, %v11703_v28  ;;  %v8093_v46 = vsel %vm82_vm0, %v71_v35, 0 }
 0x28e   :  { %v11676_v59 = vadd.f32 %v6483_v27, %v6462_v13  ;;  %v7378_v43 = vadd.f32 %v7370_v41, %v7263_v18  ;;  %v11739_v18 = vand.u32 4294901760, %v8093_v46 }
 0x28f   :  { %10118 = vset.pattern.permute.xlu2 %v12375_v47 }
 0x290   :  { %7280 = vperm.xlu2 %10118, %v11617_v17   ;;  %v7539_v49 = vpop.permute.xlu2 %7538  ;;  %7594 = vperm.xlu0 %10129, %v11676_v59  }
 0x293   :  { %v7535_v38 = vpop.permute.xlu1 %7534  ;;  %v7336_v39 = vpop.permute.xlu0 %7335 }
 0x294   :  { %v7369_v36 = vmul.f32 %v11689_v54, %v7336_v39  ;;  %v6559_v0 = vpop.f32.mrf.mxu0  ;;  %v11696_v21 = vpop.f32.mrf.mxu1  ;;  %v7569_v13 = vmul.f32 %v11708_v34, %v7535_v38  ;;  %v11730_v39 = vand.u32 4294901760, %v11718_v58 }
 0x295   :  { %10122 = vset.pattern.permute.xlu1 %v12375_v47  ;;  %v11699_v6 = vpop.f32.mrf.mxu2  ;;  %v11701_v37 = vpop.f32.mrf.mxu3 }
 0x296   :  { %v7377_v22 = vadd.f32 %v7369_v36, %v7262_v23  ;;  %7285 = vperm.xlu1 %10122, %v11648_v30   ;;  %v6536_v23 = vadd.f32 %v6535_v40, %v6509_v51  ;;  %v7987_v40 = vsub.f32 %v11718_v58, %v11730_v39 }
 0x298   :  { %v7477_v27 = vadd.f32 %v7469_v61, %v7377_v22  ;;  %10121 = vset.pattern.permute.xlu2 %v12369_v52  ;;  %10134 = vset.pattern.permute.xlu0 %v12375_v47  ;;  %v7570_v22 = vmul.f32 %v11708_v34, %v7539_v49  ;;  %v6560_v49 = vadd.f32 %v6559_v0, %v6536_v23 }
 0x299   :  { %7586 = vperm.xlu2 %10121, %v11617_v17   ;;  %v11715_v63 = vpop.permute.xlu2 %7442 }
 0x29a   :  { %v7577_v31 = vadd.f32 %v7569_v13, %v7477_v27 }
 0x29c   :  { %v7634_v25 = vsel %vm78_vm1, %v7577_v31, 0  ;;  %v7439_v5 = vpop.permute.xlu1 %7438  ;;  %v6655_v44 = vpop.f32.mrf.mxu0 }
 0x29d   :  { %v11726_v26 = vand.u32 4294901760, %v7634_v25  ;;  %v7470_v17 = vmul.f32 %v11692_v11, %v7439_v5  ;;  %v6681_v38 = vpop.f32.mrf.mxu1  ;;  %v6705_v12 = vpop.f32.mrf.mxu2 }
 0x29e   :  { %10125 = vset.pattern.permute.xlu1 %v12369_v52  ;;  %v6682_v36 = vadd.f32 %v6681_v38, %v6655_v44  ;;  %v6729_v61 = vpop.f32.mrf.mxu3 }
 0x29f   :  { %v7657_v41 = vsub.f32 %v7634_v25, %v11726_v26  ;;  %v7478_v13 = vadd.f32 %v7470_v17, %v7378_v43  ;;  %7590 = vperm.xlu1 %10125, %v11648_v30   ;;  %7687 = vmatmul.f32.vlgmr.msra.gmra.mxu1 %v11726_v26 }
 0x2a0   :  { %v6706_v27 = vadd.f32 %v6705_v12, %v6682_v36  ;;  %7883 = vmatpush.msra.mxu1 %v11646_v16  ;;  %v11753_v12 = vsub.f32 %v8093_v46, %v11739_v18 }
 0x2a1   :  { %v7578_v31 = vadd.f32 %v7570_v22, %v7478_v13  ;;  %10123 = vset.pattern.permute.xlu2 %v12373_v45  ;;  %7711 = vmatmul.f32.vlgmr.msra.gmra.mxu2 %v7657_v41  ;;  %v7658_v51 = vand.u32 4294901760, %v7657_v41 }
 0x2a2   :  { %7390 = vperm.xlu2 %10123, %v11648_v30   ;;  %v11745_v35 = vpop.permute.xlu2 %7233  ;;  %v6730_v43 = vadd.f32 %v6729_v61, %v6706_v27  ;;  %7909 = vmatpush.msra.mxu2 %v11658_v19  ;;  %v7229_v17 = vpop.permute.xlu0 %7228  ;;  %v11755_v61 = vand.u32 4294901760, %v7987_v40 }
 0x2a3   :  { %v7786_v25 = vsel %vm78_vm1, %v7578_v31, 0  ;;  %7735 = vmatmul.f32.vlgmr.msra.gmra.mxu3 %v7658_v51  ;;  %v7659_v5 = vsub.f32 %v7657_v41, %v7658_v51  ;;  %v6584_v41 = vadd.f32 %v11696_v21, %v6560_v49  ;;  %v72_v51 = vld [vmem:[%s12184_s4 + $0x10] sm:$0xf]  ;;  %v11772_v21 = vand.u32 4294901760, %v11753_v12 }
 0x2a4   :  { %v11749_v44 = vand.u32 4294901760, %v7786_v25  ;;  %v6753_v38 = vpop.f32.mrf.mxu0  ;;  %7931 = vmatpush.msra.mxu3 %v11646_v16  ;;  %v7264_v49 = vmul.f32 %v11685_v42, %v7229_v17 }
 0x2a5   :  { %v7344_v0 = vpop.permute.xlu1 %7343  ;;  %v7660_v30 = vand.u32 4294901760, %v7659_v5  ;;  %v6754_v23 = vadd.f32 %v6753_v38, %v6730_v43  ;;  %v6775_v36 = vpop.f32.mrf.mxu1  ;;  %v6608_v5 = vadd.f32 %v11699_v6, %v6584_v41  ;;  %v8245_v38 = vsel %vm82_vm0, %v72_v51, 0 }
 0x2a6   :  { %v11758_v22 = vsub.f32 %v7786_v25, %v11749_v44  ;;  %v6801_v13 = vpop.f32.mrf.mxu2  ;;  %v6827_v27 = vpop.f32.mrf.mxu3  ;;  %v7371_v31 = vmul.f32 %v11689_v54, %v7344_v0  ;;  %v8139_v6 = vsub.f32 %v11753_v12, %v11772_v21 }
 0x2a7   :  { %10127 = vset.pattern.permute.xlu1 %v12373_v45  ;;  %7661 = vmatmul.f32.vlgmr.msra.gmra.mxu0 %v7660_v30  ;;  %v11763_v46 = vadd.f32 %v6775_v36, %v6754_v23  ;;  %v6828_v43 = vadd.f32 %v6827_v27, %v6801_v13  ;;  %v7471_v36 = vmul.f32 %v11692_v11, %v11715_v63  ;;  %v11791_v27 = vand.u32 4294901760, %v8245_v38 }
 0x2a8   :  { %v7810_v40 = vand.u32 4294901760, %v11758_v22  ;;  %7781 = vmatmul.f32.vlgmr.msrb.gmra.mxu1 %v11726_v26  ;;  %7394 = vperm.xlu1 %10127, %v11676_v59   ;;  %v7379_v0 = vadd.f32 %v7371_v31, %v7264_v49  ;;  %v11794_v31 = vadd.f32 %v11701_v37, %v6608_v5 }
 0x2a9   :  { %7860 = vmatpush.msra.mxu0 %v11652_v24  ;;  %7989 = vmatpush.msrb.mxu1 %v11755_v61 }
 0x2aa   :  { %v7811_v25 = vsub.f32 %v11758_v22, %v7810_v40  ;;  %10126 = vset.pattern.permute.xlu2 %v12375_v47  ;;  %7300 = vperm.xlu0 %10134, %v11763_v46   ;;  %v7479_v49 = vadd.f32 %v7471_v36, %v7379_v0  ;;  %v11805_v0 = vsub.f32 %v8245_v38, %v11791_v27 }
 0x2ab   :  { %7290 = vperm.xlu2 %10126, %v11676_v59   ;;  %v11783_v30 = vpop.permute.xlu2 %7546  ;;  %7839 = vmatmul.f32.vlgmr.msrb.gmra.mxu3 %v11749_v44 }
 0x2ac   :  { %v7812_v17 = vand.u32 4294901760, %v7811_v25  ;;  %v6851_v23 = vpop.f32.mrf.mxu0  ;;  %8035 = vmatpush.msrb.mxu3 %v11703_v28 }
 0x2ad   :  { %v6852_v41 = vadd.f32 %v6851_v23, %v6828_v43  ;;  %v6875_v13 = vpop.f32.mrf.mxu1  ;;  %v11800_v43 = vand.u32 4294901760, %v8139_v6  ;;  %v12634_v6 = vmov 2  }
 0x2ae   :  { %v7543_v51 = vpop.permute.xlu1 %7542  ;;  %7813 = vmatmul.f32.vlgmr.msrb.gmra.mxu2 %v7812_v17  ;;  %v6899_v7 = vpop.f32.mrf.mxu2 }
 0x2af   :  { %v7571_v25 = vmul.f32 %v11708_v34, %v7543_v51  ;;  %7759 = vmatmul.f32.vlgmr.msrb.gmra.mxu0 %v11726_v26  ;;  %v6876_v52 = vadd.f32 %v6875_v13, %v6852_v41  ;;  %8012 = vmatpush.msrb.mxu2 %v11718_v58  ;;  %v7348_v45 = vpop.permute.xlu0 %7347  ;;  %v6921_v63 = vpop.f32.mrf.mxu3  ;;  %v12633_v26 = vmov 1   ;;  %v7265_v41 = vmul.f32 %v11685_v42, %v11745_v35 }
 0x2b0   :  { %7887 = vmatmul.f32.vlgmr.msra.gmra.mxu1 %v7810_v40  ;;  %10130 = vset.pattern.permute.xlu1 %v12375_v47  ;;  %v73_v40 = vld [vmem:[%s12184_s4 + $0x14] sm:$0xf]  ;;  %v7372_v23 = vmul.f32 %v11689_v54, %v7348_v45  ;;  %v11828_v45 = vand.u32 4294901760, %v11805_v0 }
 0x2b1   :  { %v7579_v37 = vadd.f32 %v7571_v25, %v7479_v49  ;;  %7295 = vperm.xlu1 %10130, %v11794_v31   ;;  %v6900_v5 = vadd.f32 %v6899_v7, %v6876_v52  ;;  %7959 = vmatpush.msrb.mxu0 %v11703_v28  ;;  %v8397_v51 = vsel %vm82_vm0, %v73_v40, 0 }
 0x2b2   :  { %8083 = vmatpush.msra.mxu1 %v11703_v28  ;;  %10139 = vset.pattern.permute.xlu0 %v12633_v26  ;;  %v7380_v25 = vadd.f32 %v7372_v23, %v7265_v41 }
 0x2b3   :  { %v7938_v17 = vsel %vm78_vm1, %v7579_v37, 0  ;;  %10128 = vset.pattern.permute.xlu2 %v12634_v6  ;;  %7933 = vmatmul.f32.vlgmr.msra.gmra.mxu3 %v11749_v44  ;;  %v11816_v7 = vadd.f32 %v6921_v63, %v6900_v5 }
 0x2b4   :  { %v11818_v52 = vand.u32 4294901760, %v7938_v17  ;;  %7494 = vperm.xlu2 %10128, %v11676_v59   ;;  %v11821_v38 = vpop.permute.xlu2 %7351  ;;  %8141 = vmatpush.msra.mxu3 %v11800_v43  ;;  %v6947_v36 = vpop.f32.mrf.mxu0 }
 0x2b5   :  { %7406 = vperm.xlu0 %10139, %v11816_v7   ;;  %v6973_v13 = vpop.f32.mrf.mxu1 }
 0x2b6   :  { %v7961_v49 = vsub.f32 %v7938_v17, %v11818_v52  ;;  %7911 = vmatmul.f32.vlgmr.msra.gmra.mxu2 %v11749_v44  ;;  %v6974_v59 = vadd.f32 %v6973_v13, %v6947_v36  ;;  %v6997_v35 = vpop.f32.mrf.mxu2  ;;  %v11838_v17 = vand.u32 4294901760, %v8397_v51  ;;  %v8291_v44 = vsub.f32 %v11805_v0, %v11828_v45 }
 0x2b7   :  { %v7447_v63 = vpop.permute.xlu1 %7446  ;;  %7863 = vmatmul.f32.vlgmr.msra.gmra.mxu0 %v11758_v22  ;;  %8111 = vmatpush.msra.mxu2 %v11739_v18  ;;  %v7021_v47 = vpop.f32.mrf.mxu3  ;;  %v7572_v22 = vmul.f32 %v11708_v34, %v11783_v30 }
 0x2b8   :  { %v7962_v37 = vand.u32 4294901760, %v7961_v49  ;;  %v7472_v5 = vmul.f32 %v11692_v11, %v7447_v63  ;;  %7991 = vmatmul.f32.vlgmr.msrb.gmra.mxu1 %v11818_v52  ;;  %8061 = vmatpush.msra.mxu0 %v11730_v39  ;;  %v6998_v40 = vadd.f32 %v6997_v35, %v6974_v59  ;;  %v11850_v35 = vsub.f32 %v8397_v51, %v11838_v17 }
 0x2b9   :  { %10132 = vset.pattern.permute.xlu1 %v12634_v6  ;;  %8187 = vmatpush.msrb.mxu1 %v11739_v18  ;;  %v11855_v30 = vand.u32 4294901760, %v8291_v44 }
 0x2ba   :  { %v7963_v23 = vsub.f32 %v7961_v49, %v7962_v37  ;;  %v7480_v36 = vadd.f32 %v7472_v5, %v7380_v25  ;;  %7498 = vperm.xlu1 %10132, %v11794_v31   ;;  %v7022_v41 = vadd.f32 %v7021_v47, %v6998_v40  ;;  %v11867_v44 = vand.u32 4294901760, %v11850_v35 }
 0x2bb   :  { %8039 = vmatmul.f32.vlgmr.msrb.gmra.mxu3 %v7962_v37 }
 0x2bc   :  { %v7964_v13 = vand.u32 4294901760, %v7963_v23  ;;  %v7580_v59 = vadd.f32 %v7572_v22, %v7480_v36  ;;  %10131 = vset.pattern.permute.xlu2 %v12633_v26  ;;  %8235 = vmatpush.msrb.mxu3 %v11739_v18  ;;  %v7045_v63 = vpop.f32.mrf.mxu0 }
 0x2bd   :  { %7398 = vperm.xlu2 %10131, %v11794_v31   ;;  %v11853_v53 = vpop.permute.xlu2 %7243  ;;  %v7046_v25 = vadd.f32 %v7045_v63, %v7022_v41  ;;  %v7067_v5 = vpop.f32.mrf.mxu1  ;;  %10144 = vset.pattern.permute.xlu0 %v12634_v6  ;;  %v74_v41 = vld [vmem:[%s12184_s4 + $0x18] sm:$0xf]  ;;  %v8443_v63 = vsub.f32 %v11850_v35, %v11867_v44 }
 0x2be   :  { %v8090_v47 = vsel %vm78_vm1, %v7580_v59, 0  ;;  %8015 = vmatmul.f32.vlgmr.msrb.gmra.mxu2 %v7961_v49  ;;  %v7093_v22 = vpop.f32.mrf.mxu2  ;;  %v7373_v59 = vmul.f32 %v11689_v54, %v11821_v38 }
 0x2bf   :  { %v11859_v37 = vand.u32 4294901760, %v8090_v47  ;;  %7965 = vmatmul.f32.vlgmr.msrb.gmra.mxu0 %v7964_v13  ;;  %8213 = vmatpush.msrb.mxu2 %v11772_v21  ;;  %v11862_v51 = vadd.f32 %v7067_v5, %v7046_v25  ;;  %v7119_v36 = vpop.f32.mrf.mxu3  ;;  %v8549_v5 = vsel %vm82_vm0, %v74_v41, 0 }
 0x2c0   :  { %8085 = vmatmul.f32.vlgmr.msra.gmra.mxu1 %v11818_v52  ;;  %v7239_v40 = vpop.permute.xlu1 %7238  ;;  %8164 = vmatpush.msrb.mxu0 %v11753_v12  ;;  %v7120_v25 = vadd.f32 %v7119_v36, %v7093_v22  ;;  %v11888_v4 = vand.u32 4294901760, %v8549_v5  ;;  %v11892_v22 = vand.u32 4294901760, %v8443_v63 }
 0x2c1   :  { %v8113_v23 = vsub.f32 %v8090_v47, %v11859_v37  ;;  %8293 = vmatpush.msra.mxu1 %v11855_v30  ;;  %7510 = vperm.xlu0 %10144, %v11862_v51   ;;  %v7266_v49 = vmul.f32 %v11685_v42, %v7239_v40  ;;  %v7451_v40 = vpop.permute.xlu0 %7450 }
 0x2c2   :  { %10135 = vset.pattern.permute.xlu1 %v12633_v26  ;;  %v7473_v56 = vmul.f32 %v11692_v11, %v7451_v40 }
 0x2c3   :  { %v8114_v13 = vand.u32 4294901760, %v8113_v23  ;;  %7402 = vperm.xlu1 %10135, %v11763_v46   ;;  %8143 = vmatmul.f32.vlgmr.msra.gmra.mxu3 %v11859_v37  ;;  %v7381_v8 = vadd.f32 %v7373_v59, %v7266_v49 }
 0x2c4   :  { %8339 = vmatpush.msra.mxu3 %v11791_v27  ;;  %v7143_v38 = vpop.f32.mrf.mxu0 }
 0x2c5   :  { %v8115_v47 = vsub.f32 %v8113_v23, %v8114_v13  ;;  %10133 = vset.pattern.permute.xlu2 %v12635_v60  ;;  %v7144_v36 = vadd.f32 %v7143_v38, %v7120_v25  ;;  %v7167_v41 = vpop.f32.mrf.mxu1  ;;  %v7267_v38 = vmul.f32 %v11685_v42, %v11853_v53 }
 0x2c6   :  { %7598 = vperm.xlu2 %10133, %v11794_v31   ;;  %v7455_v14 = vpop.permute.xlu2 %7454  ;;  %v7481_v31 = vadd.f32 %v7473_v56, %v7381_v8  ;;  %v7191_v59 = vpop.f32.mrf.mxu2 }
 0x2c7   :  { %8063 = vmatmul.f32.vlgmr.msra.gmra.mxu0 %v11818_v52  ;;  %v8116_v55 = vand.u32 4294901760, %v8115_v47  ;;  %v7168_v49 = vadd.f32 %v7167_v41, %v7144_v36 }
 0x2c8   :  { %8191 = vmatmul.f32.vlgmr.msrb.gmra.mxu1 %v8114_v13  ;;  %8263 = vmatpush.msra.mxu0 %v11791_v27  ;;  %v11901_v13 = vsub.f32 %v8549_v5, %v11888_v4 }
 0x2c9   :  { %v7551_v1 = vpop.permute.xlu1 %7550  ;;  %8117 = vmatmul.f32.vlgmr.msra.gmra.mxu2 %v8116_v55  ;;  %8387 = vmatpush.msrb.mxu1 %v11791_v27  ;;  %v7192_v56 = vadd.f32 %v7191_v59, %v7168_v49  ;;  %v7474_v49 = vmul.f32 %v11692_v11, %v7455_v14 }
 0x2ca   :  { %v7573_v52 = vmul.f32 %v11708_v34, %v7551_v1  ;;  %8316 = vmatpush.msra.mxu2 %v11805_v0  ;;  %10149 = vset.pattern.permute.xlu0 %v12635_v60  ;;  %v7213_v1 = vpop.f32.mrf.mxu3  ;;  %v11911_v5 = vand.u32 4294901760, %v11901_v13 }
 0x2cb   :  { %10137 = vset.pattern.permute.xlu1 %v12635_v60  ;;  %8237 = vmatmul.f32.vlgmr.msrb.gmra.mxu3 %v11859_v37  ;;  %v11907_v8 = vadd.f32 %v7213_v1, %v7192_v56 }
 0x2cc   :  { %v7581_v63 = vadd.f32 %v7573_v52, %v7481_v31  ;;  %7602 = vperm.xlu1 %10137, %v11763_v46   ;;  %8445 = vmatpush.msrb.mxu3 %v11892_v22  ;;  %v8595_v31 = vsub.f32 %v11901_v13, %v11911_v5  ;;  %v7555_v52 = vpop.permute.xlu0 %7554 }
 0x2cd   :  { %7614 = vperm.xlu0 %10149, %v11907_v8   ;;  %v7574_v1 = vmul.f32 %v11708_v34, %v7555_v52 }
 0x2ce   :  { %v8242_v55 = vsel %vm78_vm1, %v7581_v63, 0  ;;  %10136 = vset.pattern.permute.xlu2 %v12634_v6 }
 0x2cf   :  { %v8264_v25 = vand.u32 4294901760, %v8242_v55  ;;  %7502 = vperm.xlu2 %10136, %v11763_v46   ;;  %v7360_v47 = vpop.permute.xlu2 %7359  ;;  %8167 = vmatmul.f32.vlgmr.msrb.gmra.mxu0 %v8113_v23  ;;  %v75_v46 = vld [vmem:[%s12184_s4 + $0x1c] sm:$0xf] }
 0x2d0   :  { %8365 = vmatpush.msrb.mxu0 %v11828_v45 }
 0x2d1   :  { %v8265_v40 = vsub.f32 %v8242_v55, %v8264_v25  ;;  %8215 = vmatmul.f32.vlgmr.msrb.gmra.mxu2 %v11859_v37  ;;  %8295 = vmatmul.f32.vlgmr.msra.gmra.mxu1 %v8264_v25  ;;  %v8701_v37 = vsel %vm82_vm0, %v75_v46, 0  ;;  %v11935_v46 = vand.u32 4294901760, %v8595_v31 }
 0x2d2   :  { %v7356_v36 = vpop.permute.xlu1 %7355  ;;  %8491 = vmatpush.msra.mxu1 %v11838_v17  ;;  %8415 = vmatpush.msrb.mxu2 %v11838_v17  ;;  %v11928_v53 = vand.u32 4294901760, %v8701_v37 }
 0x2d3   :  { %v8266_v23 = vand.u32 4294901760, %v8265_v40  ;;  %v7374_v41 = vmul.f32 %v11689_v54, %v7356_v36  ;;  %v12636_v36 = vmov 0  }
 0x2d4   :  { %10140 = vset.pattern.permute.xlu1 %v12634_v6  ;;  %v11939_v14 = vsub.f32 %v8701_v37, %v11928_v53 }
 0x2d5   :  { %v8267_v59 = vsub.f32 %v8265_v40, %v8266_v23  ;;  %v7382_v63 = vadd.f32 %v7374_v41, %v7267_v38  ;;  %7506 = vperm.xlu1 %10140, %v11816_v7   ;;  %8343 = vmatmul.f32.vlgmr.msra.gmra.mxu3 %v8266_v23 }
 0x2d6   :  { %8539 = vmatpush.msra.mxu3 %v11838_v17  ;;  %v11946_v52 = vand.u32 4294901760, %v11939_v14 }
 0x2d7   :  { %v8268_v56 = vand.u32 4294901760, %v8267_v59  ;;  %v7482_v55 = vadd.f32 %v7474_v49, %v7382_v63  ;;  %10138 = vset.pattern.permute.xlu2 %v12636_v36 }
 0x2d8   :  { %7305 = vperm.xlu2 %10138, %v11816_v7   ;;  %v7559_v50 = vpop.permute.xlu2 %7558  ;;  %v8747_v49 = vsub.f32 %v11939_v14, %v11946_v52 }
 0x2d9   :  { %v7582_v38 = vadd.f32 %v7574_v1, %v7482_v55  ;;  %8269 = vmatmul.f32.vlgmr.msra.gmra.mxu0 %v8268_v56  ;;  %8319 = vmatmul.f32.vlgmr.msra.gmra.mxu2 %v8265_v40  ;;  %v7375_v1 = vmul.f32 %v11689_v54, %v7360_v47 }
 0x2da   :  { %8389 = vmatmul.f32.vlgmr.msrb.gmra.mxu1 %v8264_v25  ;;  %8468 = vmatpush.msra.mxu0 %v11850_v35 }
 0x2db   :  { %v8394_v23 = vsel %vm78_vm1, %v7582_v38, 0  ;;  %v7249_v41 = vpop.permute.xlu1 %7248  ;;  %8517 = vmatpush.msra.mxu2 %v11867_v44  ;;  %8597 = vmatpush.msrb.mxu1 %v11935_v46 }
 0x2dc   :  { %v8416_v31 = vand.u32 4294901760, %v8394_v23  ;;  %v7268_v59 = vmul.f32 %v11685_v42, %v7249_v41 }
 0x2dd   :  { %10142 = vset.pattern.permute.xlu1 %v12636_v36 }
 0x2de   :  { %v8417_v37 = vsub.f32 %v8394_v23, %v8416_v31  ;;  %7310 = vperm.xlu1 %10142, %v11862_v51   ;;  %8447 = vmatmul.f32.vlgmr.msrb.gmra.mxu3 %v8416_v31  ;;  %v11959_v23 = vand.u32 4294901760, %v8747_v49  ;;  %v7383_v62 = vadd.f32 %v7375_v1, %v7268_v59 }
 0x2df   :  { %8643 = vmatpush.msrb.mxu3 %v11888_v4 }
 0x2e0   :  { %10141 = vset.pattern.permute.xlu2 %v12635_v60  ;;  %v8418_v40 = vand.u32 4294901760, %v8417_v37 }
 0x2e1   :  { %7606 = vperm.xlu2 %10141, %v11816_v7   ;;  %v7463_v63 = vpop.permute.xlu2 %7462  ;;  %8367 = vmatmul.f32.vlgmr.msrb.gmra.mxu0 %v8264_v25  ;;  %v7575_v7 = vmul.f32 %v11708_v34, %v7559_v50 }
 0x2e2   :  { %8495 = vmatmul.f32.vlgmr.msra.gmra.mxu1 %v8418_v40  ;;  %v8419_v56 = vsub.f32 %v8417_v37, %v8418_v40  ;;  %8567 = vmatpush.msrb.mxu0 %v11888_v4  ;;  %v7254_v40 = vpop.permute.xlu0 %7253  ;;  %v7476_v1 = vmul.f32 %v11692_v11, %v7463_v63 }
 0x2e3   :  { %8691 = vmatpush.msra.mxu1 %v11888_v4 }
 0x2e4   :  { %v7459_v55 = vpop.permute.xlu1 %7458  ;;  %v8420_v38 = vand.u32 4294901760, %v8419_v56 }
 0x2e5   :  { %v7475_v29 = vmul.f32 %v11692_v11, %v7459_v55 }
 0x2e6   :  { %10145 = vset.pattern.permute.xlu1 %v12635_v60  ;;  %8421 = vmatmul.f32.vlgmr.msrb.gmra.mxu2 %v8420_v38 }
 0x2e7   :  { %v7483_v25 = vadd.f32 %v7475_v29, %v7383_v62  ;;  %8541 = vmatmul.f32.vlgmr.msra.gmra.mxu3 %v8416_v31  ;;  %7610 = vperm.xlu1 %10145, %v11862_v51  }
 0x2e8   :  { %8620 = vmatpush.msrb.mxu2 %v11901_v13  ;;  %8749 = vmatpush.msra.mxu3 %v11959_v23 }
 0x2e9   :  { %v7583_v47 = vadd.f32 %v7575_v7, %v7483_v25  ;;  %10143 = vset.pattern.permute.xlu2 %v12633_v26  ;;  %8471 = vmatmul.f32.vlgmr.msra.gmra.mxu0 %v8417_v37 }
 0x2ea   :  { %7410 = vperm.xlu2 %10143, %v11862_v51   ;;  %v7281_v41 = vpop.permute.xlu2 %7280  ;;  %8669 = vmatpush.msra.mxu0 %v11911_v5  ;;  %v7269_v51 = vmul.f32 %v11685_v42, %v7254_v40 }
 0x2eb   :  { %v8546_v60 = vsel %vm78_vm1, %v7583_v47, 0  ;;  %v7318_v63 = vmul.f32 %v7281_v41, %v11685_v42 }
 0x2ec   :  { %v8568_v50 = vand.u32 4294901760, %v8546_v60 }
 0x2ed   :  { %v7364_v29 = vpop.permute.xlu1 %7363 }
 0x2ee   :  { %v8569_v62 = vsub.f32 %v8546_v60, %v8568_v50  ;;  %8519 = vmatmul.f32.vlgmr.msra.gmra.mxu2 %v8416_v31  ;;  %8599 = vmatmul.f32.vlgmr.msrb.gmra.mxu1 %v8568_v50  ;;  %v7376_v49 = vmul.f32 %v11689_v54, %v7364_v29 }
 0x2ef   :  { %10147 = vset.pattern.permute.xlu1 %v12633_v26  ;;  %8795 = vmatpush.msrb.mxu1 %v11928_v53 }
 0x2f0   :  { %v8570_v37 = vand.u32 4294901760, %v8569_v62  ;;  %7414 = vperm.xlu1 %10147, %v11907_v8   ;;  %8719 = vmatpush.msra.mxu2 %v11928_v53  ;;  %v7384_v31 = vadd.f32 %v7376_v49, %v7269_v51 }
 0x2f2   :  { %v8571_v59 = vsub.f32 %v8569_v62, %v8570_v37  ;;  %10146 = vset.pattern.permute.xlu2 %v12636_v36  ;;  %8647 = vmatmul.f32.vlgmr.msrb.gmra.mxu3 %v8570_v37  ;;  %v7484_v38 = vadd.f32 %v7476_v1, %v7384_v31  ;;  %v7387_v36 = vpop.permute.xlu0 %7386 }
 0x2f3   :  { %7315 = vperm.xlu2 %10146, %v11907_v8   ;;  %v7587_v56 = vpop.permute.xlu2 %7586  ;;  %8843 = vmatpush.msrb.mxu3 %v11928_v53  ;;  %v7417_v60 = vmul.f32 %v7387_v36, %v11689_v54 }
 0x2f4   :  { %v8572_v26 = vand.u32 4294901760, %v8571_v59  ;;  %v7617_v41 = vmul.f32 %v7587_v56, %v11708_v34 }
 0x2f5   :  { %v7425_v49 = vadd.f32 %v7417_v60, %v7318_v63 }
 0x2f6   :  { %v7563_v55 = vpop.permute.xlu1 %7562  ;;  %8573 = vmatmul.f32.vlgmr.msrb.gmra.mxu0 %v8572_v26  ;;  %8623 = vmatmul.f32.vlgmr.msrb.gmra.mxu2 %v8569_v62 }
 0x2f7   :  { %v7576_v7 = vmul.f32 %v11708_v34, %v7563_v55  ;;  %8693 = vmatmul.f32.vlgmr.msra.gmra.mxu1 %v8568_v50  ;;  %8772 = vmatpush.msrb.mxu0 %v11939_v14 }
 0x2f8   :  { %8915 = vmatpush.msra.mxu1 %v11634_v9  ;;  %8821 = vmatpush.msrb.mxu2 %v11946_v52 }
 0x2f9   :  { %v7584_v25 = vadd.f32 %v7576_v7, %v7484_v38 }
 0x2fb   :  { %v8698_v47 = vsel %vm78_vm1, %v7584_v25, 0  ;;  %10148 = vset.pattern.permute.xlu2 %v12634_v6  ;;  %v7491_v25 = vpop.permute.xlu0 %7490 }
 0x2fc   :  { %v8720_v29 = vand.u32 4294901760, %v8698_v47  ;;  %7514 = vperm.xlu2 %10148, %v11907_v8   ;;  %v7391_v62 = vpop.permute.xlu2 %7390 }
 0x2fd   :  { %v7418_v7 = vmul.f32 %v7391_v62, %v11689_v54 }
 0x2fe   :  { %v8721_v40 = vsub.f32 %v8698_v47, %v8720_v29  ;;  %8671 = vmatmul.f32.vlgmr.msra.gmra.mxu0 %v8568_v50  ;;  %8751 = vmatmul.f32.vlgmr.msra.gmra.mxu3 %v8720_v29 }
 0x2ff   :  { %v7487_v9 = vpop.permute.xlu1 %7486  ;;  %8961 = vmatpush.msra.mxu3 %v11615_v33  ;;  %8885 = vmatpush.msra.mxu0 %v11615_v33 }
 0x300   :  { %v8722_v37 = vand.u32 4294901760, %v8721_v40  ;;  %v7517_v6 = vmul.f32 %v7487_v9, %v11692_v11 }
 0x302   :  { %v8723_v51 = vsub.f32 %v8721_v40, %v8722_v37  ;;  %v7525_v59 = vadd.f32 %v7517_v6, %v7425_v49  ;;  %8799 = vmatmul.f32.vlgmr.msrb.gmra.mxu1 %v8722_v37 }
 0x303   :  { %9009 = vmatpush.msrb.mxu1 %v11615_v33 }
 0x304   :  { %v8724_v8 = vand.u32 4294901760, %v8723_v51  ;;  %v7625_v31 = vadd.f32 %v7617_v41, %v7525_v59  ;;  %v7595_v41 = vpop.permute.xlu0 %7594 }
 0x305   :  { %v7291_v1 = vpop.permute.xlu2 %7290 }
 0x306   :  { %v8867_v50 = vsel %vm78_vm1, %v7625_v31, 0  ;;  %8725 = vmatmul.f32.vlgmr.msra.gmra.mxu2 %v8724_v8  ;;  %8775 = vmatmul.f32.vlgmr.msrb.gmra.mxu0 %v8721_v40  ;;  %v7320_v37 = vmul.f32 %v7291_v1, %v11685_v42 }
 0x307   :  { %v8886_v26 = vand.u32 4294901760, %v8867_v50  ;;  %8845 = vmatmul.f32.vlgmr.msrb.gmra.mxu3 %v8720_v29  ;;  %8938 = vmatpush.msra.mxu2 %v11620_v32 }
 0x308   :  { %v7286_v55 = vpop.permute.xlu1 %7285  ;;  %8987 = vmatpush.msrb.mxu0 %v11626_v3  ;;  %9064 = vmatpush.msrb.mxu3 %v11664_v2  ;;  %v7518_v3 = vmul.f32 %v7491_v25, %v11692_v11 }
 0x309   :  { %v8887_v56 = vsub.f32 %v8867_v50, %v8886_v26  ;;  %v7319_v38 = vmul.f32 %v7286_v55, %v11685_v42  ;;  %v7619_v50 = vmul.f32 %v7595_v41, %v11708_v34 }
 0x30a   :  { %8917 = vmatmul.f32.vlgmr.msra.gmra.mxu1 %v8886_v26 }
 0x30b   :  { %v8888_v33 = vand.u32 4294901760, %v8887_v56  ;;  %9110 = vmatpush.msra.mxu1 %v11646_v16  ;;  %v7426_v47 = vadd.f32 %v7418_v7, %v7319_v38 }
 0x30d   :  { %v8889_v36 = vsub.f32 %v8887_v56, %v8888_v33  ;;  %v7526_v60 = vadd.f32 %v7518_v3, %v7426_v47 }
 0x30e   :  { %8823 = vmatmul.f32.vlgmr.msrb.gmra.mxu2 %v8720_v29  ;;  %v7495_v2 = vpop.permute.xlu2 %7494 }
 0x30f   :  { %8965 = vmatmul.f32.vlgmr.msra.gmra.mxu3 %v8888_v33  ;;  %v8890_v32 = vand.u32 4294901760, %v8889_v36  ;;  %9034 = vmatpush.msrb.mxu2 %v11646_v16  ;;  %v7519_v51 = vmul.f32 %v7495_v2, %v11692_v11 }
 0x310   :  { %9158 = vmatpush.msra.mxu3 %v11646_v16 }
 0x311   :  { %v7591_v63 = vpop.permute.xlu1 %7590  ;;  %8891 = vmatmul.f32.vlgmr.msra.gmra.mxu0 %v8890_v32 }
 0x312   :  { %v7618_v40 = vmul.f32 %v7591_v63, %v11708_v34  ;;  %9011 = vmatmul.f32.vlgmr.msrb.gmra.mxu1 %v8886_v26  ;;  %9087 = vmatpush.msra.mxu0 %v11652_v24 }
 0x313   :  { %9213 = vmatpush.msrb.mxu1 %v11755_v61 }
 0x314   :  { %v7626_v29 = vadd.f32 %v7618_v40, %v7526_v60 }
 0x316   :  { %v9016_v62 = vsel %vm78_vm1, %v7626_v29, 0  ;;  %8941 = vmatmul.f32.vlgmr.msra.gmra.mxu2 %v8887_v56 }
 0x317   :  { %v9035_v9 = vand.u32 4294901760, %v9016_v62  ;;  %9136 = vmatpush.msra.mxu2 %v11658_v19  ;;  %v7399_v6 = vpop.permute.xlu2 %7398 }
 0x319   :  { %v9036_v49 = vsub.f32 %v9016_v62, %v9035_v9  ;;  %8989 = vmatmul.f32.vlgmr.msrb.gmra.mxu0 %v8886_v26  ;;  %9066 = vmatmul.f32.vlgmr.msrb.gmra.mxu3 %v9035_v9 }
 0x31a   :  { %v7395_v16 = vpop.permute.xlu1 %7394  ;;  %9259 = vmatpush.msrb.mxu3 %v11703_v28  ;;  %9183 = vmatpush.msrb.mxu0 %v11703_v28 }
 0x31b   :  { %v9037_v24 = vand.u32 4294901760, %v9036_v49  ;;  %v7419_v61 = vmul.f32 %v7395_v16, %v11689_v54 }
 0x31c   :  { %v7688_v19 = vpop.f32.mrf.mxu1 }
 0x31d   :  { %v9038_v59 = vsub.f32 %v9036_v49, %v9037_v24  ;;  %v7427_v8 = vadd.f32 %v7419_v61, %v7320_v37  ;;  %9114 = vmatmul.f32.vlgmr.msra.gmra.mxu1 %v9037_v24 }
 0x31e   :  { %9307 = vmatpush.msra.mxu1 %v11703_v28 }
 0x31f   :  { %v9039_v31 = vand.u32 4294901760, %v9038_v59  ;;  %v7527_v26 = vadd.f32 %v7519_v51, %v7427_v8  ;;  %v12638_v51 = vld [vmem:[#allocation113_spill] sm:$0xff] }
 0x320   :  { %v7599_v28 = vpop.permute.xlu2 %7598 }
 0x321   :  { %v7627_v55 = vadd.f32 %v7619_v50, %v7527_v26  ;;  %9040 = vmatmul.f32.vlgmr.msrb.gmra.mxu2 %v9039_v31  ;;  %9090 = vmatmul.f32.vlgmr.msra.gmra.mxu0 %v9036_v49 }
 0x322   :  { %9160 = vmatmul.f32.vlgmr.msra.gmra.mxu3 %v9035_v9  ;;  %9236 = vmatpush.msrb.mxu2 %v11718_v58 }
 0x323   :  { %v9165_v1 = vsel %vm78_vm1, %v7627_v55, 0  ;;  %v7296_v56 = vpop.permute.xlu1 %7295  ;;  %9285 = vmatpush.msra.mxu0 %v11730_v39  ;;  %9362 = vmatpush.msra.mxu3 %v11800_v43  ;;  %v7420_v43 = vmul.f32 %v7399_v6, %v11689_v54  ;;  %v12637_v6 = vld [vmem:[#allocation112_spill] sm:$0xff] }
 0x324   :  { %v9184_v38 = vand.u32 4294901760, %v9165_v1  ;;  %v7662_v33 = vpop.f32.mrf.mxu0  ;;  %v7712_v25 = vpop.f32.mrf.mxu2  ;;  %v7321_v2 = vmul.f32 %v7296_v56, %v11685_v42  ;;  %v12639_v59 = vsub.f32 %v12637_v6, %v12638_v51 }
 0x325   :  { %v7689_v7 = vadd.f32 %v7688_v19, %v7662_v33  ;;  %v7782_v3 = vpop.f32.mrf.mxu1  ;;  %v7301_v33 = vpop.permute.xlu0 %7300 }
 0x326   :  { %v9185_v36 = vsub.f32 %v9165_v1, %v9184_v38  ;;  %v7736_v47 = vpop.f32.mrf.mxu3  ;;  %9215 = vmatmul.f32.vlgmr.msrb.gmra.mxu1 %v9184_v38  ;;  %v7428_v62 = vadd.f32 %v7420_v43, %v7321_v2 }
 0x327   :  { %v7713_v32 = vadd.f32 %v7712_v25, %v7689_v7  ;;  %9408 = vmatpush.msrb.mxu1 %v11739_v18  ;;  %v7322_v25 = vmul.f32 %v7301_v33, %v11685_v42 }
 0x328   :  { %v9186_v58 = vand.u32 4294901760, %v9185_v36 }
 0x329   :  { %9138 = vmatmul.f32.vlgmr.msra.gmra.mxu2 %v9035_v9  ;;  %v7737_v63 = vadd.f32 %v7736_v47, %v7713_v32  ;;  %v7620_v9 = vmul.f32 %v7599_v28, %v11708_v34  ;;  %v7503_v24 = vpop.permute.xlu2 %7502 }
 0x32a   :  { %9263 = vmatmul.f32.vlgmr.msrb.gmra.mxu3 %v9186_v58  ;;  %v9187_v39 = vsub.f32 %v9185_v36, %v9186_v58  ;;  %9332 = vmatpush.msra.mxu2 %v11739_v18 }
 0x32b   :  { %9456 = vmatpush.msrb.mxu3 %v11739_v18 }
 0x32c   :  { %v7499_v60 = vpop.permute.xlu1 %7498  ;;  %v7760_v40 = vpop.f32.mrf.mxu0  ;;  %v9188_v29 = vand.u32 4294901760, %v9187_v39 }
 0x32d   :  { %v7520_v49 = vmul.f32 %v7499_v60, %v11692_v11  ;;  %v7761_v16 = vadd.f32 %v7760_v40, %v7737_v63  ;;  %v7888_v31 = vpop.f32.mrf.mxu1  ;;  %v7521_v60 = vmul.f32 %v7503_v24, %v11692_v11  ;;  %v12640_v40 = vld [vmem:[#allocation97_spill] sm:$0xff]  ;;  %v7407_v24 = vpop.permute.xlu0 %7406 }
 0x32e   :  { %v7840_v37 = vpop.f32.mrf.mxu3  ;;  %9189 = vmatmul.f32.vlgmr.msrb.gmra.mxu0 %v9188_v29  ;;  %9309 = vmatmul.f32.vlgmr.msra.gmra.mxu1 %v9184_v38  ;;  %v12641_v29 = vld [vmem:[#allocation18_spill] sm:$0xff] }
 0x32f   :  { %v7528_v61 = vadd.f32 %v7520_v49, %v7428_v62  ;;  %v7783_v41 = vadd.f32 %v7782_v3, %v7761_v16  ;;  %9385 = vmatpush.msrb.mxu0 %v11753_v12  ;;  %9511 = vmatpush.msra.mxu1 %v11855_v30  ;;  %v12642_v62 = vsub.f32 %v12640_v40, %v12641_v29 }
 0x331   :  { %v7628_v18 = vadd.f32 %v7620_v9, %v7528_v61  ;;  %v8849_v8 = vadd.f32 %v7783_v41, %v12639_v59  ;;  %v7814_v19 = vpop.f32.mrf.mxu2  ;;  %9239 = vmatmul.f32.vlgmr.msrb.gmra.mxu2 %v9185_v36 }
 0x332   :  { %v7841_v50 = vadd.f32 %v7840_v37, %v7814_v19  ;;  %9434 = vmatpush.msrb.mxu2 %v11772_v21  ;;  %v7306_v47 = vpop.permute.xlu2 %7305 }
 0x333   :  { %v9314_v26 = vsel %vm78_vm1, %v7628_v18, 0  ;;  %8858 = vst.msk [vmem:[%s12186_s7] sm:$0x3] %vm8857_vm3, %v8849_v8  ;;  %v7422_v8 = vmul.f32 %v7407_v24, %v11689_v54 }
 0x334   :  { %v9333_v12 = vand.u32 4294901760, %v9314_v26  ;;  %v7864_v30 = vpop.f32.mrf.mxu0 }
 0x335   :  { %v7865_v55 = vadd.f32 %v7864_v30, %v7841_v50  ;;  %v7403_v1 = vpop.permute.xlu1 %7402 }
 0x336   :  { %v9334_v56 = vsub.f32 %v9314_v26, %v9333_v12  ;;  %9287 = vmatmul.f32.vlgmr.msra.gmra.mxu0 %v9184_v38  ;;  %9364 = vmatmul.f32.vlgmr.msra.gmra.mxu3 %v9333_v12  ;;  %v7421_v28 = vmul.f32 %v7403_v1, %v11689_v54  ;;  %v7934_v36 = vpop.f32.mrf.mxu3  ;;  %v7992_v38 = vpop.f32.mrf.mxu1 }
 0x337   :  { %v7889_v7 = vadd.f32 %v7888_v31, %v7865_v55  ;;  %9557 = vmatpush.msra.mxu3 %v11791_v27  ;;  %9481 = vmatpush.msra.mxu0 %v11791_v27 }
 0x338   :  { %v9335_v21 = vand.u32 4294901760, %v9334_v56  ;;  %v7429_v2 = vadd.f32 %v7421_v28, %v7322_v25 }
 0x339   :  { %v7912_v32 = vpop.f32.mrf.mxu2 }
 0x33a   :  { %v9336_v3 = vsub.f32 %v9334_v56, %v9335_v21  ;;  %v7913_v58 = vadd.f32 %v7912_v32, %v7889_v7  ;;  %9412 = vmatmul.f32.vlgmr.msrb.gmra.mxu1 %v9335_v21  ;;  %v7529_v37 = vadd.f32 %v7521_v60, %v7429_v2  ;;  %v12643_v21 = vld [vmem:[#allocation20_spill] sm:$0xff] }
 0x33b   :  { %9605 = vmatpush.msrb.mxu1 %v11791_v27  ;;  %v7607_v51 = vpop.permute.xlu2 %7606 }
 0x33c   :  { %v7935_v39 = vadd.f32 %v7934_v36, %v7913_v58  ;;  %v7966_v43 = vpop.f32.mrf.mxu0  ;;  %v9337_v63 = vand.u32 4294901760, %v9336_v3  ;;  %v7622_v28 = vmul.f32 %v7607_v51, %v11708_v34  ;;  %v12644_v36 = vld [vmem:[#allocation17_spill] sm:$0xff] }
 0x33d   :  { %v7993_v27 = vadd.f32 %v7992_v38, %v7966_v43  ;;  %v12645_v25 = vsub.f32 %v12643_v21, %v12644_v36 }
 0x33e   :  { %v8850_v49 = vadd.f32 %v7935_v39, %v12642_v62  ;;  %v7603_v16 = vpop.permute.xlu1 %7602  ;;  %9338 = vmatmul.f32.vlgmr.msra.gmra.mxu2 %v9337_v63  ;;  %9388 = vmatmul.f32.vlgmr.msrb.gmra.mxu0 %v9334_v56  ;;  %v8040_v18 = vpop.f32.mrf.mxu3 }
 0x33f   :  { %v7621_v9 = vmul.f32 %v7603_v16, %v11708_v34  ;;  %9458 = vmatmul.f32.vlgmr.msrb.gmra.mxu3 %v9333_v12  ;;  %9534 = vmatpush.msra.mxu2 %v11805_v0  ;;  %v7323_v0 = vmul.f32 %v7306_v47, %v11685_v42  ;;  %v8086_v26 = vpop.f32.mrf.mxu1 }
 0x340   :  { %8859 = vst.msk [vmem:[%s12186_s7 + $0x2] sm:$0x3] %vm8857_vm3, %v8850_v49  ;;  %9660 = vmatpush.msrb.mxu3 %v11892_v22  ;;  %9583 = vmatpush.msrb.mxu0 %v11828_v45 }
 0x341   :  { %v7629_v61 = vadd.f32 %v7621_v9, %v7529_v37  ;;  %v8016_v41 = vpop.f32.mrf.mxu2  ;;  %v7430_v55 = vadd.f32 %v7422_v8, %v7323_v0  ;;  %v12646_v8 = vld [vmem:[#allocation109_spill] sm:$0xff] }
 0x342   :  { %v8017_v6 = vadd.f32 %v8016_v41, %v7993_v27 }
 0x343   :  { %v9463_v59 = vsel %vm78_vm1, %v7629_v61, 0  ;;  %v7511_v61 = vpop.permute.xlu0 %7510 }
 0x344   :  { %v9482_v19 = vand.u32 4294901760, %v9463_v59  ;;  %v8041_v31 = vadd.f32 %v8040_v18, %v8017_v6  ;;  %v8064_v50 = vpop.f32.mrf.mxu0  ;;  %v7411_v38 = vpop.permute.xlu2 %7410 }
 0x345   :  { %v7423_v9 = vmul.f32 %v7411_v38, %v11689_v54 }
 0x346   :  { %v9483_v30 = vsub.f32 %v9463_v59, %v9482_v19  ;;  %v8065_v22 = vadd.f32 %v8064_v50, %v8041_v31  ;;  %9436 = vmatmul.f32.vlgmr.msrb.gmra.mxu2 %v9333_v12  ;;  %9513 = vmatmul.f32.vlgmr.msra.gmra.mxu1 %v9482_v19  ;;  %v8144_v3 = vpop.f32.mrf.mxu3  ;;  %v7523_v59 = vmul.f32 %v7511_v61, %v11692_v11  ;;  %v12647_v31 = vld [vmem:[#allocation29_spill] sm:$0xff] }
 0x347   :  { %v7507_v45 = vpop.permute.xlu1 %7506  ;;  %9706 = vmatpush.msra.mxu1 %v11838_v17  ;;  %9630 = vmatpush.msrb.mxu2 %v11838_v17  ;;  %v12648_v50 = vsub.f32 %v12646_v8, %v12647_v31 }
 0x348   :  { %v9484_v1 = vand.u32 4294901760, %v9483_v30  ;;  %v8087_v56 = vadd.f32 %v8086_v26, %v8065_v22  ;;  %v7522_v33 = vmul.f32 %v7507_v45, %v11692_v11 }
 0x34a   :  { %v9485_v7 = vsub.f32 %v9483_v30, %v9484_v1  ;;  %v8851_v47 = vadd.f32 %v8087_v56, %v12645_v25  ;;  %v7530_v32 = vadd.f32 %v7522_v33, %v7430_v55  ;;  %9561 = vmatmul.f32.vlgmr.msra.gmra.mxu3 %v9484_v1 }
 0x34b   :  { %9754 = vmatpush.msra.mxu3 %v11838_v17  ;;  %v8192_v17 = vpop.f32.mrf.mxu1 }
 0x34c   :  { %v9486_v12 = vand.u32 4294901760, %v9485_v7  ;;  %8860 = vst.msk [vmem:[%s12186_s7 + $0x4] sm:$0x3] %vm8857_vm3, %v8851_v47  ;;  %v7630_v58 = vadd.f32 %v7622_v28, %v7530_v32  ;;  %v8118_v2 = vpop.f32.mrf.mxu2  ;;  %v8168_v63 = vpop.f32.mrf.mxu0 }
 0x34d   :  { %v8145_v39 = vadd.f32 %v8144_v3, %v8118_v2  ;;  %v7615_v2 = vpop.permute.xlu0 %7614 }
 0x34e   :  { %v9612_v43 = vsel %vm78_vm1, %v7630_v58, 0  ;;  %9487 = vmatmul.f32.vlgmr.msra.gmra.mxu0 %v9486_v12  ;;  %9537 = vmatmul.f32.vlgmr.msra.gmra.mxu2 %v9483_v30  ;;  %v8238_v41 = vpop.f32.mrf.mxu3 }
 0x34f   :  { %v9631_v60 = vand.u32 4294901760, %v9612_v43  ;;  %v8169_v40 = vadd.f32 %v8168_v63, %v8145_v39  ;;  %9607 = vmatmul.f32.vlgmr.msrb.gmra.mxu1 %v9482_v19  ;;  %9683 = vmatpush.msra.mxu0 %v11850_v35  ;;  %v12649_v39 = vld [vmem:[#allocation26_spill] sm:$0xff] }
 0x350   :  { %v7311_v29 = vpop.permute.xlu1 %7310  ;;  %9732 = vmatpush.msra.mxu2 %v11867_v44  ;;  %9809 = vmatpush.msrb.mxu1 %v11935_v46  ;;  %v7316_v44 = vpop.permute.xlu2 %7315 }
 0x351   :  { %v9632_v62 = vsub.f32 %v9612_v43, %v9631_v60  ;;  %v7324_v49 = vmul.f32 %v7311_v29, %v11685_v42  ;;  %v8193_v37 = vadd.f32 %v8192_v17, %v8169_v40  ;;  %v12650_v43 = vld [vmem:[#allocation36_spill] sm:$0xff] }
 0x352   :  { %9662 = vmatmul.f32.vlgmr.msrb.gmra.mxu3 %v9631_v60  ;;  %v12651_v63 = vsub.f32 %v12649_v39, %v12650_v43  ;;  %v12659_v39 = vld [vmem:[#allocation32_spill] sm:$0xff] }
 0x353   :  { %v9633_v16 = vand.u32 4294901760, %v9632_v62  ;;  %9855 = vmatpush.msrb.mxu3 %v11888_v4  ;;  %v7431_v18 = vadd.f32 %v7423_v9, %v7324_v49  ;;  %v8296_v0 = vpop.f32.mrf.mxu1 }
 0x354   :  { %v8216_v27 = vpop.f32.mrf.mxu2 }
 0x355   :  { %v9634_v24 = vsub.f32 %v9632_v62, %v9633_v16  ;;  %v8217_v35 = vadd.f32 %v8216_v27, %v8193_v37  ;;  %v7531_v22 = vadd.f32 %v7523_v59, %v7431_v18  ;;  %v12652_v59 = vld [vmem:[#allocation110_spill] sm:$0xff] }
 0x356   :  { %v8270_v6 = vpop.f32.mrf.mxu0  ;;  %9585 = vmatmul.f32.vlgmr.msrb.gmra.mxu0 %v9482_v19 }
 0x357   :  { %v8239_v46 = vadd.f32 %v8238_v41, %v8217_v35  ;;  %9710 = vmatmul.f32.vlgmr.msra.gmra.mxu1 %v9633_v16  ;;  %v9635_v51 = vand.u32 4294901760, %v9634_v24  ;;  %9779 = vmatpush.msrb.mxu0 %v11888_v4  ;;  %v8297_v45 = vadd.f32 %v8296_v0, %v8270_v6  ;;  %v12653_v0 = vld [vmem:[#allocation28_spill] sm:$0xff] }
 0x358   :  { %9903 = vmatpush.msra.mxu1 %v11888_v4  ;;  %v8344_v56 = vpop.f32.mrf.mxu3  ;;  %v7515_v21 = vpop.permute.xlu2 %7514 }
 0x359   :  { %v8852_v26 = vadd.f32 %v8239_v46, %v12648_v50  ;;  %v7611_v30 = vpop.permute.xlu1 %7610  ;;  %9636 = vmatmul.f32.vlgmr.msrb.gmra.mxu2 %v9635_v51 }
 0x35a   :  { %v7623_v19 = vmul.f32 %v7611_v30, %v11708_v34  ;;  %9756 = vmatmul.f32.vlgmr.msra.gmra.mxu3 %v9631_v60  ;;  %9832 = vmatpush.msrb.mxu2 %v11901_v13 }
 0x35b   :  { %8861 = vst.msk [vmem:[%s12186_s7 + $0x6] sm:$0x3] %vm8857_vm3, %v8852_v26  ;;  %9958 = vmatpush.msra.mxu3 %v11959_v23  ;;  %v8390_v47 = vpop.f32.mrf.mxu1  ;;  %v7325_v23 = vmul.f32 %v7316_v44, %v11685_v42  ;;  %v7624_v42 = vmul.f32 %v7615_v2, %v11708_v34 }
 0x35c   :  { %v7631_v4 = vadd.f32 %v7623_v19, %v7531_v22  ;;  %v8320_v55 = vpop.f32.mrf.mxu2 }
 0x35d   :  { %v8321_v1 = vadd.f32 %v8320_v55, %v8297_v45 }
 0x35e   :  { %v9761_v33 = vsel %vm78_vm1, %v7631_v4, 0  ;;  %9686 = vmatmul.f32.vlgmr.msra.gmra.mxu0 %v9632_v62  ;;  %v8368_v13 = vpop.f32.mrf.mxu0 }
 0x35f   :  { %v9780_v28 = vand.u32 4294901760, %v9761_v33  ;;  %v8345_v7 = vadd.f32 %v8344_v56, %v8321_v1  ;;  %9881 = vmatpush.msra.mxu0 %v11911_v5  ;;  %v7524_v5 = vmul.f32 %v7515_v21, %v11692_v11  ;;  %v12655_v1 = vld [vmem:[#allocation39_spill] sm:$0xff]  ;;  %v12656_v56 = vld [vmem:[#allocation105_spill] sm:$0xff] }
 0x361   :  { %v9781_v36 = vsub.f32 %v9761_v33, %v9780_v28  ;;  %v8369_v25 = vadd.f32 %v8368_v13, %v8345_v7  ;;  %9734 = vmatmul.f32.vlgmr.msra.gmra.mxu2 %v9631_v60  ;;  %9811 = vmatmul.f32.vlgmr.msrb.gmra.mxu1 %v9780_v28  ;;  %v8448_v29 = vpop.f32.mrf.mxu3  ;;  %v12657_v33 = vsub.f32 %v12655_v1, %v12656_v56 }
 0x362   :  { %v7415_v32 = vpop.permute.xlu1 %7414  ;;  %9928 = vmatpush.msra.mxu2 %v11928_v53  ;;  %10004 = vmatpush.msrb.mxu1 %v11928_v53 }
 0x363   :  { %v9782_v12 = vand.u32 4294901760, %v9781_v36  ;;  %v8391_v3 = vadd.f32 %v8390_v47, %v8369_v25  ;;  %v7424_v58 = vmul.f32 %v7415_v32, %v11689_v54  ;;  %v8496_v27 = vpop.f32.mrf.mxu1 }
 0x365   :  { %v9783_v38 = vsub.f32 %v9781_v36, %v9782_v12  ;;  %v8853_v60 = vadd.f32 %v8391_v3, %v12651_v63  ;;  %v7432_v40 = vadd.f32 %v7424_v58, %v7325_v23  ;;  %9859 = vmatmul.f32.vlgmr.msrb.gmra.mxu3 %v9782_v12 }
 0x366   :  { %10052 = vmatpush.msrb.mxu3 %v11928_v53  ;;  %v8472_v16 = vpop.f32.mrf.mxu0 }
 0x367   :  { %v9784_v17 = vand.u32 4294901760, %v9783_v38  ;;  %8862 = vst.msk [vmem:[%s12186_s7 + $0x8] sm:$0x3] %vm8857_vm3, %v8853_v60  ;;  %v7532_v54 = vadd.f32 %v7524_v5, %v7432_v40  ;;  %v12658_v38 = vld [vmem:[#allocation111_spill] sm:$0xff] }
 0x368   :  { %v12660_v43 = vsub.f32 %v12658_v38, %v12659_v39  ;;  %v12665_v38 = vld [vmem:[#allocation6_spill] sm:$0xff] }
 0x369   :  { %v7632_v11 = vadd.f32 %v7624_v42, %v7532_v54  ;;  %v8422_v62 = vpop.f32.mrf.mxu2  ;;  %9785 = vmatmul.f32.vlgmr.msrb.gmra.mxu0 %v9784_v17  ;;  %9835 = vmatmul.f32.vlgmr.msrb.gmra.mxu2 %v9781_v36  ;;  %v3810_v54 = vadd.f32 %v11370_v10, %v11366_v15 }
 0x36a   :  { %v8449_v49 = vadd.f32 %v8448_v29, %v8422_v62  ;;  %9905 = vmatmul.f32.vlgmr.msra.gmra.mxu1 %v9780_v28  ;;  %10030 = vmatpush.msrb.mxu2 %v11946_v52  ;;  %v8542_v6 = vpop.f32.mrf.mxu3 }
 0x36b   :  { %v9910_v53 = vsel %vm78_vm1, %v7632_v11, 0  ;;  %9981 = vmatpush.msrb.mxu0 %v11939_v14  ;;  %v8600_v51 = vpop.f32.mrf.mxu1  ;;  %v12654_v14 = vsub.f32 %v12652_v59, %v12653_v0 }
 0x36c   :  { %v9929_v37 = vand.u32 4294901760, %v9910_v53  ;;  %v8473_v9 = vadd.f32 %v8472_v16, %v8449_v49 }
 0x36e   :  { %v9930_v24 = vsub.f32 %v9910_v53, %v9929_v37  ;;  %9960 = vmatmul.f32.vlgmr.msra.gmra.mxu3 %v9929_v37  ;;  %v8497_v34 = vadd.f32 %v8496_v27, %v8473_v9  ;;  %v3832_v53 = vadd.f32 %v11373_v20, %v3810_v54 }
 0x370   :  { %v9931_v61 = vand.u32 4294901760, %v9930_v24 }
 0x371   :  { %v8520_v35 = vpop.f32.mrf.mxu2  ;;  %9883 = vmatmul.f32.vlgmr.msra.gmra.mxu0 %v9780_v28 }
 0x372   :  { %v8521_v41 = vadd.f32 %v8520_v35, %v8497_v34  ;;  %10008 = vmatmul.f32.vlgmr.msrb.gmra.mxu1 %v9931_v61  ;;  %v9932_v18 = vsub.f32 %v9930_v24, %v9931_v61 }
 0x373   :  { %v8574_v44 = vpop.f32.mrf.mxu0 }
 0x374   :  { %v8543_v52 = vadd.f32 %v8542_v6, %v8521_v41  ;;  %v9933_v46 = vand.u32 4294901760, %v9932_v18  ;;  %v8601_v31 = vadd.f32 %v8600_v51, %v8574_v44  ;;  %v8694_v4 = vpop.f32.mrf.mxu1 }
 0x375   :  { %v8648_v30 = vpop.f32.mrf.mxu3 }
 0x376   :  { %v8854_v8 = vadd.f32 %v8543_v52, %v12654_v14  ;;  %9934 = vmatmul.f32.vlgmr.msra.gmra.mxu2 %v9933_v46  ;;  %10054 = vmatmul.f32.vlgmr.msrb.gmra.mxu3 %v9929_v37  ;;  %v12661_v14 = vld [vmem:[#allocation44_spill] sm:$0xff] }
 0x378   :  { %8863 = vst.msk [vmem:[%s12186_s7 + $0xa] sm:$0x3] %vm8857_vm3, %v8854_v8  ;;  %v4102_v8 = vadd.f32 %v12661_v14, %v11427_v48 }
 0x379   :  { %v8624_v50 = vpop.f32.mrf.mxu2  ;;  %9984 = vmatmul.f32.vlgmr.msrb.gmra.mxu0 %v9930_v24 }
 0x37a   :  { %v8625_v26 = vadd.f32 %v8624_v50, %v8601_v31 }
 0x37b   :  { %v8672_v19 = vpop.f32.mrf.mxu0 }
 0x37c   :  { %v8649_v22 = vadd.f32 %v8648_v30, %v8625_v26 }
 0x37e   :  { %v8673_v45 = vadd.f32 %v8672_v19, %v8649_v22  ;;  %10032 = vmatmul.f32.vlgmr.msrb.gmra.mxu2 %v9929_v37  ;;  %v12662_v22 = vld [vmem:[#allocation55_spill] sm:$0xff] }
 0x37f   :  { %v8800_v21 = vpop.f32.mrf.mxu1  ;;  %v4124_v19 = vadd.f32 %v12662_v22, %v4102_v8 }
 0x380   :  { %v8695_v55 = vadd.f32 %v8694_v4, %v8673_v45 }
 0x381   :  { %v8752_v7 = vpop.f32.mrf.mxu3 }
 0x382   :  { %v8855_v28 = vadd.f32 %v8695_v55, %v12657_v33 }
 0x383   :  { %v8776_v36 = vpop.f32.mrf.mxu0 }
 0x384   :  { %8864 = vst.msk [vmem:[%s12186_s7 + $0xc] sm:$0x3] %vm8857_vm3, %v8855_v28 }
 0x387   :  { %v8918_v2 = vpop.f32.mrf.mxu1 }
 0x389   :  { %v8726_v13 = vpop.f32.mrf.mxu2 }
 0x38a   :  { %v8753_v25 = vadd.f32 %v8752_v7, %v8726_v13  ;;  %v8846_v32 = vpop.f32.mrf.mxu3 }
 0x38c   :  { %v8777_v47 = vadd.f32 %v8776_v36, %v8753_v25 }
 0x38e   :  { %v8801_v23 = vadd.f32 %v8800_v21, %v8777_v47  ;;  %v8892_v3 = vpop.f32.mrf.mxu0 }
 0x38f   :  { %v8919_v60 = vadd.f32 %v8918_v2, %v8892_v3  ;;  %v9012_v62 = vpop.f32.mrf.mxu1 }
 0x391   :  { %v8824_v12 = vpop.f32.mrf.mxu2 }
 0x392   :  { %v8825_v58 = vadd.f32 %v8824_v12, %v8801_v23  ;;  %v8966_v17 = vpop.f32.mrf.mxu3 }
 0x394   :  { %v8847_v5 = vadd.f32 %v8846_v32, %v8825_v58  ;;  %v12663_v32 = vld [vmem:[#allocation48_spill] sm:$0xff] }
 0x396   :  { %v8856_v63 = vadd.f32 %v8847_v5, %v12660_v43  ;;  %v8990_v29 = vpop.f32.mrf.mxu0  ;;  %v12664_v5 = vld [vmem:[#allocation4_spill] sm:$0xff] }
 0x397   :  { %v4394_v39 = vadd.f32 %v12665_v38, %v12664_v5 }
 0x398   :  { %8865 = vst.msk [vmem:[%s12186_s7 + $0xe] sm:$0x3] %vm8857_vm3, %v8856_v63 }
 0x399   :  { %v8942_v40 = vpop.f32.mrf.mxu2 }
 0x39a   :  { %v8943_v42 = vadd.f32 %v8942_v40, %v8919_v60  ;;  %v9115_v34 = vpop.f32.mrf.mxu1 }
 0x39c   :  { %v8967_v11 = vadd.f32 %v8966_v17, %v8943_v42  ;;  %v9067_v9 = vpop.f32.mrf.mxu3  ;;  %v12666_v17 = vld [vmem:[#allocation50_spill] sm:$0xff] }
 0x39d   :  { %v4416_v42 = vadd.f32 %v12666_v17, %v4394_v39 }
 0x39e   :  { %v8991_v49 = vadd.f32 %v8990_v29, %v8967_v11  ;;  %v9091_v61 = vpop.f32.mrf.mxu0 }
 0x3a0   :  { %v9013_v16 = vadd.f32 %v9012_v62, %v8991_v49 }
 0x3a2   :  { %v10058_v37 = vadd.f32 %v9013_v16, %v3832_v53 }
 0x3a3   :  { %v9216_v20 = vpop.f32.mrf.mxu1 }
 0x3a4   :  { %10066 = vst.msk [vmem:[%s12187_s8] sm:$0x3] %vm8857_vm3, %v10058_v37  ;;  %v9041_v27 = vpop.f32.mrf.mxu2 }
 0x3a5   :  { %v9068_v24 = vadd.f32 %v9067_v9, %v9041_v27  ;;  %v9161_v10 = vpop.f32.mrf.mxu3 }
 0x3a7   :  { %v9092_v35 = vadd.f32 %v9091_v61, %v9068_v24 }
 0x3a9   :  { %v9116_v15 = vadd.f32 %v9115_v34, %v9092_v35 }
 0x3ab   :  { %v9190_v6 = vpop.f32.mrf.mxu0  ;;  %v9310_v30 = vpop.f32.mrf.mxu1 }
 0x3ac   :  { %v9139_v41 = vpop.f32.mrf.mxu2  ;;  %v9217_v46 = vadd.f32 %v9216_v20, %v9190_v6 }
 0x3ad   :  { %v9140_v18 = vadd.f32 %v9139_v41, %v9116_v15  ;;  %v9264_v0 = vpop.f32.mrf.mxu3 }
 0x3af   :  { %v9162_v44 = vadd.f32 %v9161_v10, %v9140_v18  ;;  %v12667_v10 = vld [vmem:[#allocation8_spill] sm:$0xff] }
 0x3b1   :  { %v10059_v52 = vadd.f32 %v9162_v44, %v11411_v57 }
 0x3b3   :  { %10067 = vst.msk [vmem:[%s12187_s8 + $0x2] sm:$0x3] %vm8857_vm3, %v10059_v52  ;;  %v9288_v50 = vpop.f32.mrf.mxu0  ;;  %v12668_v52 = vld [vmem:[#allocation2_spill] sm:$0xff] }
 0x3b4   :  { %v9240_v51 = vpop.f32.mrf.mxu2 }
 0x3b5   :  { %v9241_v59 = vadd.f32 %v9240_v51, %v9217_v46  ;;  %v12669_v46 = vld [vmem:[#allocation47_spill] sm:$0xff] }
 0x3b6   :  { %v4686_v51 = vadd.f32 %v12669_v46, %v12668_v52 }
 0x3b7   :  { %v9265_v31 = vadd.f32 %v9264_v0, %v9241_v59  ;;  %v9413_v33 = vpop.f32.mrf.mxu1 }
 0x3b9   :  { %v9289_v26 = vadd.f32 %v9288_v50, %v9265_v31  ;;  %v9365_v4 = vpop.f32.mrf.mxu3  ;;  %v12670_v31 = vld [vmem:[#allocation9_spill] sm:$0xff] }
 0x3ba   :  { %v4708_v50 = vadd.f32 %v12670_v31, %v4686_v51 }
 0x3bb   :  { %v9311_v45 = vadd.f32 %v9310_v30, %v9289_v26  ;;  %v9389_v56 = vpop.f32.mrf.mxu0 }
 0x3bd   :  { %v10060_v57 = vadd.f32 %v9311_v45, %v4124_v19 }
 0x3bf   :  { %10068 = vst.msk [vmem:[%s12187_s8 + $0x4] sm:$0x3] %vm8857_vm3, %v10060_v57 }
 0x3c1   :  { %v9339_v55 = vpop.f32.mrf.mxu2 }
 0x3c2   :  { %v9366_v1 = vadd.f32 %v9365_v4, %v9339_v55  ;;  %v9459_v13 = vpop.f32.mrf.mxu3 }
 0x3c3   :  { %v9514_v25 = vpop.f32.mrf.mxu1 }
 0x3c4   :  { %v9390_v28 = vadd.f32 %v9389_v56, %v9366_v1 }
 0x3c6   :  { %v9414_v48 = vadd.f32 %v9413_v33, %v9390_v28 }
 0x3c9   :  { %v9437_v7 = vpop.f32.mrf.mxu2 }
 0x3ca   :  { %v9438_v21 = vadd.f32 %v9437_v7, %v9414_v48  ;;  %v12671_v7 = vld [vmem:[#allocation3_spill] sm:$0xff] }
 0x3cb   :  { %v9488_v36 = vpop.f32.mrf.mxu0 }
 0x3cc   :  { %v9460_v47 = vadd.f32 %v9459_v13, %v9438_v21  ;;  %v9515_v12 = vadd.f32 %v9514_v25, %v9488_v36  ;;  %v9608_v60 = vpop.f32.mrf.mxu1 }
 0x3cd   :  { %v9562_v58 = vpop.f32.mrf.mxu3 }
 0x3ce   :  { %v10061_v23 = vadd.f32 %v9460_v47, %v12663_v32 }
 0x3d0   :  { %10069 = vst.msk [vmem:[%s12187_s8 + $0x6] sm:$0x3] %vm8857_vm3, %v10061_v23 }
 0x3d1   :  { %v9538_v3 = vpop.f32.mrf.mxu2 }
 0x3d2   :  { %v9539_v2 = vadd.f32 %v9538_v3, %v9515_v12 }
 0x3d3   :  { %v9586_v63 = vpop.f32.mrf.mxu0 }
 0x3d4   :  { %v9563_v43 = vadd.f32 %v9562_v58, %v9539_v2  ;;  %v9711_v37 = vpop.f32.mrf.mxu1 }
 0x3d5   :  { %v9663_v11 = vpop.f32.mrf.mxu3 }
 0x3d6   :  { %v9587_v40 = vadd.f32 %v9586_v63, %v9563_v43 }
 0x3d8   :  { %v9609_v54 = vadd.f32 %v9608_v60, %v9587_v40 }
 0x3da   :  { %v10062_v29 = vadd.f32 %v9609_v54, %v4416_v42 }
 0x3db   :  { %v9687_v53 = vpop.f32.mrf.mxu0 }
 0x3dc   :  { %10070 = vst.msk [vmem:[%s12187_s8 + $0x8] sm:$0x3] %vm8857_vm3, %v10062_v29  ;;  %v9637_v62 = vpop.f32.mrf.mxu2 }
 0x3dd   :  { %v9664_v49 = vadd.f32 %v9663_v11, %v9637_v62  ;;  %v9757_v34 = vpop.f32.mrf.mxu3 }
 0x3de   :  { %v9812_v15 = vpop.f32.mrf.mxu1 }
 0x3df   :  { %v9688_v16 = vadd.f32 %v9687_v53, %v9664_v49 }
 0x3e1   :  { %v9712_v9 = vadd.f32 %v9711_v37, %v9688_v16 }
 0x3e4   :  { %v9735_v27 = vpop.f32.mrf.mxu2 }
 0x3e5   :  { %v9736_v24 = vadd.f32 %v9735_v27, %v9712_v9 }
 0x3e6   :  { %v9786_v61 = vpop.f32.mrf.mxu0 }
 0x3e7   :  { %v9758_v35 = vadd.f32 %v9757_v34, %v9736_v24  ;;  %v9813_v18 = vadd.f32 %v9812_v15, %v9786_v61  ;;  %v9906_v8 = vpop.f32.mrf.mxu1 }
 0x3e8   :  { %v9860_v20 = vpop.f32.mrf.mxu3 }
 0x3e9   :  { %v10063_v41 = vadd.f32 %v9758_v35, %v12667_v10 }
 0x3eb   :  { %10071 = vst.msk [vmem:[%s12187_s8 + $0xa] sm:$0x3] %vm8857_vm3, %v10063_v41 }
 0x3ec   :  { %v9836_v6 = vpop.f32.mrf.mxu2 }
 0x3ed   :  { %v9837_v44 = vadd.f32 %v9836_v6, %v9813_v18 }
 0x3ee   :  { %v9884_v0 = vpop.f32.mrf.mxu0 }
 0x3ef   :  { %v9861_v59 = vadd.f32 %v9860_v20, %v9837_v44  ;;  %v10009_v55 = vpop.f32.mrf.mxu1 }
 0x3f1   :  { %v9885_v14 = vadd.f32 %v9884_v0, %v9861_v59  ;;  %v9961_v22 = vpop.f32.mrf.mxu3 }
 0x3f3   :  { %v9907_v26 = vadd.f32 %v9906_v8, %v9885_v14 }
 0x3f5   :  { %v10064_v30 = vadd.f32 %v9907_v26, %v4708_v50 }
 0x3f6   :  { %v9985_v57 = vpop.f32.mrf.mxu0 }
 0x3f7   :  { %10072 = vst.msk [vmem:[%s12187_s8 + $0xc] sm:$0x3] %vm8857_vm3, %v10064_v30 }
 0x3f9   :  { %v9935_v19 = vpop.f32.mrf.mxu2  ;;  %v10055_v28 = vpop.f32.mrf.mxu3 }
 0x3fa   :  { %v9962_v45 = vadd.f32 %v9961_v22, %v9935_v19 }
 0x3fc   :  { %v9986_v4 = vadd.f32 %v9985_v57, %v9962_v45 }
 0x3fe   :  { %v10010_v1 = vadd.f32 %v10009_v55, %v9986_v4 }
 0x401   :  { %v10033_v56 = vpop.f32.mrf.mxu2 }
 0x402   :  { %v10034_v33 = vadd.f32 %v10033_v56, %v10010_v1 }
 0x404   :  { %v10056_v48 = vadd.f32 %v10055_v28, %v10034_v33 }
 0x406   :  { %v10065_v13 = vadd.f32 %v10056_v48, %v12671_v7 }
 0x408   :  { %10073 = vst.msk [vmem:[%s12187_s8 + $0xe] sm:$0x3] %vm8857_vm3, %v10065_v13 }

</bundles_post_ra>
